<compile_context>
chip_gen: v7x
topology: tpu7x:2x2x1
jax: 0.10.0
libtpu: 0.0.40
codegen_flags: <defaults>
</compile_context>

<pallas_src>
import functools

import numpy as np
import jax
import jax.numpy as jnp
from jax.experimental import pallas as pl
from jax.experimental.pallas import tpu as pltpu


_MXU_DTYPE = jnp.bfloat16      # matmul-input dtype (accumulation is always f32)


# ----------------------------------------------------------------------------
# kernel-side helpers
# ----------------------------------------------------------------------------
def _swish(z):
    # Swish(beta=1) = z * sigmoid(z); exp and the divide both run on the EUP.
    return z * pl.reciprocal(1.0 + jnp.exp(-z), approx=True)


def _dot(a, b):
    return jnp.dot(a.astype(_MXU_DTYPE), b.astype(_MXU_DTYPE),
                   preferred_element_type=jnp.float32)


def _bn_t(z, gamma_row, beta_row, batch, n_edges):
    """BatchNorm1d(num_features=n_edges), training-mode stats, on the transposed
    layout z: [hidden, batch*n_edges].  Lane c belongs to channel (c % n_edges);
    stats over (batch, hidden) = sublane reduce + lane-roll batch fold (f32)."""
    hidden = z.shape[0]
    colsum = jnp.sum(z, axis=0, keepdims=True)             # [1, B*E]
    colsq = jnp.sum(z * z, axis=0, keepdims=True)          # [1, B*E]
    ch_sum, ch_sq = colsum, colsq
    for b in range(1, batch):                               # static, tiny loop
        ch_sum = ch_sum + pltpu.roll(colsum, shift=b * n_edges, axis=1)
        ch_sq = ch_sq + pltpu.roll(colsq, shift=b * n_edges, axis=1)
    inv_cnt = 1.0 / float(batch * hidden)
    mean = ch_sum * inv_cnt
    var = jnp.maximum(ch_sq * inv_cnt - mean * mean, 0.0)   # biased (train-mode)
    inv = jax.lax.rsqrt(var + 1e-5)
    scale = inv * gamma_row
    shift = beta_row - mean * scale
    return z * scale + shift


# ----------------------------------------------------------------------------
# the single fused Pallas kernel (no grid: one program does the whole forward)
# ----------------------------------------------------------------------------
def fused_gnn2_kernel(data_ref, const_ref, layer_ref, out_ref, *,
                      dims, c_off, l_off, layer_rows):
    (B, N, F, O, VH, MH, MO, UH, PH, PO, QH, L) = dims
    E = N * N
    BN = B * N
    BE = B * E

    def cw(name, h, w):                   # static slice of the constants slab
        o = c_off[name]
        return const_ref[o:o + h, 0:w]

    def lw(l, name, h, w):                # static slice of layer l's weight slab
        o = l * layer_rows + l_off[name]
        return layer_ref[o:o + h, 0:w]

    xT = data_ref[0:F, :]                 # [F, B*N] node features (transposed)
    vT = data_ref[F:F + O, :]             # [O, B*N] input vectors (transposed)

    # ---- vec_embedding_mlp(v) -> x1 ------------------------------------------
    h = _swish(_dot(cw('vw1', VH, O), vT) + cw('vb1', VH, BN))
    h = _swish(_dot(cw('vw2', VH, VH), h) + cw('vb2', VH, BN))
    x1T = _dot(cw('vw3', O, VH), h) + cw('vb3', O, BN)           # [O, B*N]

    x2T = xT
    # ---- GNN layers (static unrolled loop over the stacked weight slab) -------
    for l in range(L):
        # one gather matmul for BOTH x_i and x_j (gtT | gsT lane-concat)
        both = _dot(x2T, cw('gtgs', BN, 2 * BE))                 # [F, 2*B*E]
        featT = jnp.concatenate([both[:, 0:BE], both[:, BE:2 * BE]], axis=0)

        m = _swish(_dot(lw(l, 'mw1', MH, 2 * F), featT) + lw(l, 'mb1', MH, BE))
        m = _bn_t(m, lw(l, 'g1', 1, BE), lw(l, 'be1', 1, BE), B, E)
        m = _swish(_dot(lw(l, 'mw2', MH, MH), m) + lw(l, 'mb2', MH, BE))
        m = _bn_t(m, lw(l, 'g2', 1, BE), lw(l, 'be2', 1, BE), B, E)
        m = _swish(_dot(lw(l, 'mw3', MH, MH), m) + lw(l, 'mb3', MH, BE))
        m = _bn_t(m, lw(l, 'g3', 1, BE), lw(l, 'be3', 1, BE), B, E)
        msgT = _swish(_dot(lw(l, 'mw4', MO, MH), m) + lw(l, 'mb4', MO, BE))

        aggT = _dot(msgT, cw('agg', BE, BN))                     # [MO, B*N] mean

        updT = jnp.concatenate([x1T, x2T, aggT], axis=0)         # [O+F+MO, B*N]
        u = _swish(_dot(lw(l, 'uw1', UH, O + F + MO), updT) + lw(l, 'ub1', UH, BN))
        u = _swish(_dot(lw(l, 'uw2', UH, UH), u) + lw(l, 'ub2', UH, BN))
        u = _swish(_dot(lw(l, 'uw3', UH, UH), u) + lw(l, 'ub3', UH, BN))
        u = _swish(_dot(lw(l, 'uw4', F, UH), u) + lw(l, 'ub4', F, BN))
        x2T = x2T + u                                            # residual add

    # ---- heads + coefficient-weighted pooling ---------------------------------
    h2 = _swish(_dot(cw('pw1', PH, F), x2T) + cw('pb1', PH, BN))
    h2 = _swish(_dot(cw('pw2', PH, PH), h2) + cw('pb2', PH, BN))
    h2 = _swish(_dot(cw('pw3', PH, PH), h2) + cw('pb3', PH, BN))
    h2 = _dot(cw('pw4', PO, PH), h2) + cw('pb4', PO, BN)         # pre_pool (no act)
    c = _swish(_dot(cw('qw1', QH, PO), h2) + cw('qb1', QH, BN))
    c = _dot(cw('qw2', 1, QH), c) + cw('qb2', 1, BN)             # [1, B*N]

    weightedT = x1T * c                                          # [O, B*N]
    # pooling operator is exact 0/1 -> keep this final reduce in f32
    out_ref[...] = jnp.dot(weightedT, cw('pool', BN, B),
                           preferred_element_type=jnp.float32)   # [O, B]


# ----------------------------------------------------------------------------
# host-side slab packing
# ----------------------------------------------------------------------------
def _round8(n):
    return ((n + 7) // 8) * 8


def _tile_bias(b, cols):
    return np.tile(np.asarray(b, np.float32).reshape(-1, 1), (1, cols))


def _pack_slab(entries):
    """Pack [(name, 2-D array)] into one [rows, lanes] f32 slab.  Every entry
    starts at a sublane offset that is a multiple of 8, so every in-kernel
    static slice stays (8,128)-tile aligned.  Returns (slab, offsets, rows)."""
    lanes = max(int(a.shape[1]) for _, a in entries)
    lanes = ((lanes + 127) // 128) * 128
    offs, row = {}, 0
    for name, a in entries:
        offs[name] = row
        row += _round8(int(a.shape[0]))
    rows = _round8(max(row, 8))
    slab = np.zeros((rows, lanes), np.float32)
    for name, a in entries:
        a = np.asarray(a, np.float32)
        slab[offs[name]:offs[name] + a.shape[0], :a.shape[1]] = a
    return slab, offs, rows


def build_graph_operators(edge_index, batch, n_nodes):
    """Precompute (once) the dense gather / mean-aggregation / pooling
    operators in the transposed, lane-dense layout.  gtT and gsT are
    lane-concatenated so the kernel gathers x_i and x_j with ONE matmul."""
    edge_index = np.asarray(edge_index)
    src, tgt = edge_index[0], edge_index[1]
    n_edges = src.shape[0]
    BN, BE = batch * n_nodes, batch * n_edges

    gtT = np.zeros((BN, BE), np.float32)     # gather target features
    gsT = np.zeros((BN, BE), np.float32)     # gather source features
    aggT = np.zeros((BE, BN), np.float32)    # mean aggregation to targets
    poolT = np.zeros((BN, batch), np.float32)

    deg = np.zeros((n_nodes,), np.float32)
    np.add.at(deg, tgt, 1.0)
    deg = np.maximum(deg, 1.0)

    for b in range(batch):
        for e in range(n_edges):
            c = b * n_edges + e
            gtT[b * n_nodes + tgt[e], c] = 1.0
            gsT[b * n_nodes + src[e], c] = 1.0
            aggT[c, b * n_nodes + tgt[e]] = 1.0 / deg[tgt[e]]
        for n in range(n_nodes):
            poolT[b * n_nodes + n, b] = 1.0

    gtgsT = np.concatenate([gtT, gsT], axis=1)   # [B*N, 2*B*E]
    return gtgsT, aggT, poolT


def pack_constants(params, graph_ops, batch, n_nodes):
    BN = batch * n_nodes
    gtgsT, aggT, poolT = graph_ops
    pe, ph = params['vec_emb'], params['head']
    T = lambda w: np.asarray(w, np.float32).T
    entries = [
        ('gtgs', gtgsT), ('agg', aggT), ('pool', poolT),
        ('vw1', T(pe['w1'])), ('vb1', _tile_bias(pe['b1'], BN)),
        ('vw2', T(pe['w2'])), ('vb2', _tile_bias(pe['b2'], BN)),
        ('vw3', T(pe['w3'])), ('vb3', _tile_bias(pe['b3'], BN)),
        ('pw1', T(ph['pw1'])), ('pb1', _tile_bias(ph['pb1'], BN)),
        ('pw2', T(ph['pw2'])), ('pb2', _tile_bias(ph['pb2'], BN)),
        ('pw3', T(ph['pw3'])), ('pb3', _tile_bias(ph['pb3'], BN)),
        ('pw4', T(ph['pw4'])), ('pb4', _tile_bias(ph['pb4'], BN)),
        ('qw1', T(ph['qw1'])), ('qb1', _tile_bias(ph['qb1'], BN)),
        ('qw2', T(ph['qw2'])), ('qb2', _tile_bias(ph['qb2'], BN)),
    ]
    slab, offs, _ = _pack_slab(entries)
    return jnp.asarray(slab), offs


def pack_layers(params, batch, n_nodes):
    E = n_nodes * n_nodes
    BN, BE = batch * n_nodes, batch * E
    T = lambda w: np.asarray(w, np.float32).T
    bn_row = lambda g: np.tile(np.asarray(g, np.float32).reshape(1, E), (1, batch))
    slabs, offs, rows = [], None, None
    for lp in params['gnn_layers']:
        entries = [
            ('mw1', T(lp['mw1'])), ('mb1', _tile_bias(lp['mb1'], BE)),
            ('g1', bn_row(lp['g1'])), ('be1', bn_row(lp['be1'])),
            ('mw2', T(lp['mw2'])), ('mb2', _tile_bias(lp['mb2'], BE)),
            ('g2', bn_row(lp['g2'])), ('be2', bn_row(lp['be2'])),
            ('mw3', T(lp['mw3'])), ('mb3', _tile_bias(lp['mb3'], BE)),
            ('g3', bn_row(lp['g3'])), ('be3', bn_row(lp['be3'])),
            ('mw4', T(lp['mw4'])), ('mb4', _tile_bias(lp['mb4'], BE)),
            ('uw1', T(lp['uw1'])), ('ub1', _tile_bias(lp['ub1'], BN)),
            ('uw2', T(lp['uw2'])), ('ub2', _tile_bias(lp['ub2'], BN)),
            ('uw3', T(lp['uw3'])), ('ub3', _tile_bias(lp['ub3'], BN)),
            ('uw4', T(lp['uw4'])), ('ub4', _tile_bias(lp['ub4'], BN)),
        ]
        slab, offs, rows = _pack_slab(entries)
        slabs.append(slab)
    return jnp.asarray(np.concatenate(slabs, axis=0)), offs, rows


# ----------------------------------------------------------------------------
# parameters (deterministic synthetic init, PyTorch-Linear-style uniform)
# ----------------------------------------------------------------------------
class _Keys:
    def __init__(self, key):
        self._key = key

    def __call__(self):
        self._key, sub = jax.random.split(self._key)
        return sub


def _linear(keys, fin, fout):
    bound = 1.0 / float(np.sqrt(fin))
    w = jax.random.uniform(keys(), (fin, fout), jnp.float32, -bound, bound)
    b = jax.random.uniform(keys(), (1, fout), jnp.float32, -bound, bound)
    return w, b


def init_params(key, cfg):
    keys = _Keys(key)
    F = cfg['node_feature_dim']
    O = cfg['omega_steps']
    VH = cfg['vec_emb_hidden_dim']
    MH = cfg['message_hidden_dim']
    MO = cfg['message_out_dim']
    UH = cfg['update_hidden_dim']
    UO = cfg['update_out_dim']
    PH = cfg['pre_pool_hidden_dim']
    PO = cfg['pre_pool_out_dim']
    QH = cfg['post_pool_hidden_dim']
    E = cfg['n_nodes'] ** 2
    msg_in = 2 * F
    upd_in = O + F + MO

    params = {}
    w1, b1 = _linear(keys, O, VH)
    w2, b2 = _linear(keys, VH, VH)
    w3, b3 = _linear(keys, VH, O)
    params['vec_emb'] = dict(w1=w1, b1=b1, w2=w2, b2=b2, w3=w3, b3=b3)

    layers = []
    for _ in range(cfg['hidden_layer']):
        lp = {}
        lp['mw1'], lp['mb1'] = _linear(keys, msg_in, MH)
        lp['mw2'], lp['mb2'] = _linear(keys, MH, MH)
        lp['mw3'], lp['mb3'] = _linear(keys, MH, MH)
        lp['mw4'], lp['mb4'] = _linear(keys, MH, MO)
        for i in (1, 2, 3):              # BatchNorm1d affine init: weight=1, bias=0
            lp[f'g{i}'] = jnp.ones((E, 1), jnp.float32)
            lp[f'be{i}'] = jnp.zeros((E, 1), jnp.float32)
        lp['uw1'], lp['ub1'] = _linear(keys, upd_in, UH)
        lp['uw2'], lp['ub2'] = _linear(keys, UH, UH)
        lp['uw3'], lp['ub3'] = _linear(keys, UH, UH)
        lp['uw4'], lp['ub4'] = _linear(keys, UH, UO)
        layers.append(lp)
    params['gnn_layers'] = layers

    ph = {}
    ph['pw1'], ph['pb1'] = _linear(keys, UO, PH)
    ph['pw2'], ph['pb2'] = _linear(keys, PH, PH)
    ph['pw3'], ph['pb3'] = _linear(keys, PH, PH)
    ph['pw4'], ph['pb4'] = _linear(keys, PH, PO)
    ph['qw1'], ph['qb1'] = _linear(keys, PO, QH)
    ph['qw2'], ph['qb2'] = _linear(keys, QH, 1)
    params['head'] = ph
    return params


# ----------------------------------------------------------------------------
# forward: one fused pallas_call (no grid, three packed operands)
# ----------------------------------------------------------------------------
def gnn2_forward(data, const_slab, c_off, layer_slab, l_off, layer_rows, cfg):
    x = data['node_feature']            # [B, N, F]
    v = data['vectors']                 # [B, N, O]
    B, N, F = x.shape
    O = v.shape[-1]

    xT = x.reshape(B * N, F).T.astype(jnp.float32)       # [F, B*N]
    vT = v.reshape(B * N, O).T.astype(jnp.float32)       # [O, B*N]
    data_slab = jnp.concatenate([xT, vT], axis=0)        # [F+O, B*N]

    dims = (B, N, F, O,
            cfg['vec_emb_hidden_dim'], cfg['message_hidden_dim'],
            cfg['message_out_dim'], cfg['update_hidden_dim'],
            cfg['pre_pool_hidden_dim'], cfg['pre_pool_out_dim'],
            cfg['post_pool_hidden_dim'], cfg['hidden_layer'])

    kernel = functools.partial(fused_gnn2_kernel, dims=dims, c_off=c_off,
                               l_off=l_off, layer_rows=layer_rows)
    out_t = pl.pallas_call(
        kernel,
        out_shape=jax.ShapeDtypeStruct((O, B), jnp.float32),
        compiler_params=pltpu.CompilerParams(vmem_limit_bytes=32 * 1024 * 1024),
    )(data_slab, const_slab, layer_slab)
    return out_t.T                       # [B, O]


# ----------------------------------------------------------------------------
# pure-JAX reference (mirrors the PyTorch forward) for the correctness check
# ----------------------------------------------------------------------------
def reference_forward(data, params):
    edge_index = data['edge_index'][0]
    src, tgt = edge_index[0], edge_index[1]
    x = data['node_feature']
    v = data['vectors']
    swish = lambda z: z * jax.nn.sigmoid(z)

    pe = params['vec_emb']
    x1 = swish(v @ pe['w1'] + pe['b1'])
    x1 = swish(x1 @ pe['w2'] + pe['b2'])
    x1 = x1 @ pe['w3'] + pe['b3']

    def bn(z, gamma, beta):
        mean = jnp.mean(z, axis=(0, 2), keepdims=True)
        var = jnp.mean((z - mean) ** 2, axis=(0, 2), keepdims=True)
        zn = (z - mean) / jnp.sqrt(var + 1e-5)
        return zn * gamma.reshape(1, -1, 1) + beta.reshape(1, -1, 1)

    x2 = x
    for lp in params['gnn_layers']:
        x_i = x2[:, tgt, :]
        x_j = x2[:, src, :]
        feat = jnp.concatenate([x_i, x_j], axis=-1)
        h = swish(feat @ lp['mw1'] + lp['mb1']); h = bn(h, lp['g1'], lp['be1'])
        h = swish(h @ lp['mw2'] + lp['mb2']);    h = bn(h, lp['g2'], lp['be2'])
        h = swish(h @ lp['mw3'] + lp['mb3']);    h = bn(h, lp['g3'], lp['be3'])
        msg = swish(h @ lp['mw4'] + lp['mb4'])                       # [B, E, M]
        N = x2.shape[1]
        agg = jnp.zeros((x2.shape[0], N, msg.shape[-1]),
                        jnp.float32).at[:, tgt, :].add(msg)
        deg = jnp.zeros((N,), jnp.float32).at[tgt].add(1.0)
        agg = agg / jnp.maximum(deg, 1.0)[None, :, None]
        u = jnp.concatenate([x1, x2, agg], axis=-1)
        u = swish(u @ lp['uw1'] + lp['ub1'])
        u = swish(u @ lp['uw2'] + lp['ub2'])
        u = swish(u @ lp['uw3'] + lp['ub3'])
        u = swish(u @ lp['uw4'] + lp['ub4'])
        x2 = x2 + u

    ph = params['head']
    h = swish(x2 @ ph['pw1'] + ph['pb1'])
    h = swish(h @ ph['pw2'] + ph['pb2'])
    h = swish(h @ ph['pw3'] + ph['pb3'])
    h = h @ ph['pw4'] + ph['pb4']
    c = swish(h @ ph['qw1'] + ph['qb1'])
    c = c @ ph['qw2'] + ph['qb2']                                    # [B, N, 1]
    return jnp.sum(x1 * c, axis=1)                                   # [B, O]


# ----------------------------------------------------------------------------
if __name__ == "__main__":
    cfg = dict(
        omega_steps=8,
        vec_emb_hidden_dim=16,
        out_dim=8,
        node_feature_dim=8,
        message_in_dim=16,              # = 2 * node_feature (cat of x_i | x_j)
        message_hidden_dim=32,
        message_out_dim=16,
        update_in_dim=8 + 8 + 16,       # omega + node_feature + message_out
        update_hidden_dim=32,
        update_out_dim=8,               # must equal node_feature (residual add)
        nr_coefficients=4,
        hidden_layer=2,
        pre_pool_hidden_dim=32,
        pre_pool_out_dim=16,
        post_pool_hidden_dim=16,
        n_nodes=8,
    )
    B, N = 2, cfg['n_nodes']
    F, O = cfg['node_feature_dim'], cfg['omega_steps']
    assert cfg['update_out_dim'] == F

    key = jax.random.PRNGKey(0)
    k_x, k_v, k_p = jax.random.split(key, 3)

    # fully-connected graph incl. self loops: n_edges = n_nodes**2 (required by
    # BatchNorm1d(n_nodes * n_nodes) inside the message net).
    src = jnp.tile(jnp.arange(N, dtype=jnp.int32), N)
    tgt = jnp.repeat(jnp.arange(N, dtype=jnp.int32), N)
    edge_index = jnp.stack([src, tgt])                       # [2, E]

    data = {
        'edge_index': jnp.broadcast_to(edge_index, (B, 2, N * N)),
        'node_feature': jax.random.normal(k_x, (B, N, F), jnp.float32),
        'vectors': jax.random.normal(k_v, (B, N, O), jnp.float32),
    }

    params = init_params(k_p, cfg)

    # one-time precompute / packing (hoisted out of the forward path)
    graph_ops = build_graph_operators(np.asarray(edge_index), B, N)
    const_slab, c_off = pack_constants(params, graph_ops, B, N)
    layer_slab, l_off, layer_rows = pack_layers(params, B, N)

    out = gnn2_forward(data, const_slab, c_off, layer_slab, l_off, layer_rows, cfg)
    out = np.asarray(jax.block_until_ready(out))

    ref = np.asarray(reference_forward(data, params))
    # bf16 MXU inputs + approx-EUP sigmoid -> compare with a normalized bound.
    rel_err = float(np.max(np.abs(out - ref)) / max(float(np.max(np.abs(ref))), 1e-3))
    assert rel_err < 0.1, f"normalized max error too large: {rel_err:.4f}"
    print("KERNEL_OK")
</pallas_src>

<mosaic_0001>
module attributes {stable_mosaic.version = 11 : i64} {
  func.func @fused_gnn2_kernel(%arg0: memref<16x16xf32, #tpu.memory_space<vmem>>, %arg1: memref<512x256xf32, #tpu.memory_space<vmem>>, %arg2: memref<960x128xf32, #tpu.memory_space<vmem>>, %arg3: memref<8x2xf32, #tpu.memory_space<vmem>>) attributes {dimension_semantics = [], scalar_prefetch = 0 : i64, scratch_operands = 0 : i64, tpu.core_type = #tpu.core_type<tc>} {
    %c0 = arith.constant 0 : index
    %c0_0 = arith.constant 0 : index
    %0 = vector.load %arg0[%c0, %c0_0] : memref<16x16xf32, #tpu.memory_space<vmem>>, vector<8x16xf32>
    %c8 = arith.constant 8 : index
    %c0_1 = arith.constant 0 : index
    %1 = vector.load %arg0[%c8, %c0_1] : memref<16x16xf32, #tpu.memory_space<vmem>>, vector<8x16xf32>
    %c160 = arith.constant 160 : index
    %c0_2 = arith.constant 0 : index
    %2 = vector.load %arg1[%c160, %c0_2] : memref<512x256xf32, #tpu.memory_space<vmem>>, vector<16x8xf32>
    %3 = arith.truncf %2 : vector<16x8xf32> to vector<16x8xbf16>
    %4 = arith.truncf %1 : vector<8x16xf32> to vector<8x16xbf16>
    %cst = arith.constant dense<0.000000e+00> : vector<16x16xf32>
    %5 = tpu.matmul %3, %4, %cst {dimension_numbers = #tpu.dot_dimension_numbers<[1], [0], [0], [1], [0, 0, 1, 1], [], []>} : vector<16x8xbf16>, vector<8x16xbf16>, vector<16x16xf32> -> vector<16x16xf32>
    %c176 = arith.constant 176 : index
    %c0_3 = arith.constant 0 : index
    %6 = vector.load %arg1[%c176, %c0_3] : memref<512x256xf32, #tpu.memory_space<vmem>>, vector<16x16xf32>
    %7 = arith.addf %5, %6 : vector<16x16xf32>
    %cst_4 = arith.constant 0.000000e+00 : f32
    %8 = vector.broadcast %cst_4 : f32 to vector<16x16xf32>
    %9 = arith.subf %8, %7 : vector<16x16xf32>
    %10 = math.exp %9 : vector<16x16xf32>
    %cst_5 = arith.constant 1.000000e+00 : f32
    %11 = vector.broadcast %cst_5 : f32 to vector<16x16xf32>
    %12 = arith.addf %11, %10 : vector<16x16xf32>
    %13 = tpu.reciprocal %12 {approx = true} : vector<16x16xf32> -> vector<16x16xf32>
    %14 = arith.mulf %7, %13 : vector<16x16xf32>
    %c192 = arith.constant 192 : index
    %c0_6 = arith.constant 0 : index
    %15 = vector.load %arg1[%c192, %c0_6] : memref<512x256xf32, #tpu.memory_space<vmem>>, vector<16x16xf32>
    %16 = arith.truncf %15 : vector<16x16xf32> to vector<16x16xbf16>
    %17 = arith.truncf %14 : vector<16x16xf32> to vector<16x16xbf16>
    %cst_7 = arith.constant dense<0.000000e+00> : vector<16x16xf32>
    %18 = tpu.matmul %16, %17, %cst_7 {dimension_numbers = #tpu.dot_dimension_numbers<[1], [0], [0], [1], [0, 0, 1, 1], [], []>} : vector<16x16xbf16>, vector<16x16xbf16>, vector<16x16xf32> -> vector<16x16xf32>
    %c208 = arith.constant 208 : index
    %c0_8 = arith.constant 0 : index
    %19 = vector.load %arg1[%c208, %c0_8] : memref<512x256xf32, #tpu.memory_space<vmem>>, vector<16x16xf32>
    %20 = arith.addf %18, %19 : vector<16x16xf32>
    %cst_9 = arith.constant 0.000000e+00 : f32
    %21 = vector.broadcast %cst_9 : f32 to vector<16x16xf32>
    %22 = arith.subf %21, %20 : vector<16x16xf32>
    %23 = math.exp %22 : vector<16x16xf32>
    %cst_10 = arith.constant 1.000000e+00 : f32
    %24 = vector.broadcast %cst_10 : f32 to vector<16x16xf32>
    %25 = arith.addf %24, %23 : vector<16x16xf32>
    %26 = tpu.reciprocal %25 {approx = true} : vector<16x16xf32> -> vector<16x16xf32>
    %27 = arith.mulf %20, %26 : vector<16x16xf32>
    %c224 = arith.constant 224 : index
    %c0_11 = arith.constant 0 : index
    %28 = vector.load %arg1[%c224, %c0_11] : memref<512x256xf32, #tpu.memory_space<vmem>>, vector<8x16xf32>
    %29 = arith.truncf %28 : vector<8x16xf32> to vector<8x16xbf16>
    %30 = arith.truncf %27 : vector<16x16xf32> to vector<16x16xbf16>
    %cst_12 = arith.constant dense<0.000000e+00> : vector<8x16xf32>
    %31 = tpu.matmul %29, %30, %cst_12 {dimension_numbers = #tpu.dot_dimension_numbers<[1], [0], [0], [1], [0, 0, 1, 1], [], []>} : vector<8x16xbf16>, vector<16x16xbf16>, vector<8x16xf32> -> vector<8x16xf32>
    %c232 = arith.constant 232 : index
    %c0_13 = arith.constant 0 : index
    %32 = vector.load %arg1[%c232, %c0_13] : memref<512x256xf32, #tpu.memory_space<vmem>>, vector<8x16xf32>
    %33 = arith.addf %31, %32 : vector<8x16xf32>
    %c0_14 = arith.constant 0 : index
    %c0_15 = arith.constant 0 : index
    %34 = vector.load %arg1[%c0_14, %c0_15] : memref<512x256xf32, #tpu.memory_space<vmem>>, vector<16x256xf32>
    %35 = arith.truncf %0 : vector<8x16xf32> to vector<8x16xbf16>
    %36 = arith.truncf %34 : vector<16x256xf32> to vector<16x256xbf16>
    %cst_16 = arith.constant dense<0.000000e+00> : vector<8x256xf32>
    %37 = tpu.matmul %35, %36, %cst_16 {dimension_numbers = #tpu.dot_dimension_numbers<[1], [0], [0], [1], [0, 0, 1, 1], [], []>} : vector<8x16xbf16>, vector<16x256xbf16>, vector<8x256xf32> -> vector<8x256xf32>
    %38 = vector.extract_strided_slice %37 {offsets = [0, 0], sizes = [8, 128], strides = [1, 1]} : vector<8x256xf32> to vector<8x128xf32>
    %39 = vector.extract_strided_slice %37 {offsets = [0, 128], sizes = [8, 128], strides = [1, 1]} : vector<8x256xf32> to vector<8x128xf32>
    %40 = tpu.concatenate %38, %39 in 0 : vector<8x128xf32>, vector<8x128xf32> -> vector<16x128xf32>
    %c0_17 = arith.constant 0 : index
    %c0_18 = arith.constant 0 : index
    %41 = vector.load %arg2[%c0_17, %c0_18] : memref<960x128xf32, #tpu.memory_space<vmem>>, vector<32x16xf32>
    %42 = arith.truncf %41 : vector<32x16xf32> to vector<32x16xbf16>
    %43 = arith.truncf %40 : vector<16x128xf32> to vector<16x128xbf16>
    %cst_19 = arith.constant dense<0.000000e+00> : vector<32x128xf32>
    %44 = tpu.matmul %42, %43, %cst_19 {dimension_numbers = #tpu.dot_dimension_numbers<[1], [0], [0], [1], [0, 0, 1, 1], [], []>} : vector<32x16xbf16>, vector<16x128xbf16>, vector<32x128xf32> -> vector<32x128xf32>
    %c32 = arith.constant 32 : index
    %c0_20 = arith.constant 0 : index
    %45 = vector.load %arg2[%c32, %c0_20] : memref<960x128xf32, #tpu.memory_space<vmem>>, vector<32x128xf32>
    %46 = arith.addf %44, %45 : vector<32x128xf32>
    %cst_21 = arith.constant 0.000000e+00 : f32
    %47 = vector.broadcast %cst_21 : f32 to vector<32x128xf32>
    %48 = arith.subf %47, %46 : vector<32x128xf32>
    %49 = math.exp %48 : vector<32x128xf32>
    %cst_22 = arith.constant 1.000000e+00 : f32
    %50 = vector.broadcast %cst_22 : f32 to vector<32x128xf32>
    %51 = arith.addf %50, %49 : vector<32x128xf32>
    %52 = tpu.reciprocal %51 {approx = true} : vector<32x128xf32> -> vector<32x128xf32>
    %53 = arith.mulf %46, %52 : vector<32x128xf32>
    %c64 = arith.constant 64 : index
    %c0_23 = arith.constant 0 : index
    %54 = vector.load %arg2[%c64, %c0_23] : memref<960x128xf32, #tpu.memory_space<vmem>>, vector<1x128xf32>
    %c72 = arith.constant 72 : index
    %c0_24 = arith.constant 0 : index
    %55 = vector.load %arg2[%c72, %c0_24] : memref<960x128xf32, #tpu.memory_space<vmem>>, vector<1x128xf32>
    %cst_25 = arith.constant dense<0.000000e+00> : vector<128xf32>
    %56 = vector.multi_reduction <add>, %53, %cst_25 [0] : vector<32x128xf32> to vector<128xf32>
    %57 = vector.shape_cast %56 : vector<128xf32> to vector<1x128xf32>
    %58 = arith.mulf %53, %53 : vector<32x128xf32>
    %cst_26 = arith.constant dense<0.000000e+00> : vector<128xf32>
    %59 = vector.multi_reduction <add>, %58, %cst_26 [0] : vector<32x128xf32> to vector<128xf32>
    %60 = vector.shape_cast %59 : vector<128xf32> to vector<1x128xf32>
    %c64_i32 = arith.constant 64 : i32
    %61 = tpu.dynamic_rotate %57 by %c64_i32 dim 1 : vector<1x128xf32>, i32 -> vector<1x128xf32>
    %62 = arith.addf %57, %61 : vector<1x128xf32>
    %c64_i32_27 = arith.constant 64 : i32
    %63 = tpu.dynamic_rotate %60 by %c64_i32_27 dim 1 : vector<1x128xf32>, i32 -> vector<1x128xf32>
    %64 = arith.addf %60, %63 : vector<1x128xf32>
    %cst_28 = arith.constant 1.562500e-02 : f32
    %65 = vector.broadcast %cst_28 : f32 to vector<1x128xf32>
    %66 = arith.mulf %62, %65 : vector<1x128xf32>
    %cst_29 = arith.constant 1.562500e-02 : f32
    %67 = vector.broadcast %cst_29 : f32 to vector<1x128xf32>
    %68 = arith.mulf %64, %67 : vector<1x128xf32>
    %69 = arith.mulf %66, %66 : vector<1x128xf32>
    %70 = arith.subf %68, %69 : vector<1x128xf32>
    %cst_30 = arith.constant 0.000000e+00 : f32
    %71 = vector.broadcast %cst_30 : f32 to vector<1x128xf32>
    %72 = arith.maximumf %70, %71 : vector<1x128xf32>
    %cst_31 = arith.constant 9.99999974E-6 : f32
    %73 = vector.broadcast %cst_31 : f32 to vector<1x128xf32>
    %74 = arith.addf %72, %73 : vector<1x128xf32>
    %75 = math.rsqrt %74 : vector<1x128xf32>
    %76 = arith.mulf %75, %54 : vector<1x128xf32>
    %77 = arith.mulf %66, %76 : vector<1x128xf32>
    %78 = arith.subf %55, %77 : vector<1x128xf32>
    %79 = vector.broadcast %76 : vector<1x128xf32> to vector<32x128xf32>
    %80 = arith.mulf %53, %79 : vector<32x128xf32>
    %81 = vector.broadcast %78 : vector<1x128xf32> to vector<32x128xf32>
    %82 = arith.addf %80, %81 : vector<32x128xf32>
    %c80 = arith.constant 80 : index
    %c0_32 = arith.constant 0 : index
    %83 = vector.load %arg2[%c80, %c0_32] : memref<960x128xf32, #tpu.memory_space<vmem>>, vector<32x32xf32>
    %84 = arith.truncf %83 : vector<32x32xf32> to vector<32x32xbf16>
    %85 = arith.truncf %82 : vector<32x128xf32> to vector<32x128xbf16>
    %cst_33 = arith.constant dense<0.000000e+00> : vector<32x128xf32>
    %86 = tpu.matmul %84, %85, %cst_33 {dimension_numbers = #tpu.dot_dimension_numbers<[1], [0], [0], [1], [0, 0, 1, 1], [], []>} : vector<32x32xbf16>, vector<32x128xbf16>, vector<32x128xf32> -> vector<32x128xf32>
    %c112 = arith.constant 112 : index
    %c0_34 = arith.constant 0 : index
    %87 = vector.load %arg2[%c112, %c0_34] : memref<960x128xf32, #tpu.memory_space<vmem>>, vector<32x128xf32>
    %88 = arith.addf %86, %87 : vector<32x128xf32>
    %cst_35 = arith.constant 0.000000e+00 : f32
    %89 = vector.broadcast %cst_35 : f32 to vector<32x128xf32>
    %90 = arith.subf %89, %88 : vector<32x128xf32>
    %91 = math.exp %90 : vector<32x128xf32>
    %cst_36 = arith.constant 1.000000e+00 : f32
    %92 = vector.broadcast %cst_36 : f32 to vector<32x128xf32>
    %93 = arith.addf %92, %91 : vector<32x128xf32>
    %94 = tpu.reciprocal %93 {approx = true} : vector<32x128xf32> -> vector<32x128xf32>
    %95 = arith.mulf %88, %94 : vector<32x128xf32>
    %c144 = arith.constant 144 : index
    %c0_37 = arith.constant 0 : index
    %96 = vector.load %arg2[%c144, %c0_37] : memref<960x128xf32, #tpu.memory_space<vmem>>, vector<1x128xf32>
    %c152 = arith.constant 152 : index
    %c0_38 = arith.constant 0 : index
    %97 = vector.load %arg2[%c152, %c0_38] : memref<960x128xf32, #tpu.memory_space<vmem>>, vector<1x128xf32>
    %cst_39 = arith.constant dense<0.000000e+00> : vector<128xf32>
    %98 = vector.multi_reduction <add>, %95, %cst_39 [0] : vector<32x128xf32> to vector<128xf32>
    %99 = vector.shape_cast %98 : vector<128xf32> to vector<1x128xf32>
    %100 = arith.mulf %95, %95 : vector<32x128xf32>
    %cst_40 = arith.constant dense<0.000000e+00> : vector<128xf32>
    %101 = vector.multi_reduction <add>, %100, %cst_40 [0] : vector<32x128xf32> to vector<128xf32>
    %102 = vector.shape_cast %101 : vector<128xf32> to vector<1x128xf32>
    %c64_i32_41 = arith.constant 64 : i32
    %103 = tpu.dynamic_rotate %99 by %c64_i32_41 dim 1 : vector<1x128xf32>, i32 -> vector<1x128xf32>
    %104 = arith.addf %99, %103 : vector<1x128xf32>
    %c64_i32_42 = arith.constant 64 : i32
    %105 = tpu.dynamic_rotate %102 by %c64_i32_42 dim 1 : vector<1x128xf32>, i32 -> vector<1x128xf32>
    %106 = arith.addf %102, %105 : vector<1x128xf32>
    %cst_43 = arith.constant 1.562500e-02 : f32
    %107 = vector.broadcast %cst_43 : f32 to vector<1x128xf32>
    %108 = arith.mulf %104, %107 : vector<1x128xf32>
    %cst_44 = arith.constant 1.562500e-02 : f32
    %109 = vector.broadcast %cst_44 : f32 to vector<1x128xf32>
    %110 = arith.mulf %106, %109 : vector<1x128xf32>
    %111 = arith.mulf %108, %108 : vector<1x128xf32>
    %112 = arith.subf %110, %111 : vector<1x128xf32>
    %cst_45 = arith.constant 0.000000e+00 : f32
    %113 = vector.broadcast %cst_45 : f32 to vector<1x128xf32>
    %114 = arith.maximumf %112, %113 : vector<1x128xf32>
    %cst_46 = arith.constant 9.99999974E-6 : f32
    %115 = vector.broadcast %cst_46 : f32 to vector<1x128xf32>
    %116 = arith.addf %114, %115 : vector<1x128xf32>
    %117 = math.rsqrt %116 : vector<1x128xf32>
    %118 = arith.mulf %117, %96 : vector<1x128xf32>
    %119 = arith.mulf %108, %118 : vector<1x128xf32>
    %120 = arith.subf %97, %119 : vector<1x128xf32>
    %121 = vector.broadcast %118 : vector<1x128xf32> to vector<32x128xf32>
    %122 = arith.mulf %95, %121 : vector<32x128xf32>
    %123 = vector.broadcast %120 : vector<1x128xf32> to vector<32x128xf32>
    %124 = arith.addf %122, %123 : vector<32x128xf32>
    %c160_47 = arith.constant 160 : index
    %c0_48 = arith.constant 0 : index
    %125 = vector.load %arg2[%c160_47, %c0_48] : memref<960x128xf32, #tpu.memory_space<vmem>>, vector<32x32xf32>
    %126 = arith.truncf %125 : vector<32x32xf32> to vector<32x32xbf16>
    %127 = arith.truncf %124 : vector<32x128xf32> to vector<32x128xbf16>
    %cst_49 = arith.constant dense<0.000000e+00> : vector<32x128xf32>
    %128 = tpu.matmul %126, %127, %cst_49 {dimension_numbers = #tpu.dot_dimension_numbers<[1], [0], [0], [1], [0, 0, 1, 1], [], []>} : vector<32x32xbf16>, vector<32x128xbf16>, vector<32x128xf32> -> vector<32x128xf32>
    %c192_50 = arith.constant 192 : index
    %c0_51 = arith.constant 0 : index
    %129 = vector.load %arg2[%c192_50, %c0_51] : memref<960x128xf32, #tpu.memory_space<vmem>>, vector<32x128xf32>
    %130 = arith.addf %128, %129 : vector<32x128xf32>
    %cst_52 = arith.constant 0.000000e+00 : f32
    %131 = vector.broadcast %cst_52 : f32 to vector<32x128xf32>
    %132 = arith.subf %131, %130 : vector<32x128xf32>
    %133 = math.exp %132 : vector<32x128xf32>
    %cst_53 = arith.constant 1.000000e+00 : f32
    %134 = vector.broadcast %cst_53 : f32 to vector<32x128xf32>
    %135 = arith.addf %134, %133 : vector<32x128xf32>
    %136 = tpu.reciprocal %135 {approx = true} : vector<32x128xf32> -> vector<32x128xf32>
    %137 = arith.mulf %130, %136 : vector<32x128xf32>
    %c224_54 = arith.constant 224 : index
    %c0_55 = arith.constant 0 : index
    %138 = vector.load %arg2[%c224_54, %c0_55] : memref<960x128xf32, #tpu.memory_space<vmem>>, vector<1x128xf32>
    %c232_56 = arith.constant 232 : index
    %c0_57 = arith.constant 0 : index
    %139 = vector.load %arg2[%c232_56, %c0_57] : memref<960x128xf32, #tpu.memory_space<vmem>>, vector<1x128xf32>
    %cst_58 = arith.constant dense<0.000000e+00> : vector<128xf32>
    %140 = vector.multi_reduction <add>, %137, %cst_58 [0] : vector<32x128xf32> to vector<128xf32>
    %141 = vector.shape_cast %140 : vector<128xf32> to vector<1x128xf32>
    %142 = arith.mulf %137, %137 : vector<32x128xf32>
    %cst_59 = arith.constant dense<0.000000e+00> : vector<128xf32>
    %143 = vector.multi_reduction <add>, %142, %cst_59 [0] : vector<32x128xf32> to vector<128xf32>
    %144 = vector.shape_cast %143 : vector<128xf32> to vector<1x128xf32>
    %c64_i32_60 = arith.constant 64 : i32
    %145 = tpu.dynamic_rotate %141 by %c64_i32_60 dim 1 : vector<1x128xf32>, i32 -> vector<1x128xf32>
    %146 = arith.addf %141, %145 : vector<1x128xf32>
    %c64_i32_61 = arith.constant 64 : i32
    %147 = tpu.dynamic_rotate %144 by %c64_i32_61 dim 1 : vector<1x128xf32>, i32 -> vector<1x128xf32>
    %148 = arith.addf %144, %147 : vector<1x128xf32>
    %cst_62 = arith.constant 1.562500e-02 : f32
    %149 = vector.broadcast %cst_62 : f32 to vector<1x128xf32>
    %150 = arith.mulf %146, %149 : vector<1x128xf32>
    %cst_63 = arith.constant 1.562500e-02 : f32
    %151 = vector.broadcast %cst_63 : f32 to vector<1x128xf32>
    %152 = arith.mulf %148, %151 : vector<1x128xf32>
    %153 = arith.mulf %150, %150 : vector<1x128xf32>
    %154 = arith.subf %152, %153 : vector<1x128xf32>
    %cst_64 = arith.constant 0.000000e+00 : f32
    %155 = vector.broadcast %cst_64 : f32 to vector<1x128xf32>
    %156 = arith.maximumf %154, %155 : vector<1x128xf32>
    %cst_65 = arith.constant 9.99999974E-6 : f32
    %157 = vector.broadcast %cst_65 : f32 to vector<1x128xf32>
    %158 = arith.addf %156, %157 : vector<1x128xf32>
    %159 = math.rsqrt %158 : vector<1x128xf32>
    %160 = arith.mulf %159, %138 : vector<1x128xf32>
    %161 = arith.mulf %150, %160 : vector<1x128xf32>
    %162 = arith.subf %139, %161 : vector<1x128xf32>
    %163 = vector.broadcast %160 : vector<1x128xf32> to vector<32x128xf32>
    %164 = arith.mulf %137, %163 : vector<32x128xf32>
    %165 = vector.broadcast %162 : vector<1x128xf32> to vector<32x128xf32>
    %166 = arith.addf %164, %165 : vector<32x128xf32>
    %c240 = arith.constant 240 : index
    %c0_66 = arith.constant 0 : index
    %167 = vector.load %arg2[%c240, %c0_66] : memref<960x128xf32, #tpu.memory_space<vmem>>, vector<16x32xf32>
    %168 = arith.truncf %167 : vector<16x32xf32> to vector<16x32xbf16>
    %169 = arith.truncf %166 : vector<32x128xf32> to vector<32x128xbf16>
    %cst_67 = arith.constant dense<0.000000e+00> : vector<16x128xf32>
    %170 = tpu.matmul %168, %169, %cst_67 {dimension_numbers = #tpu.dot_dimension_numbers<[1], [0], [0], [1], [0, 0, 1, 1], [], []>} : vector<16x32xbf16>, vector<32x128xbf16>, vector<16x128xf32> -> vector<16x128xf32>
    %c256 = arith.constant 256 : index
    %c0_68 = arith.constant 0 : index
    %171 = vector.load %arg2[%c256, %c0_68] : memref<960x128xf32, #tpu.memory_space<vmem>>, vector<16x128xf32>
    %172 = arith.addf %170, %171 : vector<16x128xf32>
    %cst_69 = arith.constant 0.000000e+00 : f32
    %173 = vector.broadcast %cst_69 : f32 to vector<16x128xf32>
    %174 = arith.subf %173, %172 : vector<16x128xf32>
    %175 = math.exp %174 : vector<16x128xf32>
    %cst_70 = arith.constant 1.000000e+00 : f32
    %176 = vector.broadcast %cst_70 : f32 to vector<16x128xf32>
    %177 = arith.addf %176, %175 : vector<16x128xf32>
    %178 = tpu.reciprocal %177 {approx = true} : vector<16x128xf32> -> vector<16x128xf32>
    %179 = arith.mulf %172, %178 : vector<16x128xf32>
    %c16 = arith.constant 16 : index
    %c0_71 = arith.constant 0 : index
    %180 = vector.load %arg1[%c16, %c0_71] : memref<512x256xf32, #tpu.memory_space<vmem>>, vector<128x16xf32>
    %181 = arith.truncf %179 : vector<16x128xf32> to vector<16x128xbf16>
    %182 = arith.truncf %180 : vector<128x16xf32> to vector<128x16xbf16>
    %cst_72 = arith.constant dense<0.000000e+00> : vector<16x16xf32>
    %183 = tpu.matmul %181, %182, %cst_72 {dimension_numbers = #tpu.dot_dimension_numbers<[1], [0], [0], [1], [0, 0, 1, 1], [], []>} : vector<16x128xbf16>, vector<128x16xbf16>, vector<16x16xf32> -> vector<16x16xf32>
    %184 = tpu.concatenate %33, %0, %183 in 0 : vector<8x16xf32>, vector<8x16xf32>, vector<16x16xf32> -> vector<32x16xf32>
    %c272 = arith.constant 272 : index
    %c0_73 = arith.constant 0 : index
    %185 = vector.load %arg2[%c272, %c0_73] : memref<960x128xf32, #tpu.memory_space<vmem>>, vector<32x32xf32>
    %186 = arith.truncf %185 : vector<32x32xf32> to vector<32x32xbf16>
    %187 = arith.truncf %184 : vector<32x16xf32> to vector<32x16xbf16>
    %cst_74 = arith.constant dense<0.000000e+00> : vector<32x16xf32>
    %188 = tpu.matmul %186, %187, %cst_74 {dimension_numbers = #tpu.dot_dimension_numbers<[1], [0], [0], [1], [0, 0, 1, 1], [], []>} : vector<32x32xbf16>, vector<32x16xbf16>, vector<32x16xf32> -> vector<32x16xf32>
    %c304 = arith.constant 304 : index
    %c0_75 = arith.constant 0 : index
    %189 = vector.load %arg2[%c304, %c0_75] : memref<960x128xf32, #tpu.memory_space<vmem>>, vector<32x16xf32>
    %190 = arith.addf %188, %189 : vector<32x16xf32>
    %cst_76 = arith.constant 0.000000e+00 : f32
    %191 = vector.broadcast %cst_76 : f32 to vector<32x16xf32>
    %192 = arith.subf %191, %190 : vector<32x16xf32>
    %193 = math.exp %192 : vector<32x16xf32>
    %cst_77 = arith.constant 1.000000e+00 : f32
    %194 = vector.broadcast %cst_77 : f32 to vector<32x16xf32>
    %195 = arith.addf %194, %193 : vector<32x16xf32>
    %196 = tpu.reciprocal %195 {approx = true} : vector<32x16xf32> -> vector<32x16xf32>
    %197 = arith.mulf %190, %196 : vector<32x16xf32>
    %c336 = arith.constant 336 : index
    %c0_78 = arith.constant 0 : index
    %198 = vector.load %arg2[%c336, %c0_78] : memref<960x128xf32, #tpu.memory_space<vmem>>, vector<32x32xf32>
    %199 = arith.truncf %198 : vector<32x32xf32> to vector<32x32xbf16>
    %200 = arith.truncf %197 : vector<32x16xf32> to vector<32x16xbf16>
    %cst_79 = arith.constant dense<0.000000e+00> : vector<32x16xf32>
    %201 = tpu.matmul %199, %200, %cst_79 {dimension_numbers = #tpu.dot_dimension_numbers<[1], [0], [0], [1], [0, 0, 1, 1], [], []>} : vector<32x32xbf16>, vector<32x16xbf16>, vector<32x16xf32> -> vector<32x16xf32>
    %c368 = arith.constant 368 : index
    %c0_80 = arith.constant 0 : index
    %202 = vector.load %arg2[%c368, %c0_80] : memref<960x128xf32, #tpu.memory_space<vmem>>, vector<32x16xf32>
    %203 = arith.addf %201, %202 : vector<32x16xf32>
    %cst_81 = arith.constant 0.000000e+00 : f32
    %204 = vector.broadcast %cst_81 : f32 to vector<32x16xf32>
    %205 = arith.subf %204, %203 : vector<32x16xf32>
    %206 = math.exp %205 : vector<32x16xf32>
    %cst_82 = arith.constant 1.000000e+00 : f32
    %207 = vector.broadcast %cst_82 : f32 to vector<32x16xf32>
    %208 = arith.addf %207, %206 : vector<32x16xf32>
    %209 = tpu.reciprocal %208 {approx = true} : vector<32x16xf32> -> vector<32x16xf32>
    %210 = arith.mulf %203, %209 : vector<32x16xf32>
    %c400 = arith.constant 400 : index
    %c0_83 = arith.constant 0 : index
    %211 = vector.load %arg2[%c400, %c0_83] : memref<960x128xf32, #tpu.memory_space<vmem>>, vector<32x32xf32>
    %212 = arith.truncf %211 : vector<32x32xf32> to vector<32x32xbf16>
    %213 = arith.truncf %210 : vector<32x16xf32> to vector<32x16xbf16>
    %cst_84 = arith.constant dense<0.000000e+00> : vector<32x16xf32>
    %214 = tpu.matmul %212, %213, %cst_84 {dimension_numbers = #tpu.dot_dimension_numbers<[1], [0], [0], [1], [0, 0, 1, 1], [], []>} : vector<32x32xbf16>, vector<32x16xbf16>, vector<32x16xf32> -> vector<32x16xf32>
    %c432 = arith.constant 432 : index
    %c0_85 = arith.constant 0 : index
    %215 = vector.load %arg2[%c432, %c0_85] : memref<960x128xf32, #tpu.memory_space<vmem>>, vector<32x16xf32>
    %216 = arith.addf %214, %215 : vector<32x16xf32>
    %cst_86 = arith.constant 0.000000e+00 : f32
    %217 = vector.broadcast %cst_86 : f32 to vector<32x16xf32>
    %218 = arith.subf %217, %216 : vector<32x16xf32>
    %219 = math.exp %218 : vector<32x16xf32>
    %cst_87 = arith.constant 1.000000e+00 : f32
    %220 = vector.broadcast %cst_87 : f32 to vector<32x16xf32>
    %221 = arith.addf %220, %219 : vector<32x16xf32>
    %222 = tpu.reciprocal %221 {approx = true} : vector<32x16xf32> -> vector<32x16xf32>
    %223 = arith.mulf %216, %222 : vector<32x16xf32>
    %c464 = arith.constant 464 : index
    %c0_88 = arith.constant 0 : index
    %224 = vector.load %arg2[%c464, %c0_88] : memref<960x128xf32, #tpu.memory_space<vmem>>, vector<8x32xf32>
    %225 = arith.truncf %224 : vector<8x32xf32> to vector<8x32xbf16>
    %226 = arith.truncf %223 : vector<32x16xf32> to vector<32x16xbf16>
    %cst_89 = arith.constant dense<0.000000e+00> : vector<8x16xf32>
    %227 = tpu.matmul %225, %226, %cst_89 {dimension_numbers = #tpu.dot_dimension_numbers<[1], [0], [0], [1], [0, 0, 1, 1], [], []>} : vector<8x32xbf16>, vector<32x16xbf16>, vector<8x16xf32> -> vector<8x16xf32>
    %c472 = arith.constant 472 : index
    %c0_90 = arith.constant 0 : index
    %228 = vector.load %arg2[%c472, %c0_90] : memref<960x128xf32, #tpu.memory_space<vmem>>, vector<8x16xf32>
    %229 = arith.addf %227, %228 : vector<8x16xf32>
    %cst_91 = arith.constant 0.000000e+00 : f32
    %230 = vector.broadcast %cst_91 : f32 to vector<8x16xf32>
    %231 = arith.subf %230, %229 : vector<8x16xf32>
    %232 = math.exp %231 : vector<8x16xf32>
    %cst_92 = arith.constant 1.000000e+00 : f32
    %233 = vector.broadcast %cst_92 : f32 to vector<8x16xf32>
    %234 = arith.addf %233, %232 : vector<8x16xf32>
    %235 = tpu.reciprocal %234 {approx = true} : vector<8x16xf32> -> vector<8x16xf32>
    %236 = arith.mulf %229, %235 : vector<8x16xf32>
    %237 = arith.addf %0, %236 : vector<8x16xf32>
    %c0_93 = arith.constant 0 : index
    %c0_94 = arith.constant 0 : index
    %238 = vector.load %arg1[%c0_93, %c0_94] : memref<512x256xf32, #tpu.memory_space<vmem>>, vector<16x256xf32>
    %239 = arith.truncf %237 : vector<8x16xf32> to vector<8x16xbf16>
    %240 = arith.truncf %238 : vector<16x256xf32> to vector<16x256xbf16>
    %cst_95 = arith.constant dense<0.000000e+00> : vector<8x256xf32>
    %241 = tpu.matmul %239, %240, %cst_95 {dimension_numbers = #tpu.dot_dimension_numbers<[1], [0], [0], [1], [0, 0, 1, 1], [], []>} : vector<8x16xbf16>, vector<16x256xbf16>, vector<8x256xf32> -> vector<8x256xf32>
    %242 = vector.extract_strided_slice %241 {offsets = [0, 0], sizes = [8, 128], strides = [1, 1]} : vector<8x256xf32> to vector<8x128xf32>
    %243 = vector.extract_strided_slice %241 {offsets = [0, 128], sizes = [8, 128], strides = [1, 1]} : vector<8x256xf32> to vector<8x128xf32>
    %244 = tpu.concatenate %242, %243 in 0 : vector<8x128xf32>, vector<8x128xf32> -> vector<16x128xf32>
    %c480 = arith.constant 480 : index
    %c0_96 = arith.constant 0 : index
    %245 = vector.load %arg2[%c480, %c0_96] : memref<960x128xf32, #tpu.memory_space<vmem>>, vector<32x16xf32>
    %246 = arith.truncf %245 : vector<32x16xf32> to vector<32x16xbf16>
    %247 = arith.truncf %244 : vector<16x128xf32> to vector<16x128xbf16>
    %cst_97 = arith.constant dense<0.000000e+00> : vector<32x128xf32>
    %248 = tpu.matmul %246, %247, %cst_97 {dimension_numbers = #tpu.dot_dimension_numbers<[1], [0], [0], [1], [0, 0, 1, 1], [], []>} : vector<32x16xbf16>, vector<16x128xbf16>, vector<32x128xf32> -> vector<32x128xf32>
    %c512 = arith.constant 512 : index
    %c0_98 = arith.constant 0 : index
    %249 = vector.load %arg2[%c512, %c0_98] : memref<960x128xf32, #tpu.memory_space<vmem>>, vector<32x128xf32>
    %250 = arith.addf %248, %249 : vector<32x128xf32>
    %cst_99 = arith.constant 0.000000e+00 : f32
    %251 = vector.broadcast %cst_99 : f32 to vector<32x128xf32>
    %252 = arith.subf %251, %250 : vector<32x128xf32>
    %253 = math.exp %252 : vector<32x128xf32>
    %cst_100 = arith.constant 1.000000e+00 : f32
    %254 = vector.broadcast %cst_100 : f32 to vector<32x128xf32>
    %255 = arith.addf %254, %253 : vector<32x128xf32>
    %256 = tpu.reciprocal %255 {approx = true} : vector<32x128xf32> -> vector<32x128xf32>
    %257 = arith.mulf %250, %256 : vector<32x128xf32>
    %c544 = arith.constant 544 : index
    %c0_101 = arith.constant 0 : index
    %258 = vector.load %arg2[%c544, %c0_101] : memref<960x128xf32, #tpu.memory_space<vmem>>, vector<1x128xf32>
    %c552 = arith.constant 552 : index
    %c0_102 = arith.constant 0 : index
    %259 = vector.load %arg2[%c552, %c0_102] : memref<960x128xf32, #tpu.memory_space<vmem>>, vector<1x128xf32>
    %cst_103 = arith.constant dense<0.000000e+00> : vector<128xf32>
    %260 = vector.multi_reduction <add>, %257, %cst_103 [0] : vector<32x128xf32> to vector<128xf32>
    %261 = vector.shape_cast %260 : vector<128xf32> to vector<1x128xf32>
    %262 = arith.mulf %257, %257 : vector<32x128xf32>
    %cst_104 = arith.constant dense<0.000000e+00> : vector<128xf32>
    %263 = vector.multi_reduction <add>, %262, %cst_104 [0] : vector<32x128xf32> to vector<128xf32>
    %264 = vector.shape_cast %263 : vector<128xf32> to vector<1x128xf32>
    %c64_i32_105 = arith.constant 64 : i32
    %265 = tpu.dynamic_rotate %261 by %c64_i32_105 dim 1 : vector<1x128xf32>, i32 -> vector<1x128xf32>
    %266 = arith.addf %261, %265 : vector<1x128xf32>
    %c64_i32_106 = arith.constant 64 : i32
    %267 = tpu.dynamic_rotate %264 by %c64_i32_106 dim 1 : vector<1x128xf32>, i32 -> vector<1x128xf32>
    %268 = arith.addf %264, %267 : vector<1x128xf32>
    %cst_107 = arith.constant 1.562500e-02 : f32
    %269 = vector.broadcast %cst_107 : f32 to vector<1x128xf32>
    %270 = arith.mulf %266, %269 : vector<1x128xf32>
    %cst_108 = arith.constant 1.562500e-02 : f32
    %271 = vector.broadcast %cst_108 : f32 to vector<1x128xf32>
    %272 = arith.mulf %268, %271 : vector<1x128xf32>
    %273 = arith.mulf %270, %270 : vector<1x128xf32>
    %274 = arith.subf %272, %273 : vector<1x128xf32>
    %cst_109 = arith.constant 0.000000e+00 : f32
    %275 = vector.broadcast %cst_109 : f32 to vector<1x128xf32>
    %276 = arith.maximumf %274, %275 : vector<1x128xf32>
    %cst_110 = arith.constant 9.99999974E-6 : f32
    %277 = vector.broadcast %cst_110 : f32 to vector<1x128xf32>
    %278 = arith.addf %276, %277 : vector<1x128xf32>
    %279 = math.rsqrt %278 : vector<1x128xf32>
    %280 = arith.mulf %279, %258 : vector<1x128xf32>
    %281 = arith.mulf %270, %280 : vector<1x128xf32>
    %282 = arith.subf %259, %281 : vector<1x128xf32>
    %283 = vector.broadcast %280 : vector<1x128xf32> to vector<32x128xf32>
    %284 = arith.mulf %257, %283 : vector<32x128xf32>
    %285 = vector.broadcast %282 : vector<1x128xf32> to vector<32x128xf32>
    %286 = arith.addf %284, %285 : vector<32x128xf32>
    %c560 = arith.constant 560 : index
    %c0_111 = arith.constant 0 : index
    %287 = vector.load %arg2[%c560, %c0_111] : memref<960x128xf32, #tpu.memory_space<vmem>>, vector<32x32xf32>
    %288 = arith.truncf %287 : vector<32x32xf32> to vector<32x32xbf16>
    %289 = arith.truncf %286 : vector<32x128xf32> to vector<32x128xbf16>
    %cst_112 = arith.constant dense<0.000000e+00> : vector<32x128xf32>
    %290 = tpu.matmul %288, %289, %cst_112 {dimension_numbers = #tpu.dot_dimension_numbers<[1], [0], [0], [1], [0, 0, 1, 1], [], []>} : vector<32x32xbf16>, vector<32x128xbf16>, vector<32x128xf32> -> vector<32x128xf32>
    %c592 = arith.constant 592 : index
    %c0_113 = arith.constant 0 : index
    %291 = vector.load %arg2[%c592, %c0_113] : memref<960x128xf32, #tpu.memory_space<vmem>>, vector<32x128xf32>
    %292 = arith.addf %290, %291 : vector<32x128xf32>
    %cst_114 = arith.constant 0.000000e+00 : f32
    %293 = vector.broadcast %cst_114 : f32 to vector<32x128xf32>
    %294 = arith.subf %293, %292 : vector<32x128xf32>
    %295 = math.exp %294 : vector<32x128xf32>
    %cst_115 = arith.constant 1.000000e+00 : f32
    %296 = vector.broadcast %cst_115 : f32 to vector<32x128xf32>
    %297 = arith.addf %296, %295 : vector<32x128xf32>
    %298 = tpu.reciprocal %297 {approx = true} : vector<32x128xf32> -> vector<32x128xf32>
    %299 = arith.mulf %292, %298 : vector<32x128xf32>
    %c624 = arith.constant 624 : index
    %c0_116 = arith.constant 0 : index
    %300 = vector.load %arg2[%c624, %c0_116] : memref<960x128xf32, #tpu.memory_space<vmem>>, vector<1x128xf32>
    %c632 = arith.constant 632 : index
    %c0_117 = arith.constant 0 : index
    %301 = vector.load %arg2[%c632, %c0_117] : memref<960x128xf32, #tpu.memory_space<vmem>>, vector<1x128xf32>
    %cst_118 = arith.constant dense<0.000000e+00> : vector<128xf32>
    %302 = vector.multi_reduction <add>, %299, %cst_118 [0] : vector<32x128xf32> to vector<128xf32>
    %303 = vector.shape_cast %302 : vector<128xf32> to vector<1x128xf32>
    %304 = arith.mulf %299, %299 : vector<32x128xf32>
    %cst_119 = arith.constant dense<0.000000e+00> : vector<128xf32>
    %305 = vector.multi_reduction <add>, %304, %cst_119 [0] : vector<32x128xf32> to vector<128xf32>
    %306 = vector.shape_cast %305 : vector<128xf32> to vector<1x128xf32>
    %c64_i32_120 = arith.constant 64 : i32
    %307 = tpu.dynamic_rotate %303 by %c64_i32_120 dim 1 : vector<1x128xf32>, i32 -> vector<1x128xf32>
    %308 = arith.addf %303, %307 : vector<1x128xf32>
    %c64_i32_121 = arith.constant 64 : i32
    %309 = tpu.dynamic_rotate %306 by %c64_i32_121 dim 1 : vector<1x128xf32>, i32 -> vector<1x128xf32>
    %310 = arith.addf %306, %309 : vector<1x128xf32>
    %cst_122 = arith.constant 1.562500e-02 : f32
    %311 = vector.broadcast %cst_122 : f32 to vector<1x128xf32>
    %312 = arith.mulf %308, %311 : vector<1x128xf32>
    %cst_123 = arith.constant 1.562500e-02 : f32
    %313 = vector.broadcast %cst_123 : f32 to vector<1x128xf32>
    %314 = arith.mulf %310, %313 : vector<1x128xf32>
    %315 = arith.mulf %312, %312 : vector<1x128xf32>
    %316 = arith.subf %314, %315 : vector<1x128xf32>
    %cst_124 = arith.constant 0.000000e+00 : f32
    %317 = vector.broadcast %cst_124 : f32 to vector<1x128xf32>
    %318 = arith.maximumf %316, %317 : vector<1x128xf32>
    %cst_125 = arith.constant 9.99999974E-6 : f32
    %319 = vector.broadcast %cst_125 : f32 to vector<1x128xf32>
    %320 = arith.addf %318, %319 : vector<1x128xf32>
    %321 = math.rsqrt %320 : vector<1x128xf32>
    %322 = arith.mulf %321, %300 : vector<1x128xf32>
    %323 = arith.mulf %312, %322 : vector<1x128xf32>
    %324 = arith.subf %301, %323 : vector<1x128xf32>
    %325 = vector.broadcast %322 : vector<1x128xf32> to vector<32x128xf32>
    %326 = arith.mulf %299, %325 : vector<32x128xf32>
    %327 = vector.broadcast %324 : vector<1x128xf32> to vector<32x128xf32>
    %328 = arith.addf %326, %327 : vector<32x128xf32>
    %c640 = arith.constant 640 : index
    %c0_126 = arith.constant 0 : index
    %329 = vector.load %arg2[%c640, %c0_126] : memref<960x128xf32, #tpu.memory_space<vmem>>, vector<32x32xf32>
    %330 = arith.truncf %329 : vector<32x32xf32> to vector<32x32xbf16>
    %331 = arith.truncf %328 : vector<32x128xf32> to vector<32x128xbf16>
    %cst_127 = arith.constant dense<0.000000e+00> : vector<32x128xf32>
    %332 = tpu.matmul %330, %331, %cst_127 {dimension_numbers = #tpu.dot_dimension_numbers<[1], [0], [0], [1], [0, 0, 1, 1], [], []>} : vector<32x32xbf16>, vector<32x128xbf16>, vector<32x128xf32> -> vector<32x128xf32>
    %c672 = arith.constant 672 : index
    %c0_128 = arith.constant 0 : index
    %333 = vector.load %arg2[%c672, %c0_128] : memref<960x128xf32, #tpu.memory_space<vmem>>, vector<32x128xf32>
    %334 = arith.addf %332, %333 : vector<32x128xf32>
    %cst_129 = arith.constant 0.000000e+00 : f32
    %335 = vector.broadcast %cst_129 : f32 to vector<32x128xf32>
    %336 = arith.subf %335, %334 : vector<32x128xf32>
    %337 = math.exp %336 : vector<32x128xf32>
    %cst_130 = arith.constant 1.000000e+00 : f32
    %338 = vector.broadcast %cst_130 : f32 to vector<32x128xf32>
    %339 = arith.addf %338, %337 : vector<32x128xf32>
    %340 = tpu.reciprocal %339 {approx = true} : vector<32x128xf32> -> vector<32x128xf32>
    %341 = arith.mulf %334, %340 : vector<32x128xf32>
    %c704 = arith.constant 704 : index
    %c0_131 = arith.constant 0 : index
    %342 = vector.load %arg2[%c704, %c0_131] : memref<960x128xf32, #tpu.memory_space<vmem>>, vector<1x128xf32>
    %c712 = arith.constant 712 : index
    %c0_132 = arith.constant 0 : index
    %343 = vector.load %arg2[%c712, %c0_132] : memref<960x128xf32, #tpu.memory_space<vmem>>, vector<1x128xf32>
    %cst_133 = arith.constant dense<0.000000e+00> : vector<128xf32>
    %344 = vector.multi_reduction <add>, %341, %cst_133 [0] : vector<32x128xf32> to vector<128xf32>
    %345 = vector.shape_cast %344 : vector<128xf32> to vector<1x128xf32>
    %346 = arith.mulf %341, %341 : vector<32x128xf32>
    %cst_134 = arith.constant dense<0.000000e+00> : vector<128xf32>
    %347 = vector.multi_reduction <add>, %346, %cst_134 [0] : vector<32x128xf32> to vector<128xf32>
    %348 = vector.shape_cast %347 : vector<128xf32> to vector<1x128xf32>
    %c64_i32_135 = arith.constant 64 : i32
    %349 = tpu.dynamic_rotate %345 by %c64_i32_135 dim 1 : vector<1x128xf32>, i32 -> vector<1x128xf32>
    %350 = arith.addf %345, %349 : vector<1x128xf32>
    %c64_i32_136 = arith.constant 64 : i32
    %351 = tpu.dynamic_rotate %348 by %c64_i32_136 dim 1 : vector<1x128xf32>, i32 -> vector<1x128xf32>
    %352 = arith.addf %348, %351 : vector<1x128xf32>
    %cst_137 = arith.constant 1.562500e-02 : f32
    %353 = vector.broadcast %cst_137 : f32 to vector<1x128xf32>
    %354 = arith.mulf %350, %353 : vector<1x128xf32>
    %cst_138 = arith.constant 1.562500e-02 : f32
    %355 = vector.broadcast %cst_138 : f32 to vector<1x128xf32>
    %356 = arith.mulf %352, %355 : vector<1x128xf32>
    %357 = arith.mulf %354, %354 : vector<1x128xf32>
    %358 = arith.subf %356, %357 : vector<1x128xf32>
    %cst_139 = arith.constant 0.000000e+00 : f32
    %359 = vector.broadcast %cst_139 : f32 to vector<1x128xf32>
    %360 = arith.maximumf %358, %359 : vector<1x128xf32>
    %cst_140 = arith.constant 9.99999974E-6 : f32
    %361 = vector.broadcast %cst_140 : f32 to vector<1x128xf32>
    %362 = arith.addf %360, %361 : vector<1x128xf32>
    %363 = math.rsqrt %362 : vector<1x128xf32>
    %364 = arith.mulf %363, %342 : vector<1x128xf32>
    %365 = arith.mulf %354, %364 : vector<1x128xf32>
    %366 = arith.subf %343, %365 : vector<1x128xf32>
    %367 = vector.broadcast %364 : vector<1x128xf32> to vector<32x128xf32>
    %368 = arith.mulf %341, %367 : vector<32x128xf32>
    %369 = vector.broadcast %366 : vector<1x128xf32> to vector<32x128xf32>
    %370 = arith.addf %368, %369 : vector<32x128xf32>
    %c720 = arith.constant 720 : index
    %c0_141 = arith.constant 0 : index
    %371 = vector.load %arg2[%c720, %c0_141] : memref<960x128xf32, #tpu.memory_space<vmem>>, vector<16x32xf32>
    %372 = arith.truncf %371 : vector<16x32xf32> to vector<16x32xbf16>
    %373 = arith.truncf %370 : vector<32x128xf32> to vector<32x128xbf16>
    %cst_142 = arith.constant dense<0.000000e+00> : vector<16x128xf32>
    %374 = tpu.matmul %372, %373, %cst_142 {dimension_numbers = #tpu.dot_dimension_numbers<[1], [0], [0], [1], [0, 0, 1, 1], [], []>} : vector<16x32xbf16>, vector<32x128xbf16>, vector<16x128xf32> -> vector<16x128xf32>
    %c736 = arith.constant 736 : index
    %c0_143 = arith.constant 0 : index
    %375 = vector.load %arg2[%c736, %c0_143] : memref<960x128xf32, #tpu.memory_space<vmem>>, vector<16x128xf32>
    %376 = arith.addf %374, %375 : vector<16x128xf32>
    %cst_144 = arith.constant 0.000000e+00 : f32
    %377 = vector.broadcast %cst_144 : f32 to vector<16x128xf32>
    %378 = arith.subf %377, %376 : vector<16x128xf32>
    %379 = math.exp %378 : vector<16x128xf32>
    %cst_145 = arith.constant 1.000000e+00 : f32
    %380 = vector.broadcast %cst_145 : f32 to vector<16x128xf32>
    %381 = arith.addf %380, %379 : vector<16x128xf32>
    %382 = tpu.reciprocal %381 {approx = true} : vector<16x128xf32> -> vector<16x128xf32>
    %383 = arith.mulf %376, %382 : vector<16x128xf32>
    %c16_146 = arith.constant 16 : index
    %c0_147 = arith.constant 0 : index
    %384 = vector.load %arg1[%c16_146, %c0_147] : memref<512x256xf32, #tpu.memory_space<vmem>>, vector<128x16xf32>
    %385 = arith.truncf %383 : vector<16x128xf32> to vector<16x128xbf16>
    %386 = arith.truncf %384 : vector<128x16xf32> to vector<128x16xbf16>
    %cst_148 = arith.constant dense<0.000000e+00> : vector<16x16xf32>
    %387 = tpu.matmul %385, %386, %cst_148 {dimension_numbers = #tpu.dot_dimension_numbers<[1], [0], [0], [1], [0, 0, 1, 1], [], []>} : vector<16x128xbf16>, vector<128x16xbf16>, vector<16x16xf32> -> vector<16x16xf32>
    %388 = tpu.concatenate %33, %237, %387 in 0 : vector<8x16xf32>, vector<8x16xf32>, vector<16x16xf32> -> vector<32x16xf32>
    %c752 = arith.constant 752 : index
    %c0_149 = arith.constant 0 : index
    %389 = vector.load %arg2[%c752, %c0_149] : memref<960x128xf32, #tpu.memory_space<vmem>>, vector<32x32xf32>
    %390 = arith.truncf %389 : vector<32x32xf32> to vector<32x32xbf16>
    %391 = arith.truncf %388 : vector<32x16xf32> to vector<32x16xbf16>
    %cst_150 = arith.constant dense<0.000000e+00> : vector<32x16xf32>
    %392 = tpu.matmul %390, %391, %cst_150 {dimension_numbers = #tpu.dot_dimension_numbers<[1], [0], [0], [1], [0, 0, 1, 1], [], []>} : vector<32x32xbf16>, vector<32x16xbf16>, vector<32x16xf32> -> vector<32x16xf32>
    %c784 = arith.constant 784 : index
    %c0_151 = arith.constant 0 : index
    %393 = vector.load %arg2[%c784, %c0_151] : memref<960x128xf32, #tpu.memory_space<vmem>>, vector<32x16xf32>
    %394 = arith.addf %392, %393 : vector<32x16xf32>
    %cst_152 = arith.constant 0.000000e+00 : f32
    %395 = vector.broadcast %cst_152 : f32 to vector<32x16xf32>
    %396 = arith.subf %395, %394 : vector<32x16xf32>
    %397 = math.exp %396 : vector<32x16xf32>
    %cst_153 = arith.constant 1.000000e+00 : f32
    %398 = vector.broadcast %cst_153 : f32 to vector<32x16xf32>
    %399 = arith.addf %398, %397 : vector<32x16xf32>
    %400 = tpu.reciprocal %399 {approx = true} : vector<32x16xf32> -> vector<32x16xf32>
    %401 = arith.mulf %394, %400 : vector<32x16xf32>
    %c816 = arith.constant 816 : index
    %c0_154 = arith.constant 0 : index
    %402 = vector.load %arg2[%c816, %c0_154] : memref<960x128xf32, #tpu.memory_space<vmem>>, vector<32x32xf32>
    %403 = arith.truncf %402 : vector<32x32xf32> to vector<32x32xbf16>
    %404 = arith.truncf %401 : vector<32x16xf32> to vector<32x16xbf16>
    %cst_155 = arith.constant dense<0.000000e+00> : vector<32x16xf32>
    %405 = tpu.matmul %403, %404, %cst_155 {dimension_numbers = #tpu.dot_dimension_numbers<[1], [0], [0], [1], [0, 0, 1, 1], [], []>} : vector<32x32xbf16>, vector<32x16xbf16>, vector<32x16xf32> -> vector<32x16xf32>
    %c848 = arith.constant 848 : index
    %c0_156 = arith.constant 0 : index
    %406 = vector.load %arg2[%c848, %c0_156] : memref<960x128xf32, #tpu.memory_space<vmem>>, vector<32x16xf32>
    %407 = arith.addf %405, %406 : vector<32x16xf32>
    %cst_157 = arith.constant 0.000000e+00 : f32
    %408 = vector.broadcast %cst_157 : f32 to vector<32x16xf32>
    %409 = arith.subf %408, %407 : vector<32x16xf32>
    %410 = math.exp %409 : vector<32x16xf32>
    %cst_158 = arith.constant 1.000000e+00 : f32
    %411 = vector.broadcast %cst_158 : f32 to vector<32x16xf32>
    %412 = arith.addf %411, %410 : vector<32x16xf32>
    %413 = tpu.reciprocal %412 {approx = true} : vector<32x16xf32> -> vector<32x16xf32>
    %414 = arith.mulf %407, %413 : vector<32x16xf32>
    %c880 = arith.constant 880 : index
    %c0_159 = arith.constant 0 : index
    %415 = vector.load %arg2[%c880, %c0_159] : memref<960x128xf32, #tpu.memory_space<vmem>>, vector<32x32xf32>
    %416 = arith.truncf %415 : vector<32x32xf32> to vector<32x32xbf16>
    %417 = arith.truncf %414 : vector<32x16xf32> to vector<32x16xbf16>
    %cst_160 = arith.constant dense<0.000000e+00> : vector<32x16xf32>
    %418 = tpu.matmul %416, %417, %cst_160 {dimension_numbers = #tpu.dot_dimension_numbers<[1], [0], [0], [1], [0, 0, 1, 1], [], []>} : vector<32x32xbf16>, vector<32x16xbf16>, vector<32x16xf32> -> vector<32x16xf32>
    %c912 = arith.constant 912 : index
    %c0_161 = arith.constant 0 : index
    %419 = vector.load %arg2[%c912, %c0_161] : memref<960x128xf32, #tpu.memory_space<vmem>>, vector<32x16xf32>
    %420 = arith.addf %418, %419 : vector<32x16xf32>
    %cst_162 = arith.constant 0.000000e+00 : f32
    %421 = vector.broadcast %cst_162 : f32 to vector<32x16xf32>
    %422 = arith.subf %421, %420 : vector<32x16xf32>
    %423 = math.exp %422 : vector<32x16xf32>
    %cst_163 = arith.constant 1.000000e+00 : f32
    %424 = vector.broadcast %cst_163 : f32 to vector<32x16xf32>
    %425 = arith.addf %424, %423 : vector<32x16xf32>
    %426 = tpu.reciprocal %425 {approx = true} : vector<32x16xf32> -> vector<32x16xf32>
    %427 = arith.mulf %420, %426 : vector<32x16xf32>
    %c944 = arith.constant 944 : index
    %c0_164 = arith.constant 0 : index
    %428 = vector.load %arg2[%c944, %c0_164] : memref<960x128xf32, #tpu.memory_space<vmem>>, vector<8x32xf32>
    %429 = arith.truncf %428 : vector<8x32xf32> to vector<8x32xbf16>
    %430 = arith.truncf %427 : vector<32x16xf32> to vector<32x16xbf16>
    %cst_165 = arith.constant dense<0.000000e+00> : vector<8x16xf32>
    %431 = tpu.matmul %429, %430, %cst_165 {dimension_numbers = #tpu.dot_dimension_numbers<[1], [0], [0], [1], [0, 0, 1, 1], [], []>} : vector<8x32xbf16>, vector<32x16xbf16>, vector<8x16xf32> -> vector<8x16xf32>
    %c952 = arith.constant 952 : index
    %c0_166 = arith.constant 0 : index
    %432 = vector.load %arg2[%c952, %c0_166] : memref<960x128xf32, #tpu.memory_space<vmem>>, vector<8x16xf32>
    %433 = arith.addf %431, %432 : vector<8x16xf32>
    %cst_167 = arith.constant 0.000000e+00 : f32
    %434 = vector.broadcast %cst_167 : f32 to vector<8x16xf32>
    %435 = arith.subf %434, %433 : vector<8x16xf32>
    %436 = math.exp %435 : vector<8x16xf32>
    %cst_168 = arith.constant 1.000000e+00 : f32
    %437 = vector.broadcast %cst_168 : f32 to vector<8x16xf32>
    %438 = arith.addf %437, %436 : vector<8x16xf32>
    %439 = tpu.reciprocal %438 {approx = true} : vector<8x16xf32> -> vector<8x16xf32>
    %440 = arith.mulf %433, %439 : vector<8x16xf32>
    %441 = arith.addf %237, %440 : vector<8x16xf32>
    %c240_169 = arith.constant 240 : index
    %c0_170 = arith.constant 0 : index
    %442 = vector.load %arg1[%c240_169, %c0_170] : memref<512x256xf32, #tpu.memory_space<vmem>>, vector<32x8xf32>
    %443 = arith.truncf %442 : vector<32x8xf32> to vector<32x8xbf16>
    %444 = arith.truncf %441 : vector<8x16xf32> to vector<8x16xbf16>
    %cst_171 = arith.constant dense<0.000000e+00> : vector<32x16xf32>
    %445 = tpu.matmul %443, %444, %cst_171 {dimension_numbers = #tpu.dot_dimension_numbers<[1], [0], [0], [1], [0, 0, 1, 1], [], []>} : vector<32x8xbf16>, vector<8x16xbf16>, vector<32x16xf32> -> vector<32x16xf32>
    %c272_172 = arith.constant 272 : index
    %c0_173 = arith.constant 0 : index
    %446 = vector.load %arg1[%c272_172, %c0_173] : memref<512x256xf32, #tpu.memory_space<vmem>>, vector<32x16xf32>
    %447 = arith.addf %445, %446 : vector<32x16xf32>
    %cst_174 = arith.constant 0.000000e+00 : f32
    %448 = vector.broadcast %cst_174 : f32 to vector<32x16xf32>
    %449 = arith.subf %448, %447 : vector<32x16xf32>
    %450 = math.exp %449 : vector<32x16xf32>
    %cst_175 = arith.constant 1.000000e+00 : f32
    %451 = vector.broadcast %cst_175 : f32 to vector<32x16xf32>
    %452 = arith.addf %451, %450 : vector<32x16xf32>
    %453 = tpu.reciprocal %452 {approx = true} : vector<32x16xf32> -> vector<32x16xf32>
    %454 = arith.mulf %447, %453 : vector<32x16xf32>
    %c304_176 = arith.constant 304 : index
    %c0_177 = arith.constant 0 : index
    %455 = vector.load %arg1[%c304_176, %c0_177] : memref<512x256xf32, #tpu.memory_space<vmem>>, vector<32x32xf32>
    %456 = arith.truncf %455 : vector<32x32xf32> to vector<32x32xbf16>
    %457 = arith.truncf %454 : vector<32x16xf32> to vector<32x16xbf16>
    %cst_178 = arith.constant dense<0.000000e+00> : vector<32x16xf32>
    %458 = tpu.matmul %456, %457, %cst_178 {dimension_numbers = #tpu.dot_dimension_numbers<[1], [0], [0], [1], [0, 0, 1, 1], [], []>} : vector<32x32xbf16>, vector<32x16xbf16>, vector<32x16xf32> -> vector<32x16xf32>
    %c336_179 = arith.constant 336 : index
    %c0_180 = arith.constant 0 : index
    %459 = vector.load %arg1[%c336_179, %c0_180] : memref<512x256xf32, #tpu.memory_space<vmem>>, vector<32x16xf32>
    %460 = arith.addf %458, %459 : vector<32x16xf32>
    %cst_181 = arith.constant 0.000000e+00 : f32
    %461 = vector.broadcast %cst_181 : f32 to vector<32x16xf32>
    %462 = arith.subf %461, %460 : vector<32x16xf32>
    %463 = math.exp %462 : vector<32x16xf32>
    %cst_182 = arith.constant 1.000000e+00 : f32
    %464 = vector.broadcast %cst_182 : f32 to vector<32x16xf32>
    %465 = arith.addf %464, %463 : vector<32x16xf32>
    %466 = tpu.reciprocal %465 {approx = true} : vector<32x16xf32> -> vector<32x16xf32>
    %467 = arith.mulf %460, %466 : vector<32x16xf32>
    %c368_183 = arith.constant 368 : index
    %c0_184 = arith.constant 0 : index
    %468 = vector.load %arg1[%c368_183, %c0_184] : memref<512x256xf32, #tpu.memory_space<vmem>>, vector<32x32xf32>
    %469 = arith.truncf %468 : vector<32x32xf32> to vector<32x32xbf16>
    %470 = arith.truncf %467 : vector<32x16xf32> to vector<32x16xbf16>
    %cst_185 = arith.constant dense<0.000000e+00> : vector<32x16xf32>
    %471 = tpu.matmul %469, %470, %cst_185 {dimension_numbers = #tpu.dot_dimension_numbers<[1], [0], [0], [1], [0, 0, 1, 1], [], []>} : vector<32x32xbf16>, vector<32x16xbf16>, vector<32x16xf32> -> vector<32x16xf32>
    %c400_186 = arith.constant 400 : index
    %c0_187 = arith.constant 0 : index
    %472 = vector.load %arg1[%c400_186, %c0_187] : memref<512x256xf32, #tpu.memory_space<vmem>>, vector<32x16xf32>
    %473 = arith.addf %471, %472 : vector<32x16xf32>
    %cst_188 = arith.constant 0.000000e+00 : f32
    %474 = vector.broadcast %cst_188 : f32 to vector<32x16xf32>
    %475 = arith.subf %474, %473 : vector<32x16xf32>
    %476 = math.exp %475 : vector<32x16xf32>
    %cst_189 = arith.constant 1.000000e+00 : f32
    %477 = vector.broadcast %cst_189 : f32 to vector<32x16xf32>
    %478 = arith.addf %477, %476 : vector<32x16xf32>
    %479 = tpu.reciprocal %478 {approx = true} : vector<32x16xf32> -> vector<32x16xf32>
    %480 = arith.mulf %473, %479 : vector<32x16xf32>
    %c432_190 = arith.constant 432 : index
    %c0_191 = arith.constant 0 : index
    %481 = vector.load %arg1[%c432_190, %c0_191] : memref<512x256xf32, #tpu.memory_space<vmem>>, vector<16x32xf32>
    %482 = arith.truncf %481 : vector<16x32xf32> to vector<16x32xbf16>
    %483 = arith.truncf %480 : vector<32x16xf32> to vector<32x16xbf16>
    %cst_192 = arith.constant dense<0.000000e+00> : vector<16x16xf32>
    %484 = tpu.matmul %482, %483, %cst_192 {dimension_numbers = #tpu.dot_dimension_numbers<[1], [0], [0], [1], [0, 0, 1, 1], [], []>} : vector<16x32xbf16>, vector<32x16xbf16>, vector<16x16xf32> -> vector<16x16xf32>
    %c448 = arith.constant 448 : index
    %c0_193 = arith.constant 0 : index
    %485 = vector.load %arg1[%c448, %c0_193] : memref<512x256xf32, #tpu.memory_space<vmem>>, vector<16x16xf32>
    %486 = arith.addf %484, %485 : vector<16x16xf32>
    %c464_194 = arith.constant 464 : index
    %c0_195 = arith.constant 0 : index
    %487 = vector.load %arg1[%c464_194, %c0_195] : memref<512x256xf32, #tpu.memory_space<vmem>>, vector<16x16xf32>
    %488 = arith.truncf %487 : vector<16x16xf32> to vector<16x16xbf16>
    %489 = arith.truncf %486 : vector<16x16xf32> to vector<16x16xbf16>
    %cst_196 = arith.constant dense<0.000000e+00> : vector<16x16xf32>
    %490 = tpu.matmul %488, %489, %cst_196 {dimension_numbers = #tpu.dot_dimension_numbers<[1], [0], [0], [1], [0, 0, 1, 1], [], []>} : vector<16x16xbf16>, vector<16x16xbf16>, vector<16x16xf32> -> vector<16x16xf32>
    %c480_197 = arith.constant 480 : index
    %c0_198 = arith.constant 0 : index
    %491 = vector.load %arg1[%c480_197, %c0_198] : memref<512x256xf32, #tpu.memory_space<vmem>>, vector<16x16xf32>
    %492 = arith.addf %490, %491 : vector<16x16xf32>
    %cst_199 = arith.constant 0.000000e+00 : f32
    %493 = vector.broadcast %cst_199 : f32 to vector<16x16xf32>
    %494 = arith.subf %493, %492 : vector<16x16xf32>
    %495 = math.exp %494 : vector<16x16xf32>
    %cst_200 = arith.constant 1.000000e+00 : f32
    %496 = vector.broadcast %cst_200 : f32 to vector<16x16xf32>
    %497 = arith.addf %496, %495 : vector<16x16xf32>
    %498 = tpu.reciprocal %497 {approx = true} : vector<16x16xf32> -> vector<16x16xf32>
    %499 = arith.mulf %492, %498 : vector<16x16xf32>
    %c496 = arith.constant 496 : index
    %c0_201 = arith.constant 0 : index
    %500 = vector.load %arg1[%c496, %c0_201] : memref<512x256xf32, #tpu.memory_space<vmem>>, vector<1x16xf32>
    %501 = arith.truncf %500 : vector<1x16xf32> to vector<1x16xbf16>
    %502 = arith.truncf %499 : vector<16x16xf32> to vector<16x16xbf16>
    %cst_202 = arith.constant dense<0.000000e+00> : vector<1x16xf32>
    %503 = tpu.matmul %501, %502, %cst_202 {dimension_numbers = #tpu.dot_dimension_numbers<[1], [0], [0], [1], [0, 0, 1, 1], [], []>} : vector<1x16xbf16>, vector<16x16xbf16>, vector<1x16xf32> -> vector<1x16xf32>
    %c504 = arith.constant 504 : index
    %c0_203 = arith.constant 0 : index
    %504 = vector.load %arg1[%c504, %c0_203] : memref<512x256xf32, #tpu.memory_space<vmem>>, vector<1x16xf32>
    %505 = arith.addf %503, %504 : vector<1x16xf32>
    %506 = vector.broadcast %505 : vector<1x16xf32> to vector<8x16xf32>
    %507 = arith.mulf %33, %506 : vector<8x16xf32>
    %c144_204 = arith.constant 144 : index
    %c0_205 = arith.constant 0 : index
    %508 = vector.load %arg1[%c144_204, %c0_205] : memref<512x256xf32, #tpu.memory_space<vmem>>, vector<16x2xf32>
    %cst_206 = arith.constant dense<0.000000e+00> : vector<8x2xf32>
    %509 = tpu.matmul %507, %508, %cst_206 {dimension_numbers = #tpu.dot_dimension_numbers<[1], [0], [0], [1], [0, 0, 1, 1], [], []>} : vector<8x16xf32>, vector<16x2xf32>, vector<8x2xf32> -> vector<8x2xf32>
    %c0_207 = arith.constant 0 : index
    %c0_208 = arith.constant 0 : index
    %510 = vector.load %arg3[%c0_207, %c0_208] : memref<8x2xf32, #tpu.memory_space<vmem>>, vector<8x2xf32>
    tpu.vector_store %arg3[%c0_207, %c0_208], %509 {strides = array<i32>} : memref<8x2xf32, #tpu.memory_space<vmem>>, vector<8x2xf32>,
    return
  }
}

</mosaic_0001>

<bundles_post_ra>
// kernel: tpu_custom_call.1
= control target key start
LH: loop header
LB: loop body
LE: loop exit
PB: predicated region body
PF: predicated region fallthrough
CT: control target
= control target key end

     0   :  { %8 = vsyncpa [#allocation3], 0  ;;  %s3651_s0 = inlined_call_operand.hbm [shape: f32[16,16], index: 0, kind: input, shape index: {}]   ;;  %s3652_s1 = inlined_call_operand.hbm [shape: f32[512,256], index: 1, kind: input, shape index: {}]   ;;  %s3653_s2 = inlined_call_operand.hbm [shape: f32[960,128], index: 2, kind: input, shape index: {}]   ;;  %s3654_s3 = inlined_call_operand.vmem [shape: f32[8,2], index: 3, kind: output, shape index: {}]  }
   0x1   :  { %9 = vsyncpa [#allocation5], 0  ;;  %s3389_s12 = smov [#allocation4]   ;;  %s3319_s16 = scalar_lea.hbm %s3652_s1, 16384 }
   0x2   :  { %s27_s13 = sshll.u32 %s3389_s12, 4  ;;  %p3320_p0 = scmp.ne.s32.totalorder %s3652_s1, %s3319_s16  ;;  %s28_s13 = int_to_ptr.vmem [resolvable:$true] %s27_s13 }
   0x3   :  { %p3323_p1 = scmp.lt.u32.totalorder %s3319_s16, %s3652_s1 }
   0x5   :  { %p3325_p2 = pnand %p3323_p1, %p3320_p0 }
   0x7   :  { %3328 = shalt.err (!%p3325_p2)
}
   0x8   :  { %s3329_s21 = scalar_lea.vmem %s28_s13, 16384  ;;  %p3334_p4 = scmp.lt.s32.totalorder %s28_s13, %s28_s13 }
   0x9   :  { %p3330_p3 = scmp.ne.s32.totalorder %s28_s13, %s3329_s21  ;;  %p3335_p5 = scmp.lt.s32.totalorder %s3329_s21, %s3329_s21 }
   0xb   :  { %p3336_p6 = por %p3335_p5, %p3334_p4 }
   0xd   :  { %p3337_p7 = pnand %p3336_p6, %p3330_p3 }
   0xf   :  { %3340 = shalt.err (!%p3337_p7)
}
  0x10   :  { %s3390_s22 = smov 256   ;;  %s3391_s23 = smov 16  }
  0x11   :  { %33 = dma.hbm_to_vmem [thread:$0]  %s3652_s1, 16384, %s28_s13, [#allocation5], %s3390_s22, %s3390_s22, %s3391_s23  }
  0x12   :  { %s3392_s26 = smov [#allocation2]   ;;  %s3341_s30 = scalar_lea.hbm %s3651_s0, 256 }
  0x13   :  { %s15_s27 = sshll.u32 %s3392_s26, 4  ;;  %p3342_p8 = scmp.ne.s32.totalorder %s3651_s0, %s3341_s30  ;;  %s16_s27 = int_to_ptr.vmem [resolvable:$true] %s15_s27 }
  0x14   :  { %p3345_p9 = scmp.lt.u32.totalorder %s3341_s30, %s3651_s0 }
  0x16   :  { %p3347_p10 = pnand %p3345_p9, %p3342_p8 }
  0x18   :  { %3350 = shalt.err (!%p3347_p10)
}
  0x19   :  { %s3351_s8 = scalar_lea.vmem %s16_s27, 256  ;;  %p3356_p12 = scmp.lt.s32.totalorder %s16_s27, %s16_s27 }
  0x1a   :  { %p3352_p11 = scmp.ne.s32.totalorder %s16_s27, %s3351_s8  ;;  %p3357_p13 = scmp.lt.s32.totalorder %s3351_s8, %s3351_s8 }
  0x1c   :  { %p3358_p0 = por %p3357_p13, %p3356_p12 }
  0x1e   :  { %p3359_p1 = pnand %p3358_p0, %p3352_p11 }
  0x20   :  { %3362 = shalt.err (!%p3359_p1)
}
  0x21   :  { %s3393_s1 = smov 128   ;;  %s3394_s9 = smov 8  }
  0x22   :  { %21 = dma.hbm_to_vmem [thread:$0]  %s3651_s0, 256, %s16_s27, [#allocation3], %s3393_s1, %s3393_s1, %s3394_s9  }
  0x23   :  { %s3395_s12 = smov [#allocation6]   ;;  %s3363_s16 = scalar_lea.hbm %s3653_s2, 15360 }
  0x24   :  { %s39_s13 = sshll.u32 %s3395_s12, 4  ;;  %p3364_p2 = scmp.ne.s32.totalorder %s3653_s2, %s3363_s16  ;;  %s40_s13 = int_to_ptr.vmem [resolvable:$true] %s39_s13 }
  0x25   :  { %p3367_p3 = scmp.lt.u32.totalorder %s3363_s16, %s3653_s2 }
  0x27   :  { %p3369_p4 = pnand %p3367_p3, %p3364_p2 }
  0x29   :  { %3372 = shalt.err (!%p3369_p4)
}
  0x2a   :  { %s3373_s21 = scalar_lea.vmem %s40_s13, 15360  ;;  %p3378_p6 = scmp.lt.s32.totalorder %s40_s13, %s40_s13 }
  0x2b   :  { %p3374_p5 = scmp.ne.s32.totalorder %s40_s13, %s3373_s21  ;;  %p3379_p7 = scmp.lt.s32.totalorder %s3373_s21, %s3373_s21 }
  0x2d   :  { %p3380_p8 = por %p3379_p7, %p3378_p6 }
  0x2f   :  { %p3381_p9 = pnand %p3380_p8, %p3374_p5 }
  0x31   :  { %3384 = shalt.err (!%p3381_p9)
}
  0x32   :  { %45 = dma.hbm_to_vmem [thread:$0]  %s3653_s2, 15360, %s40_s13, [#allocation5], %s3393_s1, %s3393_s1, %s3394_s9  }
  0x33   :  { %3385 = dma.done.wait [#allocation3], 256  }
  0x34   :  { %3386 = vsyncadd [#allocation3], 4294967040 }
  0x35   :  { %3387 = dma.done.wait [#allocation5], 31744  }
  0x36   :  { %3388 = vsyncadd [#allocation5], 4294935552  ;;  %v3396_v0 = vmov 0.0   ;;  %vm3397_vm0 = vmmov 0   ;;  %v57_v1 = vld [vmem:[#allocation2 + $0x8] sm:$0xff]  ;;  %vm68_vm1 = vcmask 1043456  }
  0x37   :  { %2771 = vmatprep.subr.bf16.mxu0 %v3396_v0  ;;  %2773 = vmatprep.mubr.msk.bf16.mxu0 %vm3397_vm0, %v3396_v0  ;;  %v58_v2 = vld [vmem:[#allocation4 + $0x140] sm:$0xff]  ;;  %v59_v3 = vld [vmem:[#allocation4 + $0x150] sm:$0xff]  ;;  %v61_v4 = vpack.c.bf16 %v57_v1, %v57_v1  ;;  %vm64_vm2 = vcmask 64512   ;;  %v236_v24 = vld [vmem:[#allocation4 + $0x8] sm:$0xff]  ;;  %vm131_vm3 = vcmask 130048   ;;  %v3398_v37 = vmov 0  }
  0x38   :  { %2777 = vmatprep.subr.bf16.mxu1 %v3396_v0  ;;  %2779 = vmatprep.mubr.msk.bf16.mxu1 %vm3397_vm0, %v3396_v0  ;;  %v60_v6 = vpack.c.bf16 %v59_v3, %v58_v2  ;;  %v62_v7 = vld [vmem:[#allocation4 + $0x160] sm:$0xff]  ;;  %v63_v9 = vld [vmem:[#allocation4 + $0x170] sm:$0xff]  ;;  %v238_v25 = vld [vmem:[#allocation4 + $0x18] sm:$0xff]  ;;  %s3399_s2 = smov 64   ;;  %vm444_vm4 = vcmask 261120   ;;  %vm2617_vm5 = vcmask 15360  }
  0x39   :  { %v70_v5 = vsel %vm68_vm1, %v61_v4, 0  ;;  %v125_v29 = vld [vmem:[#allocation4 + $0x180] sm:$0xff]  ;;  %v126_v30 = vld [vmem:[#allocation4 + $0x190] sm:$0xff]  ;;  %v3468_v31 = vpack.c.bf16 %v238_v25, %v236_v24  ;;  %v287_v4 = vld [vmem:[#allocation6 + $0x8] sm:$0xff] }
  0x3a   :  { %2772 = vmatpush3.bf16.msra.mxu0 %v70_v5  ;;  %v235_v32 = vld [vmem:[#allocation4] sm:$0xff]  ;;  %v237_v33 = vld [vmem:[#allocation4 + $0x10] sm:$0xff]  ;;  %v127_v35 = vpack.c.bf16 %v126_v30, %v125_v29 }
  0x3b   :  { %2783 = vmatprep.subr.bf16.mxu0 %v3396_v0  ;;  %v3470_v36 = vpack.c.bf16 %v237_v33, %v235_v32  ;;  %v3476_v38 = vld [vmem:[#allocation2] sm:$0xff]  ;;  %v129_v40 = vld [vmem:[#allocation4 + $0x1a0] sm:$0xff] }
  0x3c   :  { %v239_v39 = vpack.c.bf16 %v3476_v38, %v3476_v38  ;;  %v130_v42 = vld [vmem:[#allocation4 + $0x1b0] sm:$0xff]  ;;  %v188_v2 = vld [vmem:[#allocation4 + $0x1c0] sm:$0xff] }
  0x3d   :  { %2774 = vmatmul.mubr.msk.bf16.vlgmr.msra.gmra.mrb[0].mxu0 %vm64_vm2, %v60_v6  ;;  %v286_v3 = vld [vmem:[#allocation6] sm:$0xff]  ;;  %v189_v6 = vpack.c.bf16 %v188_v2, %v188_v2 }
  0x3e   :  { %2785 = vmatprep.mubr.msk.bf16.mxu0 %vm3397_vm0, %v3396_v0 }
 0x110   :  { %v106_v8 = vpop.f32.mrb[0].mxu0 }
 0x111   :  { %v107_v10 = vadd.f32 %v106_v8, %v62_v7  ;;  %v2775_v11 = vpop.f32.mrb[1].mxu0  ;;  %v290_v7 = vpack.c.bf16 %v287_v4, %v286_v3  ;;  %v288_v8 = vld [vmem:[#allocation6 + $0x10] sm:$0xff] }
 0x112   :  { %v109_v12 = vpop.f32.mrb[2].mxu0 }
 0x113   :  { %v113_v13 = vsub.f32 0.0, %v107_v10  ;;  %v110_v14 = vadd.f32 %v109_v12, %v63_v9  ;;  %v2776_v15 = vpop.f32.mrb[3].mxu0  ;;  %v289_v9 = vld [vmem:[#allocation6 + $0x18] sm:$0xff] }
 0x114   :  { %v295_v15 = vld [vmem:[#allocation6 + $0x30] sm:$0xff] }
 0x115   :  { %v115_v16 = vmul.f32 1.442695, %v113_v13  ;;  %v114_v17 = vsub.f32 0.0, %v110_v14 }
 0x117   :  { %3018 = vpow2.f32 %v115_v16  ;;  %v117_v18 = vmul.f32 1.442695, %v114_v17  ;;  %v293_v16 = vld [vmem:[#allocation6 + $0x20] sm:$0xff] }
 0x119   :  { %3020 = vpow2.f32 %v117_v18  ;;  %v296_v18 = vld [vmem:[#allocation6 + $0x38] sm:$0xff] }
 0x121   :  { %v3019_v19 = vpop.eup %3018 }
 0x122   :  { %v119_v20 = vadd.f32 1.0, %v3019_v19 }
 0x123   :  { %v3021_v21 = vpop.eup %3020 }
 0x124   :  { %3022 = vrcp.f32 %v119_v20  ;;  %v120_v22 = vadd.f32 1.0, %v3021_v21  ;;  %v294_v21 = vld [vmem:[#allocation6 + $0x28] sm:$0xff] }
 0x126   :  { %3024 = vrcp.f32 %v120_v22 }
 0x12e   :  { %v3023_v23 = vpop.eup %3022 }
 0x12f   :  { %v123_v27 = vmul.f32 %v3023_v23, %v107_v10  ;;  %v291_v10 = vpack.c.bf16 %v289_v9, %v288_v8 }
 0x130   :  { %v3025_v26 = vpop.eup %3024 }
 0x131   :  { %v124_v28 = vmul.f32 %v3025_v26, %v110_v14 }
 0x133   :  { %v128_v34 = vpack.c.bf16 %v124_v28, %v123_v27 }
 0x135   :  { %2778 = vmatpush3.bf16.msra.mxu1 %v128_v34 }
 0x136   :  { %245 = vmatprep.subr.bf16.mxu1 %v3468_v31 }
 0x138   :  { %2780 = vmatmul.mubr.msk.bf16.vlgmr.msra.gmra.mrb[0].mxu1 %vm131_vm3, %v127_v35 }
 0x139   :  { %246 = vmatpush1.bf16.msra.mxu1 %v3470_v36  ;;  %277 = vmatprep.mubr.bf16.mxu1 %v3398_v37 }
 0x140   :  { %2628 = vmatmul.mubr.msk.bf16.vlgmr.msra.gmra.mrb[4].mxu1 %vm131_vm3, %v239_v39 }
 0x20b   :  { %v169_v41 = vpop.f32.mrb[0].mxu1 }
 0x20c   :  { %v170_v43 = vadd.f32 %v169_v41, %v129_v40  ;;  %v2781_v44 = vpop.f32.mrb[1].mxu1 }
 0x20d   :  { %v172_v45 = vpop.f32.mrb[2].mxu1 }
 0x20e   :  { %v176_v46 = vsub.f32 0.0, %v170_v43  ;;  %v173_v47 = vadd.f32 %v172_v45, %v130_v42  ;;  %v2782_v48 = vpop.f32.mrb[3].mxu1 }
 0x210   :  { %v178_v49 = vmul.f32 1.442695, %v176_v46  ;;  %v177_v50 = vsub.f32 0.0, %v173_v47 }
 0x212   :  { %3026 = vpow2.f32 %v178_v49  ;;  %v180_v51 = vmul.f32 1.442695, %v177_v50 }
 0x213   :  { %v279_v52 = vpop.f32.mrb[4].mxu1 }
 0x214   :  { %3028 = vpow2.f32 %v180_v51  ;;  %v281_v53 = vpop.f32.mrb[5].mxu1 }
 0x215   :  { %v292_v54 = vpack.c.bf16 %v281_v53, %v279_v52  ;;  %v283_v55 = vpop.f32.mrb[6].mxu1 }
 0x216   :  { %v284_v56 = vpop.f32.mrb[7].mxu1 }
 0x21c   :  { %v3027_v57 = vpop.eup %3026 }
 0x21d   :  { %v182_v58 = vadd.f32 1.0, %v3027_v57 }
 0x21e   :  { %v3029_v59 = vpop.eup %3028 }
 0x21f   :  { %3030 = vrcp.f32 %v182_v58  ;;  %v183_v60 = vadd.f32 1.0, %v3029_v59 }
 0x221   :  { %3032 = vrcp.f32 %v183_v60 }
 0x229   :  { %v3031_v61 = vpop.eup %3030 }
 0x22a   :  { %v186_v63 = vmul.f32 %v3031_v61, %v170_v43 }
 0x22b   :  { %v3033_v62 = vpop.eup %3032 }
 0x22c   :  { %v187_v1 = vmul.f32 %v3033_v62, %v173_v47 }
 0x22e   :  { %v190_v5 = vpack.c.bf16 %v187_v1, %v186_v63 }
 0x230   :  { %2784 = vmatpush3.bf16.msra.mxu0 %v190_v5 }
 0x231   :  { %2789 = vmatprep.subr.bf16.mxu0 %v292_v54 }
 0x233   :  { %2786 = vmatmul.mubr.msk.bf16.vlgmr.msra.gmra.mrb[4].mxu0 %vm131_vm3, %v189_v6 }
 0x234   :  { %2790 = vmatpush3.bf16.msra.mxu0 %v292_v54  ;;  %2791 = vmatprep.mubr.msk.bf16.mxu0 %vm131_vm3, %v290_v7 }
 0x23b   :  { %2792 = vmatmul.mubr.msk.bf16.vlgmr.msra.gmra.mrb[8].mxu0 %vm131_vm3, %v291_v10 }
 0x306   :  { %v3484_v11 = vpop.f32.mrb[4].mxu0 }
 0x307   :  { %v2787_v12 = vpop.f32.mrb[5].mxu0 }
 0x308   :  { %v232_v13 = vpop.f32.mrb[6].mxu0 }
 0x309   :  { %v2788_v14 = vpop.f32.mrb[7].mxu0 }
 0x30e   :  { %v2793_v17 = vpop.f32.mrb[8].mxu0 }
 0x30f   :  { %v346_v19 = vadd.f32 %v2793_v17, %v295_v15  ;;  %v337_v20 = vpop.f32.mrb[9].mxu0  ;;  %v432_v15 = vld [vmem:[#allocation6 + $0x50] sm:$0xff] }
 0x310   :  { %v338_v22 = vadd.f32 %v337_v20, %v293_v16  ;;  %v2794_v23 = vpop.f32.mrb[10].mxu0  ;;  %v433_v16 = vld [vmem:[#allocation6 + $0x58] sm:$0xff] }
 0x311   :  { %v354_v24 = vsub.f32 0.0, %v346_v19  ;;  %v349_v25 = vadd.f32 %v2794_v23, %v296_v18  ;;  %v340_v26 = vpop.f32.mrb[11].mxu0  ;;  %v436_v17 = vpack.c.bf16 %v433_v16, %v432_v15 }
 0x312   :  { %v352_v27 = vsub.f32 0.0, %v338_v22  ;;  %v341_v28 = vadd.f32 %v340_v26, %v294_v21 }
 0x313   :  { %v360_v29 = vmul.f32 1.442695, %v354_v24  ;;  %v355_v30 = vsub.f32 0.0, %v349_v25  ;;  %2799 = vmatprep.mubr.msk.bf16.mxu1 %vm444_vm4, %v436_v17 }
 0x314   :  { %v356_v32 = vmul.f32 1.442695, %v352_v27  ;;  %v353_v33 = vsub.f32 0.0, %v341_v28 }
 0x315   :  { %3034 = vpow2.f32 %v360_v29  ;;  %v362_v34 = vmul.f32 1.442695, %v355_v30  ;;  %v376_v30 = vld [vmem:[#allocation6 + $0x40] sm:$0x1] }
 0x316   :  { %3036 = vpow2.f32 %v356_v32  ;;  %v358_v35 = vmul.f32 1.442695, %v353_v33 }
 0x317   :  { %3038 = vpow2.f32 %v362_v34 }
 0x318   :  { %3040 = vpow2.f32 %v358_v35  ;;  %v377_v35 = vld [vmem:[#allocation6 + $0x48] sm:$0x1] }
 0x31f   :  { %v3035_v39 = vpop.eup %3034 }
 0x320   :  { %v3037_v40 = vpop.eup %3036  ;;  %v366_v41 = vadd.f32 1.0, %v3035_v39 }
 0x321   :  { %v3039_v42 = vpop.eup %3038  ;;  %v364_v43 = vadd.f32 1.0, %v3037_v40 }
 0x322   :  { %v3041_v44 = vpop.eup %3040  ;;  %3042 = vrcp.f32 %v366_v41  ;;  %v367_v45 = vadd.f32 1.0, %v3039_v42 }
 0x323   :  { %3044 = vrcp.f32 %v364_v43  ;;  %v365_v46 = vadd.f32 1.0, %v3041_v44 }
 0x324   :  { %3046 = vrcp.f32 %v367_v45 }
 0x325   :  { %3048 = vrcp.f32 %v365_v46 }
 0x32c   :  { %v3043_v47 = vpop.eup %3042 }
 0x32d   :  { %v3045_v48 = vpop.eup %3044  ;;  %v374_v52 = vmul.f32 %v3043_v47, %v346_v19 }
 0x32e   :  { %v3047_v49 = vpop.eup %3046  ;;  %v372_v50 = vmul.f32 %v3045_v48, %v338_v22 }
 0x32f   :  { %v3049_v51 = vpop.eup %3048  ;;  %v375_v55 = vmul.f32 %v3047_v49, %v349_v25  ;;  %v389_v58 = vmul.f32 %v374_v52, %v374_v52 }
 0x330   :  { %v373_v53 = vmul.f32 %v3049_v51, %v341_v28  ;;  %v387_v54 = vmul.f32 %v372_v50, %v372_v50  ;;  %v416_v28 = vlaneseq }
 0x331   :  { %v390_v61 = vmul.f32 %v375_v55, %v375_v55 }
 0x332   :  { %v378_v56 = vadd.f32 %v373_v53, %v372_v50  ;;  %v388_v57 = vmul.f32 %v373_v53, %v373_v53  ;;  %v417_v29 = vshrl.u32 %v416_v28, 7 }
 0x334   :  { %v379_v59 = vadd.f32 %v378_v56, %v374_v52  ;;  %v391_v60 = vadd.f32 %v388_v57, %v387_v54  ;;  %v3489_v32 = vsub.s32 0, %v417_v29  ;;  %v434_v57 = vld [vmem:[#allocation6 + $0x60] sm:$0xff] }
 0x336   :  { %v392_v62 = vadd.f32 %v391_v60, %v389_v58  ;;  %v380_v63 = vadd.f32 %v379_v59, %v375_v55  ;;  %v435_v58 = vld [vmem:[#allocation6 + $0x68] sm:$0xff] }
 0x337   :  { %v437_v59 = vpack.c.bf16 %v435_v58, %v434_v57 }
 0x338   :  { %v381_v1 = vrot.slane %v380_v63, 4  ;;  %v393_v2 = vadd.f32 %v392_v62, %v390_v61  ;;  %v441_v62 = vld [vmem:[#allocation6 + $0x78] sm:$0xff] }
 0x33a   :  { %v382_v3 = vadd.f32 %v381_v1, %v380_v63  ;;  %v394_v4 = vrot.slane %v393_v2, 4 }
 0x33c   :  { %v383_v5 = vrot.slane %v382_v3, 2  ;;  %v395_v6 = vadd.f32 %v394_v4, %v393_v2 }
 0x33e   :  { %v384_v7 = vadd.f32 %v383_v5, %v382_v3  ;;  %v396_v8 = vrot.slane %v395_v6, 2 }
 0x340   :  { %v385_v9 = vrot.slane %v384_v7, 1  ;;  %v397_v10 = vadd.f32 %v396_v8, %v395_v6 }
 0x342   :  { %v386_v12 = vadd.f32 %v385_v9, %v384_v7  ;;  %v398_v13 = vrot.slane %v397_v10, 1 }
 0x344   :  { %400 = vrot.lane.b32.xlu0 %v386_v12, %s3399_s2  ;;  %v399_v14 = vadd.f32 %v398_v13, %v397_v10 }
 0x348   :  { %403 = vrot.lane.b32.xlu0 %v399_v14, %s3399_s2 }
 0x3b6   :  { %v401_v18 = vpop.permute.xlu0 %400 }
 0x3b7   :  { %v402_v19 = vadd.f32 %v401_v18, %v386_v12 }
 0x3b9   :  { %v406_v20 = vmul.f32 0.015625, %v402_v19 }
 0x3ba   :  { %v404_v21 = vpop.permute.xlu0 %403 }
 0x3bb   :  { %v405_v22 = vadd.f32 %v404_v21, %v399_v14  ;;  %v408_v23 = vmul.f32 %v406_v20, %v406_v20 }
 0x3bd   :  { %v407_v24 = vmul.f32 0.015625, %v405_v22 }
 0x3bf   :  { %v409_v25 = vsub.f32 %v407_v24, %v408_v23 }
 0x3c1   :  { %v410_v26 = vmax.f32 %v409_v25, 0.0 }
 0x3c3   :  { %v411_v27 = vadd.f32 1e-05, %v410_v26 }
 0x3c5   :  { %3050 = vrsqrt.f32 %v411_v27 }
 0x3cf   :  { %v3051_v33 = vpop.eup %3050 }
 0x3d0   :  { %v413_v34 = vmul.f32 %v3051_v33, %v376_v30 }
 0x3d2   :  { %v414_v39 = vmul.f32 %v413_v34, %v406_v20  ;;  %v419_v40 = vrot.slane %v413_v34, %v3489_v32 }
 0x3d4   :  { %v415_v41 = vsub.f32 %v377_v35, %v414_v39  ;;  %v420_v42 = vmul.f32 %v419_v40, %v372_v50  ;;  %v421_v43 = vmul.f32 %v419_v40, %v373_v53  ;;  %v422_v45 = vmul.f32 %v419_v40, %v374_v52  ;;  %v442_v50 = vld [vmem:[#allocation6 + $0x80] sm:$0xff]  ;;  %v440_v52 = vld [vmem:[#allocation6 + $0x70] sm:$0xff] }
 0x3d5   :  { %v423_v46 = vmul.f32 %v419_v40, %v375_v55  ;;  %v443_v55 = vld [vmem:[#allocation6 + $0x88] sm:$0xff] }
 0x3d6   :  { %v427_v44 = vrot.slane %v415_v41, %v3489_v32 }
 0x3d8   :  { %v428_v47 = vadd.f32 %v427_v44, %v420_v42  ;;  %v429_v48 = vadd.f32 %v427_v44, %v421_v43  ;;  %v430_v49 = vadd.f32 %v427_v44, %v422_v45  ;;  %v431_v51 = vadd.f32 %v427_v44, %v423_v46 }
 0x3da   :  { %v438_v54 = vpack.c.bf16 %v429_v48, %v428_v47  ;;  %v439_v56 = vpack.c.bf16 %v431_v51, %v430_v49 }
 0x3dc   :  { %2795 = vmatprep.subr.bf16.mxu1 %v438_v54 }
 0x3dd   :  { %2796 = vmatpush3.bf16.msra.mxu1 %v438_v54 }
 0x3de   :  { %2797 = vmatprep.subr.bf16.mxu1 %v439_v56 }
 0x3e1   :  { %2798 = vmatpush3.bf16.msra.mxu1 %v439_v56 }
 0x3e2   :  { %2811 = vmatprep.subr.bf16.mxu1 %v3396_v0 }
 0x3e4   :  { %2800 = vmatmul.mubr.msk.bf16.vlgmr.msra.gmra.mrb[8].mxu1 %vm444_vm4, %v437_v59 }
 0x3e5   :  { %2815 = vmatprep.mubr.msk.bf16.mxu1 %vm3397_vm0, %v3396_v0 }
 0x4b7   :  { %v2801_v53 = vpop.f32.mrb[8].mxu1 }
 0x4b8   :  { %v494_v60 = vadd.f32 %v2801_v53, %v442_v50  ;;  %v485_v61 = vpop.f32.mrb[9].mxu1  ;;  %v581_v53 = vld [vmem:[#allocation6 + $0xa8] sm:$0xff] }
 0x4b9   :  { %v486_v63 = vadd.f32 %v485_v61, %v440_v52  ;;  %v2802_v1 = vpop.f32.mrb[10].mxu1  ;;  %v580_v52 = vld [vmem:[#allocation6 + $0xa0] sm:$0xff] }
 0x4ba   :  { %v502_v2 = vsub.f32 0.0, %v494_v60  ;;  %v497_v3 = vadd.f32 %v2802_v1, %v443_v55  ;;  %v488_v4 = vpop.f32.mrb[11].mxu1  ;;  %v584_v55 = vpack.c.bf16 %v581_v53, %v580_v52 }
 0x4bb   :  { %v500_v5 = vsub.f32 0.0, %v486_v63  ;;  %v489_v6 = vadd.f32 %v488_v4, %v441_v62 }
 0x4bc   :  { %v508_v7 = vmul.f32 1.442695, %v502_v2  ;;  %v503_v8 = vsub.f32 0.0, %v497_v3  ;;  %2807 = vmatprep.mubr.msk.bf16.mxu0 %vm444_vm4, %v584_v55 }
 0x4bd   :  { %v504_v9 = vmul.f32 1.442695, %v500_v5  ;;  %v501_v10 = vsub.f32 0.0, %v489_v6 }
 0x4be   :  { %3052 = vpow2.f32 %v508_v7  ;;  %v510_v12 = vmul.f32 1.442695, %v503_v8  ;;  %v524_v7 = vld [vmem:[#allocation6 + $0x90] sm:$0x1] }
 0x4bf   :  { %3054 = vpow2.f32 %v504_v9  ;;  %v506_v13 = vmul.f32 1.442695, %v501_v10  ;;  %v525_v10 = vld [vmem:[#allocation6 + $0x98] sm:$0x1] }
 0x4c0   :  { %3056 = vpow2.f32 %v510_v12 }
 0x4c1   :  { %3058 = vpow2.f32 %v506_v13 }
 0x4c8   :  { %v3053_v14 = vpop.eup %3052 }
 0x4c9   :  { %v3055_v15 = vpop.eup %3054  ;;  %v514_v16 = vadd.f32 1.0, %v3053_v14 }
 0x4ca   :  { %v3057_v17 = vpop.eup %3056  ;;  %v512_v18 = vadd.f32 1.0, %v3055_v15 }
 0x4cb   :  { %v3059_v19 = vpop.eup %3058  ;;  %3060 = vrcp.f32 %v514_v16  ;;  %v515_v20 = vadd.f32 1.0, %v3057_v17 }
 0x4cc   :  { %3062 = vrcp.f32 %v512_v18  ;;  %v513_v21 = vadd.f32 1.0, %v3059_v19 }
 0x4cd   :  { %3064 = vrcp.f32 %v515_v20 }
 0x4ce   :  { %3066 = vrcp.f32 %v513_v21 }
 0x4d5   :  { %v3061_v22 = vpop.eup %3060 }
 0x4d6   :  { %v3063_v23 = vpop.eup %3062  ;;  %v522_v27 = vmul.f32 %v3061_v22, %v494_v60 }
 0x4d7   :  { %v3065_v24 = vpop.eup %3064  ;;  %v520_v25 = vmul.f32 %v3063_v23, %v486_v63 }
 0x4d8   :  { %v3067_v26 = vpop.eup %3066  ;;  %v523_v30 = vmul.f32 %v3065_v24, %v497_v3  ;;  %v537_v35 = vmul.f32 %v522_v27, %v522_v27 }
 0x4d9   :  { %v521_v28 = vmul.f32 %v3067_v26, %v489_v6  ;;  %v535_v29 = vmul.f32 %v520_v25, %v520_v25 }
 0x4da   :  { %v538_v41 = vmul.f32 %v523_v30, %v523_v30 }
 0x4db   :  { %v526_v33 = vadd.f32 %v521_v28, %v520_v25  ;;  %v536_v34 = vmul.f32 %v521_v28, %v521_v28 }
 0x4dd   :  { %v527_v39 = vadd.f32 %v526_v33, %v522_v27  ;;  %v539_v40 = vadd.f32 %v536_v34, %v535_v29  ;;  %v582_v29 = vld [vmem:[#allocation6 + $0xb0] sm:$0xff]  ;;  %v583_v33 = vld [vmem:[#allocation6 + $0xb8] sm:$0xff] }
 0x4de   :  { %v585_v34 = vpack.c.bf16 %v583_v33, %v582_v29 }
 0x4df   :  { %v540_v42 = vadd.f32 %v539_v40, %v537_v35  ;;  %v528_v43 = vadd.f32 %v527_v39, %v523_v30  ;;  %v589_v40 = vld [vmem:[#allocation6 + $0xc8] sm:$0xff] }
 0x4e1   :  { %v529_v44 = vrot.slane %v528_v43, 4  ;;  %v541_v45 = vadd.f32 %v540_v42, %v538_v41 }
 0x4e3   :  { %v530_v46 = vadd.f32 %v529_v44, %v528_v43  ;;  %v542_v47 = vrot.slane %v541_v45, 4 }
 0x4e5   :  { %v531_v48 = vrot.slane %v530_v46, 2  ;;  %v543_v49 = vadd.f32 %v542_v47, %v541_v45 }
 0x4e7   :  { %v532_v51 = vadd.f32 %v531_v48, %v530_v46  ;;  %v544_v54 = vrot.slane %v543_v49, 2 }
 0x4e9   :  { %v533_v56 = vrot.slane %v532_v51, 1  ;;  %v545_v57 = vadd.f32 %v544_v54, %v543_v49 }
 0x4eb   :  { %v534_v58 = vadd.f32 %v533_v56, %v532_v51  ;;  %v546_v59 = vrot.slane %v545_v57, 1 }
 0x4ed   :  { %548 = vrot.lane.b32.xlu1 %v534_v58, %s3399_s2  ;;  %v547_v50 = vadd.f32 %v546_v59, %v545_v57 }
 0x4f1   :  { %551 = vrot.lane.b32.xlu1 %v547_v50, %s3399_s2 }
 0x55f   :  { %v549_v60 = vpop.permute.xlu1 %548 }
 0x560   :  { %v550_v61 = vadd.f32 %v549_v60, %v534_v58 }
 0x562   :  { %v554_v62 = vmul.f32 0.015625, %v550_v61 }
 0x563   :  { %v552_v63 = vpop.permute.xlu1 %551 }
 0x564   :  { %v553_v1 = vadd.f32 %v552_v63, %v547_v50  ;;  %v556_v2 = vmul.f32 %v554_v62, %v554_v62 }
 0x566   :  { %v555_v3 = vmul.f32 0.015625, %v553_v1 }
 0x568   :  { %v557_v4 = vsub.f32 %v555_v3, %v556_v2 }
 0x56a   :  { %v558_v5 = vmax.f32 %v557_v4, 0.0 }
 0x56c   :  { %v559_v6 = vadd.f32 1e-05, %v558_v5 }
 0x56e   :  { %3068 = vrsqrt.f32 %v559_v6 }
 0x578   :  { %v3069_v8 = vpop.eup %3068 }
 0x579   :  { %v561_v9 = vmul.f32 %v3069_v8, %v524_v7 }
 0x57b   :  { %v562_v12 = vmul.f32 %v561_v9, %v554_v62  ;;  %v567_v13 = vrot.slane %v561_v9, %v3489_v32 }
 0x57d   :  { %v563_v14 = vsub.f32 %v525_v10, %v562_v12  ;;  %v568_v15 = vmul.f32 %v567_v13, %v520_v25  ;;  %v569_v16 = vmul.f32 %v567_v13, %v521_v28  ;;  %v570_v18 = vmul.f32 %v567_v13, %v522_v27  ;;  %v590_v25 = vld [vmem:[#allocation6 + $0xd0] sm:$0xff]  ;;  %v588_v27 = vld [vmem:[#allocation6 + $0xc0] sm:$0xff] }
 0x57e   :  { %v571_v19 = vmul.f32 %v567_v13, %v523_v30  ;;  %v591_v30 = vld [vmem:[#allocation6 + $0xd8] sm:$0xff] }
 0x57f   :  { %v575_v17 = vrot.slane %v563_v14, %v3489_v32 }
 0x581   :  { %v576_v20 = vadd.f32 %v575_v17, %v568_v15  ;;  %v577_v21 = vadd.f32 %v575_v17, %v569_v16  ;;  %v578_v22 = vadd.f32 %v575_v17, %v570_v18  ;;  %v579_v23 = vadd.f32 %v575_v17, %v571_v19 }
 0x583   :  { %v586_v24 = vpack.c.bf16 %v577_v21, %v576_v20  ;;  %v587_v26 = vpack.c.bf16 %v579_v23, %v578_v22 }
 0x585   :  { %2803 = vmatprep.subr.bf16.mxu0 %v586_v24 }
 0x586   :  { %2804 = vmatpush3.bf16.msra.mxu0 %v586_v24 }
 0x587   :  { %2805 = vmatprep.subr.bf16.mxu0 %v587_v26 }
 0x58a   :  { %2806 = vmatpush3.bf16.msra.mxu0 %v587_v26 }
 0x58b   :  { %2819 = vmatprep.subr.bf16.mxu0 %v3396_v0 }
 0x58d   :  { %2808 = vmatmul.mubr.msk.bf16.vlgmr.msra.gmra.mrb[12].mxu0 %vm444_vm4, %v585_v34 }
 0x58e   :  { %2835 = vmatprep.mubr.msk.bf16.mxu0 %vm3397_vm0, %v3396_v0 }
 0x660   :  { %v2809_v28 = vpop.f32.mrb[12].mxu0 }
 0x661   :  { %v641_v35 = vadd.f32 %v2809_v28, %v590_v25  ;;  %v632_v39 = vpop.f32.mrb[13].mxu0 }
 0x662   :  { %v633_v41 = vadd.f32 %v632_v39, %v588_v27  ;;  %v2810_v42 = vpop.f32.mrb[14].mxu0 }
 0x663   :  { %v649_v43 = vsub.f32 0.0, %v641_v35  ;;  %v644_v44 = vadd.f32 %v2810_v42, %v591_v30  ;;  %v635_v45 = vpop.f32.mrb[15].mxu0 }
 0x664   :  { %v647_v46 = vsub.f32 0.0, %v633_v41  ;;  %v636_v47 = vadd.f32 %v635_v45, %v589_v40  ;;  %v671_v45 = vld [vmem:[#allocation6 + $0xe0] sm:$0x1] }
 0x665   :  { %v655_v48 = vmul.f32 1.442695, %v649_v43  ;;  %v650_v49 = vsub.f32 0.0, %v644_v44 }
 0x666   :  { %v651_v51 = vmul.f32 1.442695, %v647_v46  ;;  %v648_v54 = vsub.f32 0.0, %v636_v47 }
 0x667   :  { %3070 = vpow2.f32 %v655_v48  ;;  %v657_v56 = vmul.f32 1.442695, %v650_v49  ;;  %v672_v48 = vld [vmem:[#allocation6 + $0xe8] sm:$0x1] }
 0x668   :  { %3072 = vpow2.f32 %v651_v51  ;;  %v653_v57 = vmul.f32 1.442695, %v648_v54 }
 0x669   :  { %3074 = vpow2.f32 %v657_v56 }
 0x66a   :  { %3076 = vpow2.f32 %v653_v57 }
 0x671   :  { %v3071_v58 = vpop.eup %3070 }
 0x672   :  { %v3073_v59 = vpop.eup %3072  ;;  %v661_v50 = vadd.f32 1.0, %v3071_v58 }
 0x673   :  { %v3075_v52 = vpop.eup %3074  ;;  %v659_v53 = vadd.f32 1.0, %v3073_v59  ;;  %v191_v59 = vld [vmem:[#allocation4 + $0x1d0] sm:$0xff] }
 0x674   :  { %v3077_v55 = vpop.eup %3076  ;;  %3078 = vrcp.f32 %v661_v50  ;;  %v662_v60 = vadd.f32 1.0, %v3075_v52 }
 0x675   :  { %3080 = vrcp.f32 %v659_v53  ;;  %v660_v61 = vadd.f32 1.0, %v3077_v55 }
 0x676   :  { %3082 = vrcp.f32 %v662_v60 }
 0x677   :  { %3084 = vrcp.f32 %v660_v61 }
 0x67e   :  { %v3079_v62 = vpop.eup %3078 }
 0x67f   :  { %v3081_v63 = vpop.eup %3080  ;;  %v669_v4 = vmul.f32 %v3079_v62, %v641_v35 }
 0x680   :  { %v3083_v1 = vpop.eup %3082  ;;  %v667_v2 = vmul.f32 %v3081_v63, %v633_v41  ;;  %v3511_v63 = vadd.f32 %v3484_v11, %v191_v59  ;;  %v792_v11 = vld [vmem:[#allocation4 + $0x40] sm:$0xff]  ;;  %v857_v59 = vld [vmem:[#allocation6 + $0x118] sm:$0xff] }
 0x681   :  { %v3085_v3 = vpop.eup %3084  ;;  %v670_v7 = vmul.f32 %v3083_v1, %v644_v44  ;;  %v684_v10 = vmul.f32 %v669_v4, %v669_v4  ;;  %v727_v1 = vld [vmem:[#allocation6 + $0xf0] sm:$0xff] }
 0x682   :  { %v668_v5 = vmul.f32 %v3085_v3, %v636_v47  ;;  %v682_v6 = vmul.f32 %v667_v2, %v667_v2  ;;  %v728_v3 = vld [vmem:[#allocation6 + $0xf8] sm:$0xff] }
 0x683   :  { %v685_v14 = vmul.f32 %v670_v7, %v670_v7 }
 0x684   :  { %v673_v8 = vadd.f32 %v668_v5, %v667_v2  ;;  %v683_v9 = vmul.f32 %v668_v5, %v668_v5 }
 0x686   :  { %v674_v12 = vadd.f32 %v673_v8, %v669_v4  ;;  %v686_v13 = vadd.f32 %v683_v9, %v682_v6  ;;  %v729_v6 = vpack.c.bf16 %v728_v3, %v727_v1  ;;  %v793_v9 = vld [vmem:[#allocation4 + $0x50] sm:$0xff] }
 0x688   :  { %v687_v15 = vadd.f32 %v686_v13, %v684_v10  ;;  %v675_v16 = vadd.f32 %v674_v12, %v670_v7  ;;  %v3521_v10 = vpack.c.bf16 %v793_v9, %v792_v11  ;;  %v795_v12 = vld [vmem:[#allocation4 + $0x70] sm:$0xff] }
 0x68a   :  { %v676_v17 = vrot.slane %v675_v16, 4  ;;  %v688_v18 = vadd.f32 %v687_v15, %v685_v14  ;;  %v796_v14 = vld [vmem:[#allocation4 + $0x80] sm:$0xff]  ;;  %v797_v15 = vld [vmem:[#allocation4 + $0x90] sm:$0xff] }
 0x68c   :  { %v677_v19 = vadd.f32 %v676_v17, %v675_v16  ;;  %v689_v20 = vrot.slane %v688_v18, 4  ;;  %v3529_v16 = vpack.c.bf16 %v797_v15, %v796_v14  ;;  %v798_v17 = vld [vmem:[#allocation4 + $0xa0] sm:$0xff] }
 0x68e   :  { %v678_v21 = vrot.slane %v677_v19, 2  ;;  %v690_v22 = vadd.f32 %v689_v20, %v688_v18  ;;  %v799_v18 = vld [vmem:[#allocation4 + $0xb0] sm:$0xff]  ;;  %v800_v20 = vld [vmem:[#allocation4 + $0xc0] sm:$0xff] }
 0x690   :  { %v679_v23 = vadd.f32 %v678_v21, %v677_v19  ;;  %v691_v24 = vrot.slane %v690_v22, 2  ;;  %v3533_v19 = vpack.c.bf16 %v799_v18, %v798_v17  ;;  %v801_v21 = vld [vmem:[#allocation4 + $0xd0] sm:$0xff] }
 0x692   :  { %v680_v26 = vrot.slane %v679_v23, 1  ;;  %v692_v29 = vadd.f32 %v691_v24, %v690_v22  ;;  %v3537_v22 = vpack.c.bf16 %v801_v21, %v800_v20  ;;  %v803_v24 = vld [vmem:[#allocation4 + $0xf0] sm:$0xff] }
 0x694   :  { %v681_v33 = vadd.f32 %v680_v26, %v679_v23  ;;  %v693_v34 = vrot.slane %v692_v29, 1  ;;  %v802_v23 = vld [vmem:[#allocation4 + $0xe0] sm:$0xff] }
 0x695   :  { %v3541_v26 = vpack.c.bf16 %v803_v24, %v802_v23 }
 0x696   :  { %695 = vrot.lane.b32.xlu0 %v681_v33, %s3399_s2  ;;  %v694_v25 = vadd.f32 %v693_v34, %v692_v29  ;;  %v804_v29 = vld [vmem:[#allocation4 + $0x100] sm:$0xff] }
 0x698   :  { %698 = vrot.lane.b32.xlu1 %v694_v25, %s3399_s2 }
 0x708   :  { %v696_v27 = vpop.permute.xlu0 %695 }
 0x709   :  { %v697_v28 = vadd.f32 %v696_v27, %v681_v33  ;;  %v805_v33 = vld [vmem:[#allocation4 + $0x110] sm:$0xff] }
 0x70a   :  { %v699_v30 = vpop.permute.xlu1 %698  ;;  %v3545_v34 = vpack.c.bf16 %v805_v33, %v804_v29 }
 0x70b   :  { %v701_v35 = vmul.f32 0.015625, %v697_v28  ;;  %v700_v39 = vadd.f32 %v699_v30, %v694_v25  ;;  %v732_v25 = vld [vmem:[#allocation6 + $0x100] sm:$0xff]  ;;  %v733_v28 = vld [vmem:[#allocation6 + $0x108] sm:$0xff] }
 0x70d   :  { %v703_v40 = vmul.f32 %v701_v35, %v701_v35  ;;  %v702_v41 = vmul.f32 0.015625, %v700_v39 }
 0x70f   :  { %v704_v42 = vsub.f32 %v702_v41, %v703_v40 }
 0x711   :  { %v705_v43 = vmax.f32 %v704_v42, 0.0 }
 0x713   :  { %v706_v44 = vadd.f32 1e-05, %v705_v43 }
 0x715   :  { %3086 = vrsqrt.f32 %v706_v44 }
 0x71f   :  { %v3087_v46 = vpop.eup %3086 }
 0x720   :  { %v708_v47 = vmul.f32 %v3087_v46, %v671_v45 }
 0x722   :  { %v709_v49 = vmul.f32 %v708_v47, %v701_v35  ;;  %v714_v51 = vrot.slane %v708_v47, %v3489_v32 }
 0x724   :  { %v710_v54 = vsub.f32 %v672_v48, %v709_v49  ;;  %v715_v56 = vmul.f32 %v714_v51, %v667_v2  ;;  %v716_v57 = vmul.f32 %v714_v51, %v668_v5  ;;  %v717_v53 = vmul.f32 %v714_v51, %v669_v4  ;;  %v790_v4 = vld [vmem:[#allocation4 + $0x20] sm:$0xff] }
 0x725   :  { %v718_v55 = vmul.f32 %v714_v51, %v670_v7  ;;  %v862_v5 = vpack.c.bf16 %v3476_v38, %v3511_v63  ;;  %v791_v7 = vld [vmem:[#allocation4 + $0x30] sm:$0xff]  ;;  %v794_v38 = vld [vmem:[#allocation4 + $0x60] sm:$0xff] }
 0x726   :  { %v722_v58 = vrot.slane %v710_v54, %v3489_v32  ;;  %v3517_v8 = vpack.c.bf16 %v791_v7, %v790_v4  ;;  %v3525_v13 = vpack.c.bf16 %v795_v12, %v794_v38  ;;  %v867_v7 = vld [vmem:[#allocation6 + $0x148] sm:$0xff]  ;;  %v865_v38 = vld [vmem:[#allocation6 + $0x138] sm:$0xff] }
 0x728   :  { %v723_v50 = vadd.f32 %v722_v58, %v715_v56  ;;  %v724_v52 = vadd.f32 %v722_v58, %v716_v57  ;;  %v725_v61 = vadd.f32 %v722_v58, %v717_v53  ;;  %v726_v62 = vadd.f32 %v722_v58, %v718_v55  ;;  %2820 = vmatpush3.bf16.msra.mxu0 %v3517_v8  ;;  %v856_v58 = vld [vmem:[#allocation6 + $0x110] sm:$0xff] }
 0x729   :  { %2821 = vmatprep.subr.bf16.mxu0 %v3396_v0 }
 0x72a   :  { %v730_v60 = vpack.c.bf16 %v724_v52, %v723_v50  ;;  %v731_v2 = vpack.c.bf16 %v726_v62, %v725_v61  ;;  %v860_v50 = vpack.c.bf16 %v857_v59, %v856_v58  ;;  %v859_v61 = vld [vmem:[#allocation6 + $0x128] sm:$0xff] }
 0x72b   :  { %v950_v58 = vld [vmem:[#allocation6 + $0x168] sm:$0xff] }
 0x72c   :  { %2812 = vmatpush3.bf16.msra.mxu1 %v730_v60  ;;  %2822 = vmatpush3.bf16.msra.mxu0 %v3521_v10  ;;  %v858_v60 = vld [vmem:[#allocation6 + $0x120] sm:$0xff] }
 0x72d   :  { %2813 = vmatprep.subr.bf16.mxu1 %v3396_v0  ;;  %2823 = vmatprep.subr.bf16.mxu0 %v3396_v0  ;;  %v861_v3 = vpack.c.bf16 %v859_v61, %v858_v60  ;;  %v955_v60 = vld [vmem:[#allocation6 + $0x170] sm:$0xff] }
 0x730   :  { %2814 = vmatpush3.bf16.msra.mxu1 %v731_v2  ;;  %2824 = vmatpush3.bf16.msra.mxu0 %v3525_v13  ;;  %v948_v2 = vld [vmem:[#allocation6 + $0x158] sm:$0xff] }
 0x731   :  { %2839 = vmatprep.subr.bf16.mxu1 %v862_v5  ;;  %2825 = vmatprep.subr.bf16.mxu0 %v3396_v0 }
 0x733   :  { %2816 = vmatmul.mubr.msk.bf16.vlgmr.msra.gmra.mrb[12].mxu1 %vm444_vm4, %v729_v6  ;;  %v864_v6 = vld [vmem:[#allocation6 + $0x130] sm:$0xff] }
 0x734   :  { %2840 = vmatpush3.bf16.msra.mxu1 %v862_v5  ;;  %2826 = vmatpush3.bf16.msra.mxu0 %v3529_v16  ;;  %v866_v5 = vld [vmem:[#allocation6 + $0x140] sm:$0xff] }
 0x735   :  { %2827 = vmatprep.subr.bf16.mxu0 %v3396_v0  ;;  %2843 = vmatprep.mubr.msk.bf16.mxu1 %vm444_vm4, %v860_v50  ;;  %v1038_v50 = vld [vmem:[#allocation6 + $0x190] sm:$0xff] }
 0x738   :  { %2828 = vmatpush3.bf16.msra.mxu0 %v3533_v19 }
 0x739   :  { %2829 = vmatprep.subr.bf16.mxu0 %v3396_v0 }
 0x73c   :  { %2830 = vmatpush3.bf16.msra.mxu0 %v3537_v22 }
 0x73d   :  { %2831 = vmatprep.subr.bf16.mxu0 %v3396_v0 }
 0x740   :  { %2832 = vmatpush3.bf16.msra.mxu0 %v3541_v26 }
 0x741   :  { %2833 = vmatprep.subr.bf16.mxu0 %v3396_v0 }
 0x744   :  { %2834 = vmatpush3.bf16.msra.mxu0 %v3545_v34 }
 0x745   :  { %1188 = vmatprep.subr.bf16.mxu0 %v3468_v31 }
 0x806   :  { %v771_v27 = vpop.f32.mrb[12].mxu1 }
 0x807   :  { %v772_v30 = vadd.f32 %v771_v27, %v732_v25  ;;  %v2817_v35 = vpop.f32.mrb[13].mxu1 }
 0x808   :  { %v774_v39 = vpop.f32.mrb[14].mxu1 }
 0x809   :  { %v778_v40 = vsub.f32 0.0, %v772_v30  ;;  %v775_v41 = vadd.f32 %v774_v39, %v733_v28  ;;  %v2818_v42 = vpop.f32.mrb[15].mxu1 }
 0x80b   :  { %v780_v43 = vmul.f32 1.442695, %v778_v40  ;;  %v779_v44 = vsub.f32 0.0, %v775_v41 }
 0x80d   :  { %3088 = vpow2.f32 %v780_v43  ;;  %v782_v45 = vmul.f32 1.442695, %v779_v44 }
 0x80f   :  { %3090 = vpow2.f32 %v782_v45 }
 0x817   :  { %v3089_v46 = vpop.eup %3088 }
 0x818   :  { %v784_v47 = vadd.f32 1.0, %v3089_v46 }
 0x819   :  { %v3091_v48 = vpop.eup %3090 }
 0x81a   :  { %3092 = vrcp.f32 %v784_v47  ;;  %v785_v49 = vadd.f32 1.0, %v3091_v48 }
 0x81c   :  { %3094 = vrcp.f32 %v785_v49 }
 0x824   :  { %v3093_v31 = vpop.eup %3092 }
 0x825   :  { %v788_v54 = vmul.f32 %v3093_v31, %v772_v30 }
 0x826   :  { %v3095_v51 = vpop.eup %3094 }
 0x827   :  { %v789_v56 = vmul.f32 %v3095_v51, %v775_v41 }
 0x829   :  { %v806_v57 = vpack.c.bf16 %v789_v56, %v788_v54 }
 0x82b   :  { %2836 = vmatmul.mubr.bf16.vlgmr.msra.gmra.mrb[16].mxu0 %v806_v57  ;;  %v949_v57 = vld [vmem:[#allocation6 + $0x160] sm:$0xff] }
 0x82c   :  { %1189 = vmatpush1.bf16.msra.mxu0 %v3470_v36  ;;  %1220 = vmatprep.mubr.bf16.mxu0 %v3398_v37  ;;  %v947_v36 = vld [vmem:[#allocation6 + $0x150] sm:$0xff]  ;;  %v952_v59 = vpack.c.bf16 %v950_v58, %v949_v57  ;;  %v1047_v57 = vld [vmem:[#allocation6 + $0x1b8] sm:$0xff] }
 0x82d   :  { %v951_v37 = vpack.c.bf16 %v948_v2, %v947_v36  ;;  %v956_v36 = vld [vmem:[#allocation6 + $0x178] sm:$0xff] }
 0x8fe   :  { %v849_v52 = vpop.f32.mrb[16].mxu0 }
 0x8ff   :  { %v2837_v53 = vpop.f32.mrb[17].mxu0 }
 0x900   :  { %v852_v55 = vpop.f32.mrb[18].mxu0 }
 0x901   :  { %v863_v62 = vpack.c.bf16 %v852_v55, %v849_v52  ;;  %v2838_v1 = vpop.f32.mrb[19].mxu0  ;;  %v1039_v52 = vld [vmem:[#allocation6 + $0x198] sm:$0xff]  ;;  %v957_v55 = vld [vmem:[#allocation6 + $0x180] sm:$0xff] }
 0x902   :  { %v1042_v53 = vpack.c.bf16 %v1039_v52, %v1038_v50 }
 0x903   :  { %2841 = vmatprep.subr.bf16.mxu1 %v863_v62 }
 0x904   :  { %2842 = vmatpush3.bf16.msra.mxu1 %v863_v62  ;;  %v958_v62 = vld [vmem:[#allocation6 + $0x188] sm:$0xff] }
 0x907   :  { %2844 = vmatmul.mubr.msk.bf16.vlgmr.msra.gmra.mrb[16].mxu1 %vm444_vm4, %v861_v3 }
 0x908   :  { %2851 = vmatprep.mubr.msk.bf16.mxu1 %vm444_vm4, %v951_v37 }
 0x9da   :  { %v2845_v4 = vpop.f32.mrb[16].mxu1 }
 0x9db   :  { %v917_v11 = vadd.f32 %v2845_v4, %v866_v5  ;;  %v908_v9 = vpop.f32.mrb[17].mxu1 }
 0x9dc   :  { %v909_v12 = vadd.f32 %v908_v9, %v864_v6  ;;  %v2846_v14 = vpop.f32.mrb[18].mxu1 }
 0x9dd   :  { %v925_v15 = vsub.f32 0.0, %v917_v11  ;;  %v920_v17 = vadd.f32 %v2846_v14, %v867_v7  ;;  %v911_v18 = vpop.f32.mrb[19].mxu1 }
 0x9de   :  { %v923_v20 = vsub.f32 0.0, %v909_v12  ;;  %v912_v21 = vadd.f32 %v911_v18, %v865_v38 }
 0x9df   :  { %v931_v23 = vmul.f32 1.442695, %v925_v15  ;;  %v926_v24 = vsub.f32 0.0, %v920_v17 }
 0x9e0   :  { %v927_v29 = vmul.f32 1.442695, %v923_v20  ;;  %v924_v33 = vsub.f32 0.0, %v912_v21 }
 0x9e1   :  { %3096 = vpow2.f32 %v931_v23  ;;  %v933_v25 = vmul.f32 1.442695, %v926_v24 }
 0x9e2   :  { %3098 = vpow2.f32 %v927_v29  ;;  %v929_v27 = vmul.f32 1.442695, %v924_v33 }
 0x9e3   :  { %3100 = vpow2.f32 %v933_v25 }
 0x9e4   :  { %3102 = vpow2.f32 %v929_v27 }
 0x9eb   :  { %v3097_v28 = vpop.eup %3096 }
 0x9ec   :  { %v3099_v30 = vpop.eup %3098  ;;  %v937_v35 = vadd.f32 1.0, %v3097_v28 }
 0x9ed   :  { %v3101_v39 = vpop.eup %3100  ;;  %v935_v40 = vadd.f32 1.0, %v3099_v30 }
 0x9ee   :  { %v3103_v41 = vpop.eup %3102  ;;  %3104 = vrcp.f32 %v937_v35  ;;  %v938_v42 = vadd.f32 1.0, %v3101_v39 }
 0x9ef   :  { %3106 = vrcp.f32 %v935_v40  ;;  %v936_v43 = vadd.f32 1.0, %v3103_v41 }
 0x9f0   :  { %3108 = vrcp.f32 %v938_v42 }
 0x9f1   :  { %3110 = vrcp.f32 %v936_v43 }
 0x9f8   :  { %v3105_v44 = vpop.eup %3104 }
 0x9f9   :  { %v3107_v45 = vpop.eup %3106  ;;  %v945_v48 = vmul.f32 %v3105_v44, %v917_v11 }
 0x9fa   :  { %v3109_v46 = vpop.eup %3108  ;;  %v943_v31 = vmul.f32 %v3107_v45, %v909_v12  ;;  %v1040_v45 = vld [vmem:[#allocation6 + $0x1a0] sm:$0xff] }
 0x9fb   :  { %v3111_v47 = vpop.eup %3110  ;;  %v946_v49 = vmul.f32 %v3109_v46, %v920_v17  ;;  %v1041_v46 = vld [vmem:[#allocation6 + $0x1a8] sm:$0xff] }
 0x9fc   :  { %v944_v51 = vmul.f32 %v3111_v47, %v912_v21  ;;  %v1043_v47 = vpack.c.bf16 %v1041_v46, %v1040_v45 }
 0x9fd   :  { %v954_v54 = vpack.c.bf16 %v946_v49, %v945_v48  ;;  %v1048_v48 = vld [vmem:[#allocation6 + $0x1c0] sm:$0xff]  ;;  %v1046_v49 = vld [vmem:[#allocation6 + $0x1b0] sm:$0xff] }
 0x9fe   :  { %v953_v56 = vpack.c.bf16 %v944_v51, %v943_v31  ;;  %v1049_v51 = vld [vmem:[#allocation6 + $0x1c8] sm:$0xff] }
 0xa00   :  { %2847 = vmatprep.subr.bf16.mxu1 %v953_v56 }
 0xa01   :  { %2848 = vmatpush3.bf16.msra.mxu1 %v953_v56 }
 0xa02   :  { %2849 = vmatprep.subr.bf16.mxu1 %v954_v54 }
 0xa05   :  { %2850 = vmatpush3.bf16.msra.mxu1 %v954_v54 }
 0xa08   :  { %2852 = vmatmul.mubr.msk.bf16.vlgmr.msra.gmra.mrb[20].mxu1 %vm444_vm4, %v952_v59 }
 0xa09   :  { %2859 = vmatprep.mubr.msk.bf16.mxu1 %vm444_vm4, %v1042_v53 }
 0xadb   :  { %v2853_v61 = vpop.f32.mrb[20].mxu1 }
 0xadc   :  { %v1008_v1 = vadd.f32 %v2853_v61, %v957_v55  ;;  %v999_v3 = vpop.f32.mrb[21].mxu1 }
 0xadd   :  { %v1000_v2 = vadd.f32 %v999_v3, %v955_v60  ;;  %v2854_v37 = vpop.f32.mrb[22].mxu1 }
 0xade   :  { %v1016_v5 = vsub.f32 0.0, %v1008_v1  ;;  %v1011_v6 = vadd.f32 %v2854_v37, %v958_v62  ;;  %v1002_v4 = vpop.f32.mrb[23].mxu1 }
 0xadf   :  { %v1014_v7 = vsub.f32 0.0, %v1000_v2  ;;  %v1003_v11 = vadd.f32 %v1002_v4, %v956_v36 }
 0xae0   :  { %v1022_v9 = vmul.f32 1.442695, %v1016_v5  ;;  %v1017_v38 = vsub.f32 0.0, %v1011_v6 }
 0xae1   :  { %v1018_v12 = vmul.f32 1.442695, %v1014_v7  ;;  %v1015_v14 = vsub.f32 0.0, %v1003_v11 }
 0xae2   :  { %3112 = vpow2.f32 %v1022_v9  ;;  %v1024_v15 = vmul.f32 1.442695, %v1017_v38 }
 0xae3   :  { %3114 = vpow2.f32 %v1018_v12  ;;  %v1020_v17 = vmul.f32 1.442695, %v1015_v14 }
 0xae4   :  { %3116 = vpow2.f32 %v1024_v15 }
 0xae5   :  { %3118 = vpow2.f32 %v1020_v17 }
 0xaec   :  { %v3113_v18 = vpop.eup %3112 }
 0xaed   :  { %v3115_v20 = vpop.eup %3114  ;;  %v1028_v21 = vadd.f32 1.0, %v3113_v18 }
 0xaee   :  { %v3117_v23 = vpop.eup %3116  ;;  %v1026_v24 = vadd.f32 1.0, %v3115_v20 }
 0xaef   :  { %v3119_v29 = vpop.eup %3118  ;;  %3120 = vrcp.f32 %v1028_v21  ;;  %v1029_v33 = vadd.f32 1.0, %v3117_v23 }
 0xaf0   :  { %3122 = vrcp.f32 %v1026_v24  ;;  %v1027_v25 = vadd.f32 1.0, %v3119_v29 }
 0xaf1   :  { %3124 = vrcp.f32 %v1029_v33  ;;  %v1129_v33 = vld [vmem:[#allocation6 + $0x1d0] sm:$0xff] }
 0xaf2   :  { %3126 = vrcp.f32 %v1027_v25  ;;  %v1130_v25 = vpack.c.bf16 %v1129_v33, %v1129_v33 }
 0xaf9   :  { %v3121_v27 = vpop.eup %3120 }
 0xafa   :  { %v3123_v28 = vpop.eup %3122  ;;  %v1036_v39 = vmul.f32 %v3121_v27, %v1008_v1  ;;  %v1133_v27 = vld [vmem:[#allocation6 + $0x1d8] sm:$0xff] }
 0xafb   :  { %v3125_v30 = vpop.eup %3124  ;;  %v1034_v41 = vmul.f32 %v3123_v28, %v1000_v2 }
 0xafc   :  { %v3127_v35 = vpop.eup %3126  ;;  %v1037_v40 = vmul.f32 %v3125_v30, %v1011_v6 }
 0xafd   :  { %v1035_v42 = vmul.f32 %v3127_v35, %v1003_v11 }
 0xafe   :  { %v1045_v43 = vpack.c.bf16 %v1037_v40, %v1036_v39 }
 0xaff   :  { %v1044_v44 = vpack.c.bf16 %v1035_v42, %v1034_v41 }
 0xb01   :  { %2855 = vmatprep.subr.bf16.mxu1 %v1044_v44 }
 0xb02   :  { %2856 = vmatpush3.bf16.msra.mxu1 %v1044_v44 }
 0xb03   :  { %2857 = vmatprep.subr.bf16.mxu1 %v1045_v43 }
 0xb06   :  { %2858 = vmatpush3.bf16.msra.mxu1 %v1045_v43 }
 0xb07   :  { %2863 = vmatprep.subr.bf16.mxu1 %v3396_v0 }
 0xb09   :  { %2860 = vmatmul.mubr.msk.bf16.vlgmr.msra.gmra.mrb[24].mxu1 %vm444_vm4, %v1043_v47  ;;  %v3318_v47 = vld [vmem:[#allocation2] sm:$0xff] }
 0xb0a   :  { %2867 = vmatprep.mubr.msk.bf16.mxu1 %vm3397_vm0, %v3396_v0 }
 0xbdc   :  { %v2861_v31 = vpop.f32.mrb[24].mxu1 }
 0xbdd   :  { %v1099_v54 = vadd.f32 %v2861_v31, %v1048_v48  ;;  %v1090_v56 = vpop.f32.mrb[25].mxu1  ;;  %v1229_v31 = vld [vmem:[#allocation6 + $0x1e0] sm:$0xff] }
 0xbde   :  { %v1091_v58 = vadd.f32 %v1090_v56, %v1046_v49  ;;  %v2862_v59 = vpop.f32.mrb[26].mxu1 }
 0xbdf   :  { %v1107_v50 = vsub.f32 0.0, %v1099_v54  ;;  %v1102_v52 = vadd.f32 %v2862_v59, %v1049_v51  ;;  %v1093_v53 = vpop.f32.mrb[27].mxu1  ;;  %v1230_v51 = vld [vmem:[#allocation6 + $0x1e8] sm:$0xff]  ;;  %v1232_v59 = vld [vmem:[#allocation6 + $0x1f8] sm:$0xff] }
 0xbe0   :  { %v1105_v55 = vsub.f32 0.0, %v1091_v58  ;;  %v1094_v60 = vadd.f32 %v1093_v53, %v1047_v57 }
 0xbe1   :  { %v1113_v61 = vmul.f32 1.442695, %v1107_v50  ;;  %v1108_v62 = vsub.f32 0.0, %v1102_v52 }
 0xbe2   :  { %v1109_v1 = vmul.f32 1.442695, %v1105_v55  ;;  %v1106_v3 = vsub.f32 0.0, %v1094_v60 }
 0xbe3   :  { %3128 = vpow2.f32 %v1113_v61  ;;  %v1115_v36 = vmul.f32 1.442695, %v1108_v62  ;;  %v1236_v61 = vld [vmem:[#allocation6 + $0x200] sm:$0xff] }
 0xbe4   :  { %3130 = vpow2.f32 %v1109_v1  ;;  %v1111_v2 = vmul.f32 1.442695, %v1106_v3  ;;  %v1239_v1 = vld [vmem:[#allocation6 + $0x218] sm:$0xff] }
 0xbe5   :  { %3132 = vpow2.f32 %v1115_v36 }
 0xbe6   :  { %3134 = vpow2.f32 %v1111_v2  ;;  %v1237_v2 = vld [vmem:[#allocation6 + $0x208] sm:$0xff] }
 0xbed   :  { %v3129_v37 = vpop.eup %3128 }
 0xbee   :  { %v3131_v5 = vpop.eup %3130  ;;  %v1119_v6 = vadd.f32 1.0, %v3129_v37 }
 0xbef   :  { %v3133_v4 = vpop.eup %3132  ;;  %v1117_v7 = vadd.f32 1.0, %v3131_v5 }
 0xbf0   :  { %v3135_v11 = vpop.eup %3134  ;;  %3136 = vrcp.f32 %v1119_v6  ;;  %v1120_v9 = vadd.f32 1.0, %v3133_v4 }
 0xbf1   :  { %3138 = vrcp.f32 %v1117_v7  ;;  %v1118_v38 = vadd.f32 1.0, %v3135_v11 }
 0xbf2   :  { %3140 = vrcp.f32 %v1120_v9 }
 0xbf3   :  { %3142 = vrcp.f32 %v1118_v38 }
 0xbfa   :  { %v3137_v12 = vpop.eup %3136 }
 0xbfb   :  { %v3139_v14 = vpop.eup %3138  ;;  %v1127_v18 = vmul.f32 %v3137_v12, %v1099_v54  ;;  %v1233_v54 = vpack.c.bf16 %v1230_v51, %v1229_v31 }
 0xbfc   :  { %v3141_v15 = vpop.eup %3140  ;;  %v1125_v21 = vmul.f32 %v3139_v14, %v1091_v58  ;;  %v1231_v58 = vld [vmem:[#allocation6 + $0x1f0] sm:$0xff] }
 0xbfd   :  { %v3143_v17 = vpop.eup %3142  ;;  %v1128_v20 = vmul.f32 %v3141_v15, %v1102_v52  ;;  %v1234_v55 = vpack.c.bf16 %v1232_v59, %v1231_v58 }
 0xbfe   :  { %v1126_v23 = vmul.f32 %v3143_v17, %v1094_v60  ;;  %v1238_v60 = vld [vmem:[#allocation6 + $0x210] sm:$0xff] }
 0xbff   :  { %v1132_v24 = vpack.c.bf16 %v1128_v20, %v1127_v18 }
 0xc00   :  { %v1131_v29 = vpack.c.bf16 %v1126_v23, %v1125_v21 }
 0xc02   :  { %2864 = vmatpush3.bf16.msra.mxu1 %v1131_v29 }
 0xc03   :  { %2865 = vmatprep.subr.bf16.mxu1 %v3396_v0 }
 0xc06   :  { %2866 = vmatpush3.bf16.msra.mxu1 %v1132_v24 }
 0xc09   :  { %2868 = vmatmul.mubr.msk.bf16.vlgmr.msra.gmra.mrb[28].mxu1 %vm444_vm4, %v1130_v25 }
 0xc0a   :  { %2873 = vmatprep.mubr.msk.bf16.mxu1 %vm131_vm3, %v1233_v54 }
 0xcdc   :  { %v1171_v28 = vpop.f32.mrb[28].mxu1 }
 0xcdd   :  { %v1172_v30 = vadd.f32 %v1171_v28, %v1133_v27  ;;  %v2869_v35 = vpop.f32.mrb[29].mxu1 }
 0xcde   :  { %v1174_v39 = vpop.f32.mrb[30].mxu1 }
 0xcdf   :  { %v1177_v40 = vsub.f32 0.0, %v1172_v30  ;;  %v2870_v41 = vpop.f32.mrb[31].mxu1 }
 0xce1   :  { %v1178_v42 = vmul.f32 1.442695, %v1177_v40 }
 0xce3   :  { %3144 = vpow2.f32 %v1178_v42 }
 0xced   :  { %v3145_v43 = vpop.eup %3144 }
 0xcee   :  { %v1180_v44 = vadd.f32 1.0, %v3145_v43 }
 0xcf0   :  { %3146 = vrcp.f32 %v1180_v44 }
 0xcfa   :  { %v3147_v45 = vpop.eup %3146 }
 0xcfb   :  { %v1182_v46 = vmul.f32 %v3147_v45, %v1172_v30 }
 0xcfd   :  { %v3562_v48 = vadd.f32 %v3318_v47, %v1182_v46 }
 0xcff   :  { %v1184_v49 = vpack.c.bf16 %v3562_v48, %v3562_v48 }
 0xd01   :  { %2643 = vmatmul.mubr.msk.bf16.vlgmr.msra.gmra.mrb[20].mxu0 %vm131_vm3, %v1184_v49 }
 0xdd4   :  { %v1222_v56 = vpop.f32.mrb[20].mxu0 }
 0xdd5   :  { %v1224_v57 = vpop.f32.mrb[21].mxu0 }
 0xdd6   :  { %v1235_v50 = vpack.c.bf16 %v1224_v57, %v1222_v56  ;;  %v1226_v52 = vpop.f32.mrb[22].mxu0 }
 0xdd7   :  { %v1227_v53 = vpop.f32.mrb[23].mxu0 }
 0xdd8   :  { %2871 = vmatprep.subr.bf16.mxu1 %v1235_v50 }
 0xdd9   :  { %2872 = vmatpush3.bf16.msra.mxu1 %v1235_v50 }
 0xddc   :  { %2874 = vmatmul.mubr.msk.bf16.vlgmr.msra.gmra.mrb[32].mxu1 %vm131_vm3, %v1234_v55 }
 0xeaf   :  { %v2875_v62 = vpop.f32.mrb[32].mxu1 }
 0xeb0   :  { %v1289_v3 = vadd.f32 %v2875_v62, %v1238_v60  ;;  %v1280_v36 = vpop.f32.mrb[33].mxu1 }
 0xeb1   :  { %v1281_v37 = vadd.f32 %v1280_v36, %v1236_v61  ;;  %v2876_v5 = vpop.f32.mrb[34].mxu1 }
 0xeb2   :  { %v1297_v6 = vsub.f32 0.0, %v1289_v3  ;;  %v1292_v4 = vadd.f32 %v2876_v5, %v1239_v1  ;;  %v1283_v7 = vpop.f32.mrb[35].mxu1 }
 0xeb3   :  { %v1295_v11 = vsub.f32 0.0, %v1281_v37  ;;  %v1284_v9 = vadd.f32 %v1283_v7, %v1237_v2  ;;  %v1375_v2 = vld [vmem:[#allocation6 + $0x230] sm:$0xff] }
 0xeb4   :  { %v1303_v38 = vmul.f32 1.442695, %v1297_v6  ;;  %v1298_v12 = vsub.f32 0.0, %v1292_v4 }
 0xeb5   :  { %v1299_v14 = vmul.f32 1.442695, %v1295_v11  ;;  %v1296_v15 = vsub.f32 0.0, %v1284_v9 }
 0xeb6   :  { %3148 = vpow2.f32 %v1303_v38  ;;  %v1305_v17 = vmul.f32 1.442695, %v1298_v12 }
 0xeb7   :  { %3150 = vpow2.f32 %v1299_v14  ;;  %v1301_v18 = vmul.f32 1.442695, %v1296_v15 }
 0xeb8   :  { %3152 = vpow2.f32 %v1305_v17 }
 0xeb9   :  { %3154 = vpow2.f32 %v1301_v18  ;;  %v1319_v18 = vld [vmem:[#allocation6 + $0x220] sm:$0x1] }
 0xec0   :  { %v3149_v20 = vpop.eup %3148 }
 0xec1   :  { %v3151_v21 = vpop.eup %3150  ;;  %v1309_v23 = vadd.f32 1.0, %v3149_v20 }
 0xec2   :  { %v3153_v24 = vpop.eup %3152  ;;  %v1307_v29 = vadd.f32 1.0, %v3151_v21 }
 0xec3   :  { %v3155_v33 = vpop.eup %3154  ;;  %3156 = vrcp.f32 %v1309_v23  ;;  %v1310_v25 = vadd.f32 1.0, %v3153_v24  ;;  %v1320_v23 = vld [vmem:[#allocation6 + $0x228] sm:$0x1] }
 0xec4   :  { %3158 = vrcp.f32 %v1307_v29  ;;  %v1308_v27 = vadd.f32 1.0, %v3155_v33 }
 0xec5   :  { %3160 = vrcp.f32 %v1310_v25 }
 0xec6   :  { %3162 = vrcp.f32 %v1308_v27 }
 0xecd   :  { %v3157_v28 = vpop.eup %3156 }
 0xece   :  { %v3159_v30 = vpop.eup %3158  ;;  %v1317_v41 = vmul.f32 %v3157_v28, %v1289_v3 }
 0xecf   :  { %v3161_v35 = vpop.eup %3160  ;;  %v1315_v39 = vmul.f32 %v3159_v30, %v1281_v37  ;;  %v1376_v37 = vld [vmem:[#allocation6 + $0x238] sm:$0xff] }
 0xed0   :  { %v3163_v40 = vpop.eup %3162  ;;  %v1318_v44 = vmul.f32 %v3161_v35, %v1292_v4  ;;  %v1332_v47 = vmul.f32 %v1317_v41, %v1317_v41  ;;  %v1379_v5 = vpack.c.bf16 %v1376_v37, %v1375_v2 }
 0xed1   :  { %v1316_v42 = vmul.f32 %v3163_v40, %v1284_v9  ;;  %v1330_v43 = vmul.f32 %v1315_v39, %v1315_v39 }
 0xed2   :  { %v1333_v51 = vmul.f32 %v1318_v44, %v1318_v44  ;;  %2881 = vmatprep.mubr.msk.bf16.mxu0 %vm444_vm4, %v1379_v5 }
 0xed3   :  { %v1321_v45 = vadd.f32 %v1316_v42, %v1315_v39  ;;  %v1331_v46 = vmul.f32 %v1316_v42, %v1316_v42 }
 0xed5   :  { %v1322_v49 = vadd.f32 %v1321_v45, %v1317_v41  ;;  %v1334_v31 = vadd.f32 %v1331_v46, %v1330_v43 }
 0xed7   :  { %v1335_v54 = vadd.f32 %v1334_v31, %v1332_v47  ;;  %v1323_v56 = vadd.f32 %v1322_v49, %v1318_v44  ;;  %v1377_v31 = vld [vmem:[#allocation6 + $0x240] sm:$0xff] }
 0xed9   :  { %v1324_v57 = vrot.slane %v1323_v56, 4  ;;  %v1336_v58 = vadd.f32 %v1335_v54, %v1333_v51  ;;  %v1378_v51 = vld [vmem:[#allocation6 + $0x248] sm:$0xff] }
 0xeda   :  { %v1380_v54 = vpack.c.bf16 %v1378_v51, %v1377_v31 }
 0xedb   :  { %v1325_v59 = vadd.f32 %v1324_v57, %v1323_v56  ;;  %v1337_v50 = vrot.slane %v1336_v58, 4 }
 0xedd   :  { %v1326_v52 = vrot.slane %v1325_v59, 2  ;;  %v1338_v53 = vadd.f32 %v1337_v50, %v1336_v58  ;;  %v1384_v58 = vld [vmem:[#allocation6 + $0x258] sm:$0xff] }
 0xedf   :  { %v1327_v55 = vadd.f32 %v1326_v52, %v1325_v59  ;;  %v1339_v60 = vrot.slane %v1338_v53, 2 }
 0xee1   :  { %v1328_v61 = vrot.slane %v1327_v55, 1  ;;  %v1340_v62 = vadd.f32 %v1339_v60, %v1338_v53 }
 0xee3   :  { %v1329_v1 = vadd.f32 %v1328_v61, %v1327_v55  ;;  %v1341_v3 = vrot.slane %v1340_v62, 1 }
 0xee5   :  { %1343 = vrot.lane.b32.xlu0 %v1329_v1, %s3399_s2  ;;  %v1342_v36 = vadd.f32 %v1341_v3, %v1340_v62 }
 0xee7   :  { %1346 = vrot.lane.b32.xlu1 %v1342_v36, %s3399_s2 }
 0xf57   :  { %v1344_v6 = vpop.permute.xlu0 %1343 }
 0xf58   :  { %v1345_v4 = vadd.f32 %v1344_v6, %v1329_v1 }
 0xf59   :  { %v1347_v7 = vpop.permute.xlu1 %1346 }
 0xf5a   :  { %v1349_v11 = vmul.f32 0.015625, %v1345_v4  ;;  %v1348_v9 = vadd.f32 %v1347_v7, %v1342_v36 }
 0xf5c   :  { %v1351_v38 = vmul.f32 %v1349_v11, %v1349_v11  ;;  %v1350_v12 = vmul.f32 0.015625, %v1348_v9 }
 0xf5e   :  { %v1352_v14 = vsub.f32 %v1350_v12, %v1351_v38 }
 0xf60   :  { %v1353_v15 = vmax.f32 %v1352_v14, 0.0 }
 0xf62   :  { %v1354_v17 = vadd.f32 1e-05, %v1353_v15 }
 0xf64   :  { %3164 = vrsqrt.f32 %v1354_v17 }
 0xf6e   :  { %v3165_v20 = vpop.eup %3164 }
 0xf6f   :  { %v1356_v21 = vmul.f32 %v3165_v20, %v1319_v18 }
 0xf71   :  { %v1357_v24 = vmul.f32 %v1356_v21, %v1349_v11  ;;  %v1362_v29 = vrot.slane %v1356_v21, %v3489_v32 }
 0xf73   :  { %v1358_v33 = vsub.f32 %v1320_v23, %v1357_v24  ;;  %v1363_v25 = vmul.f32 %v1362_v29, %v1315_v39  ;;  %v1364_v27 = vmul.f32 %v1362_v29, %v1316_v42  ;;  %v1365_v30 = vmul.f32 %v1362_v29, %v1317_v41  ;;  %v1385_v39 = vld [vmem:[#allocation6 + $0x260] sm:$0xff]  ;;  %v1383_v41 = vld [vmem:[#allocation6 + $0x250] sm:$0xff] }
 0xf74   :  { %v1366_v35 = vmul.f32 %v1362_v29, %v1318_v44  ;;  %v1386_v44 = vld [vmem:[#allocation6 + $0x268] sm:$0xff] }
 0xf75   :  { %v1370_v28 = vrot.slane %v1358_v33, %v3489_v32 }
 0xf77   :  { %v1371_v40 = vadd.f32 %v1370_v28, %v1363_v25  ;;  %v1372_v43 = vadd.f32 %v1370_v28, %v1364_v27  ;;  %v1373_v45 = vadd.f32 %v1370_v28, %v1365_v30  ;;  %v1374_v46 = vadd.f32 %v1370_v28, %v1366_v35 }
 0xf79   :  { %v1381_v47 = vpack.c.bf16 %v1372_v43, %v1371_v40  ;;  %v1382_v49 = vpack.c.bf16 %v1374_v46, %v1373_v45 }
 0xf7b   :  { %2877 = vmatprep.subr.bf16.mxu0 %v1381_v47 }
 0xf7c   :  { %2878 = vmatpush3.bf16.msra.mxu0 %v1381_v47 }
 0xf7d   :  { %2879 = vmatprep.subr.bf16.mxu0 %v1382_v49 }
 0xf80   :  { %2880 = vmatpush3.bf16.msra.mxu0 %v1382_v49 }
 0xf81   :  { %2893 = vmatprep.subr.bf16.mxu0 %v3396_v0 }
 0xf83   :  { %2882 = vmatmul.mubr.msk.bf16.vlgmr.msra.gmra.mrb[24].mxu0 %vm444_vm4, %v1380_v54 }
 0xf84   :  { %2897 = vmatprep.mubr.msk.bf16.mxu0 %vm3397_vm0, %v3396_v0 }
0x1056   :  { %v2883_v42 = vpop.f32.mrb[24].mxu0 }
0x1057   :  { %v1436_v56 = vadd.f32 %v2883_v42, %v1385_v39  ;;  %v1427_v57 = vpop.f32.mrb[25].mxu0 }
0x1058   :  { %v1428_v59 = vadd.f32 %v1427_v57, %v1383_v41  ;;  %v2884_v50 = vpop.f32.mrb[26].mxu0 }
0x1059   :  { %v1444_v52 = vsub.f32 0.0, %v1436_v56  ;;  %v1439_v53 = vadd.f32 %v2884_v50, %v1386_v44  ;;  %v1430_v55 = vpop.f32.mrb[27].mxu0 }
0x105a   :  { %v1442_v60 = vsub.f32 0.0, %v1428_v59  ;;  %v1431_v61 = vadd.f32 %v1430_v55, %v1384_v58  ;;  %v1522_v58 = vld [vmem:[#allocation6 + $0x280] sm:$0xff] }
0x105b   :  { %v1450_v62 = vmul.f32 1.442695, %v1444_v52  ;;  %v1445_v1 = vsub.f32 0.0, %v1439_v53 }
0x105c   :  { %v1446_v3 = vmul.f32 1.442695, %v1442_v60  ;;  %v1443_v36 = vsub.f32 0.0, %v1431_v61 }
0x105d   :  { %3166 = vpow2.f32 %v1450_v62  ;;  %v1452_v2 = vmul.f32 1.442695, %v1445_v1 }
0x105e   :  { %3168 = vpow2.f32 %v1446_v3  ;;  %v1448_v37 = vmul.f32 1.442695, %v1443_v36 }
0x105f   :  { %3170 = vpow2.f32 %v1452_v2 }
0x1060   :  { %3172 = vpow2.f32 %v1448_v37  ;;  %v1466_v37 = vld [vmem:[#allocation6 + $0x270] sm:$0x1] }
0x1067   :  { %v3167_v5 = vpop.eup %3166 }
0x1068   :  { %v3169_v6 = vpop.eup %3168  ;;  %v1456_v4 = vadd.f32 1.0, %v3167_v5 }
0x1069   :  { %v3171_v7 = vpop.eup %3170  ;;  %v1454_v11 = vadd.f32 1.0, %v3169_v6 }
0x106a   :  { %v3173_v9 = vpop.eup %3172  ;;  %3174 = vrcp.f32 %v1456_v4  ;;  %v1457_v38 = vadd.f32 1.0, %v3171_v7  ;;  %v1467_v4 = vld [vmem:[#allocation6 + $0x278] sm:$0x1] }
0x106b   :  { %3176 = vrcp.f32 %v1454_v11  ;;  %v1455_v12 = vadd.f32 1.0, %v3173_v9 }
0x106c   :  { %3178 = vrcp.f32 %v1457_v38 }
0x106d   :  { %3180 = vrcp.f32 %v1455_v12 }
0x1074   :  { %v3175_v14 = vpop.eup %3174 }
0x1075   :  { %v3177_v15 = vpop.eup %3176  ;;  %v1464_v21 = vmul.f32 %v3175_v14, %v1436_v56 }
0x1076   :  { %v3179_v17 = vpop.eup %3178  ;;  %v1462_v18 = vmul.f32 %v3177_v15, %v1428_v59  ;;  %v1523_v59 = vld [vmem:[#allocation6 + $0x288] sm:$0xff] }
0x1077   :  { %v3181_v20 = vpop.eup %3180  ;;  %v1465_v29 = vmul.f32 %v3179_v17, %v1439_v53  ;;  %v1479_v27 = vmul.f32 %v1464_v21, %v1464_v21  ;;  %v1526_v50 = vpack.c.bf16 %v1523_v59, %v1522_v58 }
0x1078   :  { %v1463_v23 = vmul.f32 %v3181_v20, %v1431_v61  ;;  %v1477_v24 = vmul.f32 %v1462_v18, %v1462_v18 }
0x1079   :  { %v1480_v35 = vmul.f32 %v1465_v29, %v1465_v29  ;;  %2889 = vmatprep.mubr.msk.bf16.mxu1 %vm444_vm4, %v1526_v50 }
0x107a   :  { %v1468_v33 = vadd.f32 %v1463_v23, %v1462_v18  ;;  %v1478_v25 = vmul.f32 %v1463_v23, %v1463_v23 }
0x107c   :  { %v1469_v28 = vadd.f32 %v1468_v33, %v1464_v21  ;;  %v1481_v30 = vadd.f32 %v1478_v25, %v1477_v24 }
0x107e   :  { %v1482_v40 = vadd.f32 %v1481_v30, %v1479_v27  ;;  %v1470_v43 = vadd.f32 %v1469_v28, %v1465_v29  ;;  %v1524_v30 = vld [vmem:[#allocation6 + $0x290] sm:$0xff] }
0x1080   :  { %v1471_v45 = vrot.slane %v1470_v43, 4  ;;  %v1483_v46 = vadd.f32 %v1482_v40, %v1480_v35  ;;  %v1525_v35 = vld [vmem:[#allocation6 + $0x298] sm:$0xff] }
0x1081   :  { %v1527_v40 = vpack.c.bf16 %v1525_v35, %v1524_v30 }
0x1082   :  { %v1472_v47 = vadd.f32 %v1471_v45, %v1470_v43  ;;  %v1484_v49 = vrot.slane %v1483_v46, 4 }
0x1084   :  { %v1473_v31 = vrot.slane %v1472_v47, 2  ;;  %v1485_v51 = vadd.f32 %v1484_v49, %v1483_v46 }
0x1086   :  { %v1474_v54 = vadd.f32 %v1473_v31, %v1472_v47  ;;  %v1486_v39 = vrot.slane %v1485_v51, 2 }
0x1088   :  { %v1475_v41 = vrot.slane %v1474_v54, 1  ;;  %v1487_v42 = vadd.f32 %v1486_v39, %v1485_v51 }
0x108a   :  { %v1476_v44 = vadd.f32 %v1475_v41, %v1474_v54  ;;  %v1488_v56 = vrot.slane %v1487_v42, 1 }
0x108c   :  { %1490 = vrot.lane.b32.xlu0 %v1476_v44, %s3399_s2  ;;  %v1489_v57 = vadd.f32 %v1488_v56, %v1487_v42 }
0x108e   :  { %1493 = vrot.lane.b32.xlu1 %v1489_v57, %s3399_s2 }
0x10fe   :  { %v1491_v52 = vpop.permute.xlu0 %1490 }
0x10ff   :  { %v1492_v53 = vadd.f32 %v1491_v52, %v1476_v44 }
0x1100   :  { %v1494_v55 = vpop.permute.xlu1 %1493 }
0x1101   :  { %v1496_v60 = vmul.f32 0.015625, %v1492_v53  ;;  %v1495_v61 = vadd.f32 %v1494_v55, %v1489_v57 }
0x1103   :  { %v1498_v62 = vmul.f32 %v1496_v60, %v1496_v60  ;;  %v1497_v1 = vmul.f32 0.015625, %v1495_v61 }
0x1105   :  { %v1499_v3 = vsub.f32 %v1497_v1, %v1498_v62 }
0x1107   :  { %v1500_v36 = vmax.f32 %v1499_v3, 0.0 }
0x1109   :  { %v1501_v2 = vadd.f32 1e-05, %v1500_v36 }
0x110b   :  { %3182 = vrsqrt.f32 %v1501_v2 }
0x1115   :  { %v3183_v5 = vpop.eup %3182 }
0x1116   :  { %v1503_v6 = vmul.f32 %v3183_v5, %v1466_v37 }
0x1118   :  { %v1504_v7 = vmul.f32 %v1503_v6, %v1496_v60  ;;  %v1509_v11 = vrot.slane %v1503_v6, %v3489_v32 }
0x111a   :  { %v1505_v9 = vsub.f32 %v1467_v4, %v1504_v7  ;;  %v1510_v38 = vmul.f32 %v1509_v11, %v1462_v18  ;;  %v1511_v12 = vmul.f32 %v1509_v11, %v1463_v23  ;;  %v1512_v15 = vmul.f32 %v1509_v11, %v1464_v21  ;;  %v1531_v23 = vld [vmem:[#allocation6 + $0x2a8] sm:$0xff] }
0x111b   :  { %v1513_v17 = vmul.f32 %v1509_v11, %v1465_v29 }
0x111c   :  { %v1517_v14 = vrot.slane %v1505_v9, %v3489_v32 }
0x111e   :  { %v1518_v20 = vadd.f32 %v1517_v14, %v1510_v38  ;;  %v1519_v24 = vadd.f32 %v1517_v14, %v1511_v12  ;;  %v1520_v33 = vadd.f32 %v1517_v14, %v1512_v15  ;;  %v1521_v25 = vadd.f32 %v1517_v14, %v1513_v17 }
0x1120   :  { %v1528_v27 = vpack.c.bf16 %v1519_v24, %v1518_v20  ;;  %v1529_v28 = vpack.c.bf16 %v1521_v25, %v1520_v33 }
0x1122   :  { %2885 = vmatprep.subr.bf16.mxu1 %v1528_v27 }
0x1123   :  { %2886 = vmatpush3.bf16.msra.mxu1 %v1528_v27 }
0x1124   :  { %2887 = vmatprep.subr.bf16.mxu1 %v1529_v28 }
0x1127   :  { %2888 = vmatpush3.bf16.msra.mxu1 %v1529_v28 }
0x1128   :  { %2901 = vmatprep.subr.bf16.mxu1 %v3396_v0 }
0x112a   :  { %2890 = vmatmul.mubr.msk.bf16.vlgmr.msra.gmra.mrb[36].mxu1 %vm444_vm4, %v1527_v40 }
0x112b   :  { %2902 = vmatpush3.bf16.msra.mxu1 %v3517_v8  ;;  %2917 = vmatprep.mubr.msk.bf16.mxu1 %vm3397_vm0, %v3396_v0  ;;  %v1532_v8 = vld [vmem:[#allocation6 + $0x2b0] sm:$0xff] }
0x112c   :  { %2903 = vmatprep.subr.bf16.mxu1 %v3396_v0 }
0x112f   :  { %2904 = vmatpush3.bf16.msra.mxu1 %v3521_v10  ;;  %v1530_v10 = vld [vmem:[#allocation6 + $0x2a0] sm:$0xff] }
0x1130   :  { %2905 = vmatprep.subr.bf16.mxu1 %v3396_v0 }
0x1133   :  { %2906 = vmatpush3.bf16.msra.mxu1 %v3525_v13 }
0x1134   :  { %2907 = vmatprep.subr.bf16.mxu1 %v3396_v0 }
0x1137   :  { %2908 = vmatpush3.bf16.msra.mxu1 %v3529_v16  ;;  %v1533_v16 = vld [vmem:[#allocation6 + $0x2b8] sm:$0xff] }
0x1138   :  { %2909 = vmatprep.subr.bf16.mxu1 %v3396_v0 }
0x113b   :  { %2910 = vmatpush3.bf16.msra.mxu1 %v3533_v19 }
0x113c   :  { %2911 = vmatprep.subr.bf16.mxu1 %v3396_v0 }
0x113f   :  { %2912 = vmatpush3.bf16.msra.mxu1 %v3537_v22 }
0x1140   :  { %2913 = vmatprep.subr.bf16.mxu1 %v3396_v0 }
0x1143   :  { %2914 = vmatpush3.bf16.msra.mxu1 %v3541_v26 }
0x1144   :  { %2915 = vmatprep.subr.bf16.mxu1 %v3396_v0 }
0x1147   :  { %2916 = vmatpush3.bf16.msra.mxu1 %v3545_v34 }
0x11fd   :  { %v2891_v13 = vpop.f32.mrb[36].mxu1 }
0x11fe   :  { %v1583_v18 = vadd.f32 %v2891_v13, %v1532_v8  ;;  %v1574_v21 = vpop.f32.mrb[37].mxu1 }
0x11ff   :  { %v1575_v19 = vadd.f32 %v1574_v21, %v1530_v10  ;;  %v2892_v29 = vpop.f32.mrb[38].mxu1 }
0x1200   :  { %v1591_v43 = vsub.f32 0.0, %v1583_v18  ;;  %v1586_v45 = vadd.f32 %v2892_v29, %v1533_v16  ;;  %v1577_v22 = vpop.f32.mrb[39].mxu1  ;;  %v1613_v29 = vld [vmem:[#allocation6 + $0x2c0] sm:$0x1] }
0x1201   :  { %v1589_v46 = vsub.f32 0.0, %v1575_v19  ;;  %v1578_v47 = vadd.f32 %v1577_v22, %v1531_v23  ;;  %v1614_v22 = vld [vmem:[#allocation6 + $0x2c8] sm:$0x1] }
0x1202   :  { %v1597_v49 = vmul.f32 1.442695, %v1591_v43  ;;  %v1592_v26 = vsub.f32 0.0, %v1586_v45 }
0x1203   :  { %v1593_v31 = vmul.f32 1.442695, %v1589_v46  ;;  %v1590_v51 = vsub.f32 0.0, %v1578_v47 }
0x1204   :  { %3184 = vpow2.f32 %v1597_v49  ;;  %v1599_v34 = vmul.f32 1.442695, %v1592_v26 }
0x1205   :  { %3186 = vpow2.f32 %v1593_v31  ;;  %v1595_v54 = vmul.f32 1.442695, %v1590_v51 }
0x1206   :  { %3188 = vpow2.f32 %v1599_v34 }
0x1207   :  { %3190 = vpow2.f32 %v1595_v54 }
0x120e   :  { %v3185_v39 = vpop.eup %3184 }
0x120f   :  { %v3187_v41 = vpop.eup %3186  ;;  %v1603_v42 = vadd.f32 1.0, %v3185_v39 }
0x1210   :  { %v3189_v44 = vpop.eup %3188  ;;  %v1601_v56 = vadd.f32 1.0, %v3187_v41 }
0x1211   :  { %v3191_v57 = vpop.eup %3190  ;;  %3192 = vrcp.f32 %v1603_v42  ;;  %v1604_v58 = vadd.f32 1.0, %v3189_v44 }
0x1212   :  { %3194 = vrcp.f32 %v1601_v56  ;;  %v1602_v59 = vadd.f32 1.0, %v3191_v57  ;;  %v1669_v57 = vld [vmem:[#allocation6 + $0x2d0] sm:$0xff] }
0x1213   :  { %3196 = vrcp.f32 %v1604_v58  ;;  %v1670_v58 = vld [vmem:[#allocation6 + $0x2d8] sm:$0xff] }
0x1214   :  { %3198 = vrcp.f32 %v1602_v59 }
0x121b   :  { %v3193_v50 = vpop.eup %3192 }
0x121c   :  { %v3195_v52 = vpop.eup %3194  ;;  %v1611_v61 = vmul.f32 %v3193_v50, %v1583_v18  ;;  %v1780_v50 = vpack.c.bf16 %v3562_v48, %v3511_v63 }
0x121d   :  { %v3197_v53 = vpop.eup %3196  ;;  %v1609_v55 = vmul.f32 %v3195_v52, %v1575_v19  ;;  %v1671_v52 = vpack.c.bf16 %v1670_v58, %v1669_v57 }
0x121e   :  { %v3199_v60 = vpop.eup %3198  ;;  %v1612_v3 = vmul.f32 %v3197_v53, %v1586_v45  ;;  %v1626_v37 = vmul.f32 %v1611_v61, %v1611_v61  ;;  %v1674_v53 = vld [vmem:[#allocation6 + $0x2e0] sm:$0xff] }
0x121f   :  { %v1610_v62 = vmul.f32 %v3199_v60, %v1578_v47  ;;  %v1624_v1 = vmul.f32 %v1609_v55, %v1609_v55  ;;  %v1675_v60 = vld [vmem:[#allocation6 + $0x2e8] sm:$0xff] }
0x1220   :  { %v1627_v4 = vmul.f32 %v1612_v3, %v1612_v3 }
0x1221   :  { %v1615_v36 = vadd.f32 %v1610_v62, %v1609_v55  ;;  %v1625_v2 = vmul.f32 %v1610_v62, %v1610_v62 }
0x1223   :  { %v1616_v5 = vadd.f32 %v1615_v36, %v1611_v61  ;;  %v1628_v6 = vadd.f32 %v1625_v2, %v1624_v1 }
0x1225   :  { %v1629_v7 = vadd.f32 %v1628_v6, %v1626_v37  ;;  %v1617_v11 = vadd.f32 %v1616_v5, %v1612_v3 }
0x1227   :  { %v1618_v9 = vrot.slane %v1617_v11, 4  ;;  %v1630_v38 = vadd.f32 %v1629_v7, %v1627_v4 }
0x1229   :  { %v1619_v12 = vadd.f32 %v1618_v9, %v1617_v11  ;;  %v1631_v14 = vrot.slane %v1630_v38, 4 }
0x122b   :  { %v1620_v15 = vrot.slane %v1619_v12, 2  ;;  %v1632_v17 = vadd.f32 %v1631_v14, %v1630_v38 }
0x122d   :  { %v1621_v20 = vadd.f32 %v1620_v15, %v1619_v12  ;;  %v1633_v24 = vrot.slane %v1632_v17, 2 }
0x122f   :  { %v1622_v33 = vrot.slane %v1621_v20, 1  ;;  %v1634_v25 = vadd.f32 %v1633_v24, %v1632_v17  ;;  %v1775_v24 = vld [vmem:[#allocation6 + $0x2f8] sm:$0xff] }
0x1231   :  { %v1623_v27 = vadd.f32 %v1622_v33, %v1621_v20  ;;  %v1635_v28 = vrot.slane %v1634_v25, 1  ;;  %v1774_v20 = vld [vmem:[#allocation6 + $0x2f0] sm:$0xff] }
0x1232   :  { %v1778_v33 = vpack.c.bf16 %v1775_v24, %v1774_v20  ;;  %v1876_v24 = vld [vmem:[#allocation6 + $0x368] sm:$0xff] }
0x1233   :  { %1637 = vrot.lane.b32.xlu0 %v1623_v27, %s3399_s2  ;;  %v1636_v30 = vadd.f32 %v1635_v28, %v1634_v25 }
0x1235   :  { %1640 = vrot.lane.b32.xlu1 %v1636_v30, %s3399_s2 }
0x12a5   :  { %v1638_v35 = vpop.permute.xlu0 %1637 }
0x12a6   :  { %v1639_v40 = vadd.f32 %v1638_v35, %v1623_v27  ;;  %v1777_v35 = vld [vmem:[#allocation6 + $0x308] sm:$0xff] }
0x12a7   :  { %v1641_v8 = vpop.permute.xlu1 %1640 }
0x12a8   :  { %v1643_v10 = vmul.f32 0.015625, %v1639_v40  ;;  %v1642_v13 = vadd.f32 %v1641_v8, %v1636_v30  ;;  %v1776_v30 = vld [vmem:[#allocation6 + $0x300] sm:$0xff] }
0x12aa   :  { %v1645_v16 = vmul.f32 %v1643_v10, %v1643_v10  ;;  %v1644_v18 = vmul.f32 0.015625, %v1642_v13  ;;  %v1865_v13 = vld [vmem:[#allocation6 + $0x330] sm:$0xff] }
0x12ac   :  { %v1646_v21 = vsub.f32 %v1644_v18, %v1645_v16  ;;  %v1866_v16 = vld [vmem:[#allocation6 + $0x338] sm:$0xff] }
0x12ad   :  { %v1869_v18 = vpack.c.bf16 %v1866_v16, %v1865_v13 }
0x12ae   :  { %v1647_v23 = vmax.f32 %v1646_v21, 0.0  ;;  %v1784_v21 = vld [vmem:[#allocation6 + $0x320] sm:$0xff] }
0x12b0   :  { %v1648_v19 = vadd.f32 1e-05, %v1647_v23  ;;  %v1782_v23 = vld [vmem:[#allocation6 + $0x310] sm:$0xff] }
0x12b2   :  { %3200 = vrsqrt.f32 %v1648_v19 }
0x12bc   :  { %v3201_v43 = vpop.eup %3200 }
0x12bd   :  { %v1650_v45 = vmul.f32 %v3201_v43, %v1613_v29  ;;  %v1785_v29 = vld [vmem:[#allocation6 + $0x328] sm:$0xff] }
0x12bf   :  { %v1651_v46 = vmul.f32 %v1650_v45, %v1643_v10  ;;  %v1656_v47 = vrot.slane %v1650_v45, %v3489_v32  ;;  %v1779_v10 = vpack.c.bf16 %v1777_v35, %v1776_v30 }
0x12c1   :  { %v1652_v49 = vsub.f32 %v1614_v22, %v1651_v46  ;;  %v1657_v26 = vmul.f32 %v1656_v47, %v1609_v55  ;;  %v1658_v31 = vmul.f32 %v1656_v47, %v1610_v62  ;;  %v1659_v39 = vmul.f32 %v1656_v47, %v1611_v61  ;;  %v1783_v22 = vld [vmem:[#allocation6 + $0x318] sm:$0xff] }
0x12c2   :  { %v1660_v41 = vmul.f32 %v1656_v47, %v1612_v3 }
0x12c3   :  { %v1664_v51 = vrot.slane %v1652_v49, %v3489_v32 }
0x12c5   :  { %v1665_v34 = vadd.f32 %v1664_v51, %v1657_v26  ;;  %v1666_v54 = vadd.f32 %v1664_v51, %v1658_v31  ;;  %v1667_v44 = vadd.f32 %v1664_v51, %v1659_v39  ;;  %v1668_v56 = vadd.f32 %v1664_v51, %v1660_v41 }
0x12c7   :  { %v1672_v42 = vpack.c.bf16 %v1666_v54, %v1665_v34  ;;  %v1673_v59 = vpack.c.bf16 %v1668_v56, %v1667_v44 }
0x12c9   :  { %2894 = vmatpush3.bf16.msra.mxu0 %v1672_v42 }
0x12ca   :  { %2895 = vmatprep.subr.bf16.mxu0 %v3396_v0 }
0x12cd   :  { %2896 = vmatpush3.bf16.msra.mxu0 %v1673_v59 }
0x12ce   :  { %2921 = vmatprep.subr.bf16.mxu0 %v1780_v50 }
0x12d0   :  { %2898 = vmatmul.mubr.msk.bf16.vlgmr.msra.gmra.mrb[28].mxu0 %vm444_vm4, %v1671_v52 }
0x12d1   :  { %2922 = vmatpush3.bf16.msra.mxu0 %v1780_v50  ;;  %2925 = vmatprep.mubr.msk.bf16.mxu0 %vm444_vm4, %v1778_v33 }
0x13a3   :  { %v1713_v55 = vpop.f32.mrb[28].mxu0 }
0x13a4   :  { %v1714_v61 = vadd.f32 %v1713_v55, %v1674_v53  ;;  %v2899_v62 = vpop.f32.mrb[29].mxu0 }
0x13a5   :  { %v1716_v1 = vpop.f32.mrb[30].mxu0 }
0x13a6   :  { %v1720_v3 = vsub.f32 0.0, %v1714_v61  ;;  %v1717_v36 = vadd.f32 %v1716_v1, %v1675_v60  ;;  %v2900_v2 = vpop.f32.mrb[31].mxu0 }
0x13a8   :  { %v1722_v37 = vmul.f32 1.442695, %v1720_v3  ;;  %v1721_v5 = vsub.f32 0.0, %v1717_v36 }
0x13aa   :  { %3202 = vpow2.f32 %v1722_v37  ;;  %v1724_v6 = vmul.f32 1.442695, %v1721_v5 }
0x13ac   :  { %3204 = vpow2.f32 %v1724_v6 }
0x13b4   :  { %v3203_v4 = vpop.eup %3202 }
0x13b5   :  { %v1726_v7 = vadd.f32 1.0, %v3203_v4 }
0x13b6   :  { %v3205_v11 = vpop.eup %3204 }
0x13b7   :  { %3206 = vrcp.f32 %v1726_v7  ;;  %v1727_v9 = vadd.f32 1.0, %v3205_v11  ;;  %v1867_v7 = vld [vmem:[#allocation6 + $0x340] sm:$0xff]  ;;  %v1868_v11 = vld [vmem:[#allocation6 + $0x348] sm:$0xff] }
0x13b9   :  { %3208 = vrcp.f32 %v1727_v9  ;;  %v1870_v9 = vpack.c.bf16 %v1868_v11, %v1867_v7 }
0x13c1   :  { %v3207_v38 = vpop.eup %3206 }
0x13c2   :  { %v1730_v14 = vmul.f32 %v3207_v38, %v1714_v61  ;;  %v1956_v38 = vld [vmem:[#allocation6 + $0x370] sm:$0xff] }
0x13c3   :  { %v3209_v12 = vpop.eup %3208 }
0x13c4   :  { %v1731_v15 = vmul.f32 %v3209_v12, %v1717_v36  ;;  %v1957_v12 = vld [vmem:[#allocation6 + $0x378] sm:$0xff] }
0x13c6   :  { %v1732_v17 = vpack.c.bf16 %v1731_v15, %v1730_v14  ;;  %v1960_v14 = vpack.c.bf16 %v1957_v12, %v1956_v38  ;;  %v1875_v15 = vld [vmem:[#allocation6 + $0x360] sm:$0xff] }
0x13c8   :  { %2918 = vmatmul.mubr.bf16.vlgmr.msra.gmra.mrb[40].mxu1 %v1732_v17  ;;  %v1873_v17 = vld [vmem:[#allocation6 + $0x350] sm:$0xff] }
0x149b   :  { %v1767_v25 = vpop.f32.mrb[40].mxu1 }
0x149c   :  { %v2919_v27 = vpop.f32.mrb[41].mxu1 }
0x149d   :  { %v1770_v28 = vpop.f32.mrb[42].mxu1  ;;  %v1874_v27 = vld [vmem:[#allocation6 + $0x358] sm:$0xff] }
0x149e   :  { %v1781_v40 = vpack.c.bf16 %v1770_v28, %v1767_v25  ;;  %v2920_v8 = vpop.f32.mrb[43].mxu1 }
0x14a0   :  { %2923 = vmatprep.subr.bf16.mxu0 %v1781_v40 }
0x14a1   :  { %2924 = vmatpush3.bf16.msra.mxu0 %v1781_v40 }
0x14a4   :  { %2926 = vmatmul.mubr.msk.bf16.vlgmr.msra.gmra.mrb[32].mxu0 %vm444_vm4, %v1779_v10 }
0x14a5   :  { %2933 = vmatprep.mubr.msk.bf16.mxu0 %vm444_vm4, %v1869_v18 }
0x1577   :  { %v2927_v19 = vpop.f32.mrb[32].mxu0 }
0x1578   :  { %v1835_v43 = vadd.f32 %v2927_v19, %v1784_v21  ;;  %v1826_v45 = vpop.f32.mrb[33].mxu0 }
0x1579   :  { %v1827_v46 = vadd.f32 %v1826_v45, %v1782_v23  ;;  %v2928_v47 = vpop.f32.mrb[34].mxu0 }
0x157a   :  { %v1843_v49 = vsub.f32 0.0, %v1835_v43  ;;  %v1838_v26 = vadd.f32 %v2928_v47, %v1785_v29  ;;  %v1829_v31 = vpop.f32.mrb[35].mxu0 }
0x157b   :  { %v1841_v51 = vsub.f32 0.0, %v1827_v46  ;;  %v1830_v34 = vadd.f32 %v1829_v31, %v1783_v22 }
0x157c   :  { %v1849_v54 = vmul.f32 1.442695, %v1843_v49  ;;  %v1844_v39 = vsub.f32 0.0, %v1838_v26 }
0x157d   :  { %v1845_v41 = vmul.f32 1.442695, %v1841_v51  ;;  %v1842_v42 = vsub.f32 0.0, %v1830_v34 }
0x157e   :  { %3210 = vpow2.f32 %v1849_v54  ;;  %v1851_v44 = vmul.f32 1.442695, %v1844_v39 }
0x157f   :  { %3212 = vpow2.f32 %v1845_v41  ;;  %v1847_v56 = vmul.f32 1.442695, %v1842_v42 }
0x1580   :  { %3214 = vpow2.f32 %v1851_v44 }
0x1581   :  { %3216 = vpow2.f32 %v1847_v56 }
0x1588   :  { %v3211_v57 = vpop.eup %3210 }
0x1589   :  { %v3213_v58 = vpop.eup %3212  ;;  %v1855_v59 = vadd.f32 1.0, %v3211_v57 }
0x158a   :  { %v3215_v50 = vpop.eup %3214  ;;  %v1853_v52 = vadd.f32 1.0, %v3213_v58 }
0x158b   :  { %v3217_v53 = vpop.eup %3216  ;;  %3218 = vrcp.f32 %v1855_v59  ;;  %v1856_v55 = vadd.f32 1.0, %v3215_v50  ;;  %v1958_v59 = vld [vmem:[#allocation6 + $0x380] sm:$0xff]  ;;  %v1959_v50 = vld [vmem:[#allocation6 + $0x388] sm:$0xff] }
0x158c   :  { %3220 = vrcp.f32 %v1853_v52  ;;  %v1854_v60 = vadd.f32 1.0, %v3217_v53  ;;  %v1961_v52 = vpack.c.bf16 %v1959_v50, %v1958_v59  ;;  %v1966_v53 = vld [vmem:[#allocation6 + $0x3a0] sm:$0xff]  ;;  %v2105_v59 = vld [vmem:[#allocation4 + $0x210] sm:$0xff] }
0x158d   :  { %3222 = vrcp.f32 %v1856_v55  ;;  %v1964_v55 = vld [vmem:[#allocation6 + $0x390] sm:$0xff] }
0x158e   :  { %3224 = vrcp.f32 %v1854_v60 }
0x1595   :  { %v3219_v61 = vpop.eup %3218 }
0x1596   :  { %v3221_v62 = vpop.eup %3220  ;;  %v1863_v36 = vmul.f32 %v3219_v61, %v1835_v43  ;;  %v1967_v61 = vld [vmem:[#allocation6 + $0x3a8] sm:$0xff] }
0x1597   :  { %v3223_v1 = vpop.eup %3222  ;;  %v1861_v37 = vmul.f32 %v3221_v62, %v1827_v46 }
0x1598   :  { %v3225_v3 = vpop.eup %3224  ;;  %v1864_v2 = vmul.f32 %v3223_v1, %v1838_v26 }
0x1599   :  { %v1862_v5 = vmul.f32 %v3225_v3, %v1830_v34  ;;  %v1965_v3 = vld [vmem:[#allocation6 + $0x398] sm:$0xff] }
0x159a   :  { %v1872_v6 = vpack.c.bf16 %v1864_v2, %v1863_v36 }
0x159b   :  { %v1871_v4 = vpack.c.bf16 %v1862_v5, %v1861_v37 }
0x159d   :  { %2929 = vmatprep.subr.bf16.mxu0 %v1871_v4 }
0x159e   :  { %2930 = vmatpush3.bf16.msra.mxu0 %v1871_v4 }
0x159f   :  { %2931 = vmatprep.subr.bf16.mxu0 %v1872_v6 }
0x15a2   :  { %2932 = vmatpush3.bf16.msra.mxu0 %v1872_v6 }
0x15a5   :  { %2934 = vmatmul.mubr.msk.bf16.vlgmr.msra.gmra.mrb[36].mxu0 %vm444_vm4, %v1870_v9 }
0x15a6   :  { %2941 = vmatprep.mubr.msk.bf16.mxu0 %vm444_vm4, %v1960_v14 }
0x1678   :  { %v2935_v20 = vpop.f32.mrb[36].mxu0 }
0x1679   :  { %v1926_v33 = vadd.f32 %v2935_v20, %v1875_v15  ;;  %v1917_v25 = vpop.f32.mrb[37].mxu0 }
0x167a   :  { %v1918_v28 = vadd.f32 %v1917_v25, %v1873_v17  ;;  %v2936_v30 = vpop.f32.mrb[38].mxu0 }
0x167b   :  { %v1934_v35 = vsub.f32 0.0, %v1926_v33  ;;  %v1929_v40 = vadd.f32 %v2936_v30, %v1876_v24  ;;  %v1920_v8 = vpop.f32.mrb[39].mxu0 }
0x167c   :  { %v1932_v10 = vsub.f32 0.0, %v1918_v28  ;;  %v1921_v13 = vadd.f32 %v1920_v8, %v1874_v27 }
0x167d   :  { %v1940_v16 = vmul.f32 1.442695, %v1934_v35  ;;  %v1935_v18 = vsub.f32 0.0, %v1929_v40 }
0x167e   :  { %v1936_v21 = vmul.f32 1.442695, %v1932_v10  ;;  %v1933_v23 = vsub.f32 0.0, %v1921_v13 }
0x167f   :  { %3226 = vpow2.f32 %v1940_v16  ;;  %v1942_v19 = vmul.f32 1.442695, %v1935_v18 }
0x1680   :  { %3228 = vpow2.f32 %v1936_v21  ;;  %v1938_v29 = vmul.f32 1.442695, %v1933_v23 }
0x1681   :  { %3230 = vpow2.f32 %v1942_v19 }
0x1682   :  { %3232 = vpow2.f32 %v1938_v29  ;;  %v2047_v29 = vld [vmem:[#allocation6 + $0x3b0] sm:$0xff] }
0x1689   :  { %v3227_v43 = vpop.eup %3226 }
0x168a   :  { %v3229_v45 = vpop.eup %3228  ;;  %v1946_v22 = vadd.f32 1.0, %v3227_v43  ;;  %v2048_v43 = vpack.c.bf16 %v2047_v29, %v2047_v29 }
0x168b   :  { %v3231_v46 = vpop.eup %3230  ;;  %v1944_v47 = vadd.f32 1.0, %v3229_v45  ;;  %v2102_v45 = vld [vmem:[#allocation4 + $0x1e0] sm:$0xff] }
0x168c   :  { %v3233_v49 = vpop.eup %3232  ;;  %3234 = vrcp.f32 %v1946_v22  ;;  %v1947_v26 = vadd.f32 1.0, %v3231_v46  ;;  %v2103_v22 = vld [vmem:[#allocation4 + $0x1f0] sm:$0xff] }
0x168d   :  { %3236 = vrcp.f32 %v1944_v47  ;;  %v1945_v31 = vadd.f32 1.0, %v3233_v49  ;;  %v2106_v46 = vpack.c.bf16 %v2103_v22, %v2102_v45  ;;  %v2051_v47 = vld [vmem:[#allocation6 + $0x3b8] sm:$0xff]  ;;  %v2197_v22 = vld [vmem:[#allocation4 + $0x280] sm:$0xff] }
0x168e   :  { %3238 = vrcp.f32 %v1947_v26 }
0x168f   :  { %3240 = vrcp.f32 %v1945_v31  ;;  %2955 = vmatprep.mubr.msk.bf16.mxu1 %vm64_vm2, %v2106_v46  ;;  %v2198_v46 = vld [vmem:[#allocation4 + $0x290] sm:$0xff] }
0x1696   :  { %v3235_v51 = vpop.eup %3234 }
0x1697   :  { %v3237_v34 = vpop.eup %3236  ;;  %v1954_v41 = vmul.f32 %v3235_v51, %v1926_v33 }
0x1698   :  { %v3239_v54 = vpop.eup %3238  ;;  %v1952_v44 = vmul.f32 %v3237_v34, %v1918_v28 }
0x1699   :  { %v3241_v39 = vpop.eup %3240  ;;  %v1955_v42 = vmul.f32 %v3239_v54, %v1929_v40 }
0x169a   :  { %v1953_v56 = vmul.f32 %v3241_v39, %v1921_v13 }
0x169b   :  { %v1963_v57 = vpack.c.bf16 %v1955_v42, %v1954_v41 }
0x169c   :  { %v1962_v58 = vpack.c.bf16 %v1953_v56, %v1952_v44 }
0x169e   :  { %2937 = vmatprep.subr.bf16.mxu0 %v1962_v58 }
0x169f   :  { %2938 = vmatpush3.bf16.msra.mxu0 %v1962_v58  ;;  %v2104_v58 = vld [vmem:[#allocation4 + $0x200] sm:$0xff] }
0x16a0   :  { %2939 = vmatprep.subr.bf16.mxu0 %v1963_v57 }
0x16a3   :  { %2940 = vmatpush3.bf16.msra.mxu0 %v1963_v57 }
0x16a4   :  { %2945 = vmatprep.subr.bf16.mxu0 %v3396_v0 }
0x16a6   :  { %2942 = vmatmul.mubr.msk.bf16.vlgmr.msra.gmra.mrb[40].mxu0 %vm444_vm4, %v1961_v52 }
0x16a7   :  { %2949 = vmatprep.mubr.msk.bf16.mxu0 %vm3397_vm0, %v3396_v0 }
0x1779   :  { %v2943_v60 = vpop.f32.mrb[40].mxu0 }
0x177a   :  { %v2017_v62 = vadd.f32 %v2943_v60, %v1966_v53  ;;  %v2008_v1 = vpop.f32.mrb[41].mxu0  ;;  %v2107_v53 = vpack.c.bf16 %v2105_v59, %v2104_v58  ;;  %v2196_v60 = vld [vmem:[#allocation4 + $0x270] sm:$0xff] }
0x177b   :  { %v2009_v36 = vadd.f32 %v2008_v1, %v1964_v55  ;;  %v2944_v2 = vpop.f32.mrb[42].mxu0  ;;  %v2195_v55 = vld [vmem:[#allocation4 + $0x260] sm:$0xff] }
0x177c   :  { %v2025_v37 = vsub.f32 0.0, %v2017_v62  ;;  %v2020_v5 = vadd.f32 %v2944_v2, %v1967_v61  ;;  %v2011_v6 = vpop.f32.mrb[43].mxu0  ;;  %v2199_v61 = vpack.c.bf16 %v2196_v60, %v2195_v55  ;;  %v2109_v1 = vld [vmem:[#allocation4 + $0x220] sm:$0xff] }
0x177d   :  { %v2023_v4 = vsub.f32 0.0, %v2009_v36  ;;  %v2012_v7 = vadd.f32 %v2011_v6, %v1965_v3 }
0x177e   :  { %v2031_v11 = vmul.f32 1.442695, %v2025_v37  ;;  %v2026_v9 = vsub.f32 0.0, %v2020_v5  ;;  %v2110_v37 = vld [vmem:[#allocation4 + $0x230] sm:$0xff] }
0x177f   :  { %v2027_v38 = vmul.f32 1.442695, %v2023_v4  ;;  %v2024_v12 = vsub.f32 0.0, %v2012_v7 }
0x1780   :  { %3242 = vpow2.f32 %v2031_v11  ;;  %v2033_v14 = vmul.f32 1.442695, %v2026_v9 }
0x1781   :  { %3244 = vpow2.f32 %v2027_v38  ;;  %v2029_v15 = vmul.f32 1.442695, %v2024_v12 }
0x1782   :  { %3246 = vpow2.f32 %v2033_v14 }
0x1783   :  { %3248 = vpow2.f32 %v2029_v15 }
0x178a   :  { %v3243_v17 = vpop.eup %3242 }
0x178b   :  { %v3245_v20 = vpop.eup %3244  ;;  %v2037_v24 = vadd.f32 1.0, %v3243_v17 }
0x178c   :  { %v3247_v33 = vpop.eup %3246  ;;  %v2035_v25 = vadd.f32 1.0, %v3245_v20 }
0x178d   :  { %v3249_v27 = vpop.eup %3248  ;;  %3250 = vrcp.f32 %v2037_v24  ;;  %v2038_v28 = vadd.f32 1.0, %v3247_v33 }
0x178e   :  { %3252 = vrcp.f32 %v2035_v25  ;;  %v2036_v30 = vadd.f32 1.0, %v3249_v27 }
0x178f   :  { %3254 = vrcp.f32 %v2038_v28 }
0x1790   :  { %3256 = vrcp.f32 %v2036_v30 }
0x1797   :  { %v3251_v35 = vpop.eup %3250 }
0x1798   :  { %v3253_v40 = vpop.eup %3252  ;;  %v2045_v13 = vmul.f32 %v3251_v35, %v2017_v62  ;;  %v2111_v62 = vld [vmem:[#allocation4 + $0x240] sm:$0xff] }
0x1799   :  { %v3255_v8 = vpop.eup %3254  ;;  %v2043_v18 = vmul.f32 %v3253_v40, %v2009_v36 }
0x179a   :  { %v3257_v10 = vpop.eup %3256  ;;  %v2046_v16 = vmul.f32 %v3255_v8, %v2020_v5 }
0x179b   :  { %v2044_v21 = vmul.f32 %v3257_v10, %v2012_v7 }
0x179c   :  { %v2050_v23 = vpack.c.bf16 %v2046_v16, %v2045_v13 }
0x179d   :  { %v2049_v19 = vpack.c.bf16 %v2044_v21, %v2043_v18 }
0x179f   :  { %2946 = vmatpush3.bf16.msra.mxu0 %v2049_v19 }
0x17a0   :  { %2947 = vmatprep.subr.bf16.mxu0 %v3396_v0 }
0x17a3   :  { %2948 = vmatpush3.bf16.msra.mxu0 %v2050_v23 }
0x17a6   :  { %2950 = vmatmul.mubr.msk.bf16.vlgmr.msra.gmra.mrb[44].mxu0 %vm444_vm4, %v2048_v43 }
0x17a7   :  { %2963 = vmatprep.mubr.msk.bf16.mxu0 %vm444_vm4, %v2199_v61 }
0x1879   :  { %v2089_v49 = vpop.f32.mrb[44].mxu0 }
0x187a   :  { %v2090_v26 = vadd.f32 %v2089_v49, %v2051_v47  ;;  %v2951_v31 = vpop.f32.mrb[45].mxu0  ;;  %v2200_v47 = vpack.c.bf16 %v2198_v46, %v2197_v22  ;;  %v2286_v49 = vld [vmem:[#allocation4 + $0x2e0] sm:$0xff] }
0x187b   :  { %v2092_v51 = vpop.f32.mrb[46].mxu0 }
0x187c   :  { %v2095_v34 = vsub.f32 0.0, %v2090_v26  ;;  %v2952_v54 = vpop.f32.mrb[47].mxu0  ;;  %v2205_v51 = vld [vmem:[#allocation4 + $0x2c0] sm:$0xff] }
0x187e   :  { %v2096_v39 = vmul.f32 1.442695, %v2095_v34  ;;  %v2203_v34 = vld [vmem:[#allocation4 + $0x2a0] sm:$0xff] }
0x1880   :  { %3258 = vpow2.f32 %v2096_v39  ;;  %v2206_v39 = vld [vmem:[#allocation4 + $0x2d0] sm:$0xff] }
0x188a   :  { %v3259_v41 = vpop.eup %3258 }
0x188b   :  { %v2098_v42 = vadd.f32 1.0, %v3259_v41 }
0x188d   :  { %3260 = vrcp.f32 %v2098_v42 }
0x1897   :  { %v3261_v44 = vpop.eup %3260 }
0x1898   :  { %v2100_v56 = vmul.f32 %v3261_v44, %v2090_v26  ;;  %v2287_v26 = vld [vmem:[#allocation4 + $0x2f0] sm:$0xff] }
0x1899   :  { %v2290_v31 = vpack.c.bf16 %v2287_v26, %v2286_v49  ;;  %v2204_v44 = vld [vmem:[#allocation4 + $0x2b0] sm:$0xff] }
0x189a   :  { %v2101_v57 = vadd.f32 %v2100_v56, %v3562_v48  ;;  %v2112_v48 = vld [vmem:[#allocation4 + $0x250] sm:$0xff] }
0x189c   :  { %v2108_v50 = vpack.c.bf16 %v2101_v57, %v2101_v57 }
0x189e   :  { %3005 = vmatprep.subr.msk.bf16.mxu1 %vm68_vm1, %v2108_v50  ;;  %v2120_v52 = vsel %vm68_vm1, %v2108_v50, 0 }
0x189f   :  { %2954 = vmatpush3.bf16.msra.mxu1 %v2120_v52 }
0x18a2   :  { %2956 = vmatmul.mubr.msk.bf16.vlgmr.msra.gmra.mrb[44].mxu1 %vm64_vm2, %v2107_v53 }
0x18a3   :  { %2971 = vmatprep.mubr.msk.bf16.mxu1 %vm444_vm4, %v2290_v31 }
0x1975   :  { %v2957_v3 = vpop.f32.mrb[44].mxu1 }
0x1976   :  { %v2165_v36 = vadd.f32 %v2957_v3, %v2111_v62  ;;  %v2156_v2 = vpop.f32.mrb[45].mxu1 }
0x1977   :  { %v2157_v5 = vadd.f32 %v2156_v2, %v2109_v1  ;;  %v2958_v6 = vpop.f32.mrb[46].mxu1 }
0x1978   :  { %v2173_v4 = vsub.f32 0.0, %v2165_v36  ;;  %v2168_v7 = vadd.f32 %v2958_v6, %v2112_v48  ;;  %v2159_v11 = vpop.f32.mrb[47].mxu1 }
0x1979   :  { %v2171_v9 = vsub.f32 0.0, %v2157_v5  ;;  %v2160_v38 = vadd.f32 %v2159_v11, %v2110_v37 }
0x197a   :  { %v2179_v12 = vmul.f32 1.442695, %v2173_v4  ;;  %v2174_v14 = vsub.f32 0.0, %v2168_v7 }
0x197b   :  { %v2175_v15 = vmul.f32 1.442695, %v2171_v9  ;;  %v2172_v17 = vsub.f32 0.0, %v2160_v38 }
0x197c   :  { %3262 = vpow2.f32 %v2179_v12  ;;  %v2181_v20 = vmul.f32 1.442695, %v2174_v14 }
0x197d   :  { %3264 = vpow2.f32 %v2175_v15  ;;  %v2177_v24 = vmul.f32 1.442695, %v2172_v17 }
0x197e   :  { %3266 = vpow2.f32 %v2181_v20 }
0x197f   :  { %3268 = vpow2.f32 %v2177_v24 }
0x1986   :  { %v3263_v33 = vpop.eup %3262 }
0x1987   :  { %v3265_v25 = vpop.eup %3264  ;;  %v2185_v27 = vadd.f32 1.0, %v3263_v33 }
0x1988   :  { %v3267_v28 = vpop.eup %3266  ;;  %v2183_v30 = vadd.f32 1.0, %v3265_v25  ;;  %v2288_v25 = vld [vmem:[#allocation4 + $0x300] sm:$0xff] }
0x1989   :  { %v3269_v35 = vpop.eup %3268  ;;  %3270 = vrcp.f32 %v2185_v27  ;;  %v2186_v40 = vadd.f32 1.0, %v3267_v28  ;;  %v2289_v27 = vld [vmem:[#allocation4 + $0x310] sm:$0xff] }
0x198a   :  { %3272 = vrcp.f32 %v2183_v30  ;;  %v2184_v8 = vadd.f32 1.0, %v3269_v35  ;;  %v2291_v28 = vpack.c.bf16 %v2289_v27, %v2288_v25  ;;  %v2296_v30 = vld [vmem:[#allocation4 + $0x340] sm:$0xff] }
0x198b   :  { %3274 = vrcp.f32 %v2186_v40  ;;  %v2294_v35 = vld [vmem:[#allocation4 + $0x320] sm:$0xff] }
0x198c   :  { %3276 = vrcp.f32 %v2184_v8  ;;  %v2297_v8 = vld [vmem:[#allocation4 + $0x350] sm:$0xff] }
0x1993   :  { %v3271_v10 = vpop.eup %3270 }
0x1994   :  { %v3273_v13 = vpop.eup %3272  ;;  %v2193_v21 = vmul.f32 %v3271_v10, %v2165_v36 }
0x1995   :  { %v3275_v16 = vpop.eup %3274  ;;  %v2191_v19 = vmul.f32 %v3273_v13, %v2157_v5 }
0x1996   :  { %v3277_v18 = vpop.eup %3276  ;;  %v2194_v23 = vmul.f32 %v3275_v16, %v2168_v7  ;;  %v2295_v16 = vld [vmem:[#allocation4 + $0x330] sm:$0xff] }
0x1997   :  { %v2192_v29 = vmul.f32 %v3277_v18, %v2160_v38 }
0x1998   :  { %v2202_v43 = vpack.c.bf16 %v2194_v23, %v2193_v21 }
0x1999   :  { %v2201_v45 = vpack.c.bf16 %v2192_v29, %v2191_v19 }
0x199b   :  { %2959 = vmatprep.subr.bf16.mxu0 %v2201_v45 }
0x199c   :  { %2960 = vmatpush3.bf16.msra.mxu0 %v2201_v45 }
0x199d   :  { %2961 = vmatprep.subr.bf16.mxu0 %v2202_v43 }
0x19a0   :  { %2962 = vmatpush3.bf16.msra.mxu0 %v2202_v43 }
0x19a1   :  { %2975 = vmatprep.subr.bf16.mxu0 %v3396_v0 }
0x19a3   :  { %2964 = vmatmul.mubr.msk.bf16.vlgmr.msra.gmra.mrb[48].mxu0 %vm444_vm4, %v2200_v47 }
0x19a4   :  { %2979 = vmatprep.mubr.msk.bf16.mxu0 %vm3397_vm0, %v3396_v0 }
0x1a76   :  { %v2965_v54 = vpop.f32.mrb[48].mxu0 }
0x1a77   :  { %v2256_v41 = vadd.f32 %v2965_v54, %v2205_v51  ;;  %v2247_v42 = vpop.f32.mrb[49].mxu0 }
0x1a78   :  { %v2248_v56 = vadd.f32 %v2247_v42, %v2203_v34  ;;  %v2966_v57 = vpop.f32.mrb[50].mxu0 }
0x1a79   :  { %v2264_v58 = vsub.f32 0.0, %v2256_v41  ;;  %v2259_v59 = vadd.f32 %v2966_v57, %v2206_v39  ;;  %v2250_v50 = vpop.f32.mrb[51].mxu0 }
0x1a7a   :  { %v2262_v52 = vsub.f32 0.0, %v2248_v56  ;;  %v2251_v53 = vadd.f32 %v2250_v50, %v2204_v44 }
0x1a7b   :  { %v2270_v55 = vmul.f32 1.442695, %v2264_v58  ;;  %v2265_v60 = vsub.f32 0.0, %v2259_v59 }
0x1a7c   :  { %v2266_v61 = vmul.f32 1.442695, %v2262_v52  ;;  %v2263_v62 = vsub.f32 0.0, %v2251_v53 }
0x1a7d   :  { %3278 = vpow2.f32 %v2270_v55  ;;  %v2272_v1 = vmul.f32 1.442695, %v2265_v60 }
0x1a7e   :  { %3280 = vpow2.f32 %v2266_v61  ;;  %v2268_v3 = vmul.f32 1.442695, %v2263_v62 }
0x1a7f   :  { %3282 = vpow2.f32 %v2272_v1  ;;  %v2377_v1 = vld [vmem:[#allocation4 + $0x360] sm:$0xff] }
0x1a80   :  { %3284 = vpow2.f32 %v2268_v3  ;;  %v2378_v3 = vld [vmem:[#allocation4 + $0x370] sm:$0xff] }
0x1a87   :  { %v3279_v48 = vpop.eup %3278 }
0x1a88   :  { %v3281_v36 = vpop.eup %3280  ;;  %v2276_v2 = vadd.f32 1.0, %v3279_v48  ;;  %v2379_v48 = vpack.c.bf16 %v2378_v3, %v2377_v1 }
0x1a89   :  { %v3283_v37 = vpop.eup %3282  ;;  %v2274_v5 = vadd.f32 1.0, %v3281_v36  ;;  %v2382_v36 = vld [vmem:[#allocation4 + $0x380] sm:$0xff] }
0x1a8a   :  { %v3285_v6 = vpop.eup %3284  ;;  %3286 = vrcp.f32 %v2276_v2  ;;  %v2277_v4 = vadd.f32 1.0, %v3283_v37  ;;  %v2383_v37 = vld [vmem:[#allocation4 + $0x390] sm:$0xff] }
0x1a8b   :  { %3288 = vrcp.f32 %v2274_v5  ;;  %v2275_v7 = vadd.f32 1.0, %v3285_v6 }
0x1a8c   :  { %3290 = vrcp.f32 %v2277_v4 }
0x1a8d   :  { %3292 = vrcp.f32 %v2275_v7 }
0x1a94   :  { %v3287_v11 = vpop.eup %3286 }
0x1a95   :  { %v3289_v9 = vpop.eup %3288  ;;  %v2284_v14 = vmul.f32 %v3287_v11, %v2256_v41 }
0x1a96   :  { %v3291_v38 = vpop.eup %3290  ;;  %v2282_v17 = vmul.f32 %v3289_v9, %v2248_v56  ;;  %v2428_v9 = vld [vmem:[#allocation4 + $0x3a0] sm:$0xff] }
0x1a97   :  { %v3293_v12 = vpop.eup %3292  ;;  %v2285_v15 = vmul.f32 %v3291_v38, %v2259_v59  ;;  %v2429_v38 = vld [vmem:[#allocation4 + $0x3b0] sm:$0xff] }
0x1a98   :  { %v2283_v20 = vmul.f32 %v3293_v12, %v2251_v53 }
0x1a99   :  { %v2293_v24 = vpack.c.bf16 %v2285_v15, %v2284_v14  ;;  %v2430_v14 = vpack.c.bf16 %v2429_v38, %v2428_v9  ;;  %v2432_v15 = vld [vmem:[#allocation4 + $0x3c0] sm:$0xff] }
0x1a9a   :  { %v2292_v33 = vpack.c.bf16 %v2283_v20, %v2282_v17  ;;  %v2433_v20 = vld [vmem:[#allocation4 + $0x3d0] sm:$0xff] }
0x1a9c   :  { %2967 = vmatprep.subr.bf16.mxu1 %v2292_v33 }
0x1a9d   :  { %2968 = vmatpush3.bf16.msra.mxu1 %v2292_v33 }
0x1a9e   :  { %2969 = vmatprep.subr.bf16.mxu1 %v2293_v24 }
0x1aa1   :  { %2970 = vmatpush3.bf16.msra.mxu1 %v2293_v24 }
0x1aa2   :  { %2983 = vmatprep.subr.bf16.mxu1 %v3396_v0 }
0x1aa4   :  { %2972 = vmatmul.mubr.msk.bf16.vlgmr.msra.gmra.mrb[48].mxu1 %vm444_vm4, %v2291_v28 }
0x1aa5   :  { %2985 = vmatprep.mubr.msk.bf16.mxu1 %vm3397_vm0, %v3396_v0 }
0x1b77   :  { %v2973_v40 = vpop.f32.mrb[48].mxu1 }
0x1b78   :  { %v2347_v10 = vadd.f32 %v2973_v40, %v2296_v30  ;;  %v2338_v13 = vpop.f32.mrb[49].mxu1 }
0x1b79   :  { %v2339_v18 = vadd.f32 %v2338_v13, %v2294_v35  ;;  %v2974_v21 = vpop.f32.mrb[50].mxu1 }
0x1b7a   :  { %v2355_v23 = vsub.f32 0.0, %v2347_v10  ;;  %v2350_v19 = vadd.f32 %v2974_v21, %v2297_v8  ;;  %v2341_v29 = vpop.f32.mrb[51].mxu1 }
0x1b7b   :  { %v2353_v43 = vsub.f32 0.0, %v2339_v18  ;;  %v2342_v45 = vadd.f32 %v2341_v29, %v2295_v16  ;;  %v2490_v29 = vld [vmem:[#allocation4 + $0x3e0] ss:$0 sm:$0xff] }
0x1b7c   :  { %v2361_v22 = vmul.f32 1.442695, %v2355_v23  ;;  %v2356_v46 = vsub.f32 0.0, %v2350_v19 }
0x1b7d   :  { %v2357_v47 = vmul.f32 1.442695, %v2353_v43  ;;  %v2354_v49 = vsub.f32 0.0, %v2342_v45 }
0x1b7e   :  { %3294 = vpow2.f32 %v2361_v22  ;;  %v2363_v26 = vmul.f32 1.442695, %v2356_v46  ;;  %v2542_v22 = vld [vmem:[#allocation4 + $0x120] sm:$0xff]  ;;  %v2543_v46 = vld [vmem:[#allocation4 + $0x130] sm:$0xff] }
0x1b7f   :  { %3296 = vpow2.f32 %v2357_v47  ;;  %v2359_v31 = vmul.f32 1.442695, %v2354_v49  ;;  %v3003_v47 = vpack.c.bf16 %v2543_v46, %v2542_v22  ;;  %v3400_v49 = vmov 0.0|0.0  }
0x1b80   :  { %3298 = vpow2.f32 %v2363_v26  ;;  %v2493_v26 = vld [vmem:[#allocation4 + $0x3f0] ss:$0 sm:$0xff] }
0x1b81   :  { %3300 = vpow2.f32 %v2359_v31 }
0x1b88   :  { %v3295_v51 = vpop.eup %3294 }
0x1b89   :  { %v3297_v34 = vpop.eup %3296  ;;  %v2367_v54 = vadd.f32 1.0, %v3295_v51 }
0x1b8a   :  { %v3299_v39 = vpop.eup %3298  ;;  %v2365_v41 = vadd.f32 1.0, %v3297_v34 }
0x1b8b   :  { %v3301_v42 = vpop.eup %3300  ;;  %3302 = vrcp.f32 %v2367_v54  ;;  %v2368_v44 = vadd.f32 1.0, %v3299_v39 }
0x1b8c   :  { %3304 = vrcp.f32 %v2365_v41  ;;  %v2366_v56 = vadd.f32 1.0, %v3301_v42 }
0x1b8d   :  { %3306 = vrcp.f32 %v2368_v44 }
0x1b8e   :  { %3308 = vrcp.f32 %v2366_v56 }
0x1b95   :  { %v3303_v57 = vpop.eup %3302 }
0x1b96   :  { %v3305_v58 = vpop.eup %3304  ;;  %v2375_v52 = vmul.f32 %v3303_v57, %v2347_v10 }
0x1b97   :  { %v3307_v59 = vpop.eup %3306  ;;  %v2373_v55 = vmul.f32 %v3305_v58, %v2339_v18 }
0x1b98   :  { %v3309_v50 = vpop.eup %3308  ;;  %v2376_v53 = vmul.f32 %v3307_v59, %v2350_v19 }
0x1b99   :  { %v2374_v60 = vmul.f32 %v3309_v50, %v2342_v45  ;;  %v2491_v45 = vpack.c.bf16 %v2490_v29, %v2490_v29 }
0x1b9a   :  { %v2381_v61 = vpack.c.bf16 %v2376_v53, %v2375_v52 }
0x1b9b   :  { %v2380_v62 = vpack.c.bf16 %v2374_v60, %v2373_v55 }
0x1b9d   :  { %2976 = vmatpush3.bf16.msra.mxu0 %v2380_v62 }
0x1b9e   :  { %2977 = vmatprep.subr.bf16.mxu0 %v3396_v0 }
0x1ba1   :  { %2978 = vmatpush3.bf16.msra.mxu0 %v2381_v61 }
0x1ba2   :  { %2989 = vmatprep.subr.bf16.mxu0 %v3396_v0 }
0x1ba4   :  { %2980 = vmatmul.mubr.msk.bf16.vlgmr.msra.gmra.mrb[52].mxu0 %vm444_vm4, %v2379_v48 }
0x1ba5   :  { %2991 = vmatprep.mubr.msk.bf16.mxu0 %vm3397_vm0, %v3396_v0 }
0x1c77   :  { %v2421_v2 = vpop.f32.mrb[52].mxu0 }
0x1c78   :  { %v2981_v5 = vpop.f32.mrb[53].mxu0  ;;  %v2422_v4 = vadd.f32 %v2421_v2, %v2382_v36 }
0x1c79   :  { %v2424_v6 = vpop.f32.mrb[54].mxu0 }
0x1c7a   :  { %v2425_v7 = vadd.f32 %v2424_v6, %v2383_v37  ;;  %v2982_v11 = vpop.f32.mrb[55].mxu0 }
0x1c7c   :  { %v2431_v12 = vpack.c.bf16 %v2425_v7, %v2422_v4 }
0x1c7e   :  { %2984 = vmatpush3.bf16.msra.mxu1 %v2431_v12 }
0x1c7f   :  { %3002 = vmatprep.subr.bf16.mxu1 %v3400_v49 }
0x1c81   :  { %2986 = vmatmul.mubr.msk.bf16.vlgmr.msra.gmra.mrb[52].mxu1 %vm131_vm3, %v2430_v14 }
0x1c82   :  { %2999 = vmatprep.mubr.msk.f32.mxu1 %vm3397_vm0, %v3396_v0  ;;  %3004 = vmatpush3.bf16.msra.mxu1 %v3003_v47 }
0x1d54   :  { %v2471_v17 = vpop.f32.mrb[52].mxu1 }
0x1d55   :  { %v2472_v24 = vadd.f32 %v2471_v17, %v2432_v15  ;;  %v2987_v33 = vpop.f32.mrb[53].mxu1 }
0x1d56   :  { %v2474_v25 = vpop.f32.mrb[54].mxu1 }
0x1d57   :  { %v2478_v27 = vsub.f32 0.0, %v2472_v24  ;;  %v2475_v28 = vadd.f32 %v2474_v25, %v2433_v20  ;;  %v2988_v30 = vpop.f32.mrb[55].mxu1 }
0x1d59   :  { %v2480_v35 = vmul.f32 1.442695, %v2478_v27  ;;  %v2479_v40 = vsub.f32 0.0, %v2475_v28 }
0x1d5b   :  { %3310 = vpow2.f32 %v2480_v35  ;;  %v2482_v8 = vmul.f32 1.442695, %v2479_v40 }
0x1d5d   :  { %3312 = vpow2.f32 %v2482_v8 }
0x1d65   :  { %v3311_v10 = vpop.eup %3310 }
0x1d66   :  { %v2484_v13 = vadd.f32 1.0, %v3311_v10 }
0x1d67   :  { %v3313_v16 = vpop.eup %3312 }
0x1d68   :  { %3314 = vrcp.f32 %v2484_v13  ;;  %v2485_v18 = vadd.f32 1.0, %v3313_v16 }
0x1d6a   :  { %3316 = vrcp.f32 %v2485_v18 }
0x1d72   :  { %v3315_v0 = vpop.eup %3314 }
0x1d73   :  { %v2488_v23 = vmul.f32 %v3315_v0, %v2472_v24 }
0x1d74   :  { %v3317_v21 = vpop.eup %3316 }
0x1d75   :  { %v2489_v19 = vmul.f32 %v3317_v21, %v2475_v28 }
0x1d77   :  { %v2492_v43 = vpack.c.bf16 %v2489_v19, %v2488_v23 }
0x1d79   :  { %2990 = vmatpush3.bf16.msra.mxu0 %v2492_v43 }
0x1d7c   :  { %2992 = vmatmul.mubr.msk.bf16.vlgmr.msra.gmra.mrb[56].mxu0 %vm131_vm3, %v2491_v45 }
0x1e4f   :  { %v2531_v31 = vpop.f32.mrb[56].mxu0 }
0x1e50   :  { %v2532_v51 = vadd.f32 %v2531_v31, %v2493_v26  ;;  %v2993_v34 = vpop.f32.mrb[57].mxu0 }
0x1e51   :  { %v2534_v54 = vpop.f32.mrb[58].mxu0 }
0x1e52   :  { %v2540_v39 = vrot.slane %v2532_v51, %v3489_v32  ;;  %v2994_v41 = vpop.f32.mrb[59].mxu0 }
0x1e54   :  { %v2541_v42 = vmul.f32 %v2540_v39, %v3511_v63 }
0x1e56   :  { %3000 = vmatmul.mubr.msk.f32.vlgmr.msra.gmra.mrb[56].mxu1 %vm131_vm3, %v2541_v42 }
0x1f29   :  { %v2613_v44 = vpop.f32.mrb[56].mxu1 }
0x1f2a   :  { %2618 = vst.msk [vmem:[%s3654_s3] sm:$0xff] %vm2617_vm5, %v2613_v44  ;;  %v3001_v56 = vpop.f32.mrb[57].mxu1 }
0x1f2b   :  { %2623 = vsyncpa [#allocation3], 1 }
0x1f2c   :  { %2624 = vsyncpa [#allocation5], 1 }

</bundles_post_ra>
